<compile_context>
chip_gen: v7x
topology: tpu7x:2x2x1
jax: 0.10.0
libtpu: 0.0.40
codegen_flags: <defaults>
</compile_context>

<pallas_src>
import functools
import numpy as np
import jax
import jax.numpy as jnp
from jax import lax
from jax.experimental import pallas as pl
from jax.experimental.pallas import tpu as pltpu

# f32 keeps exact parity with the PyTorch/f64 reference (2e-3 self-check).
# Set to jnp.bfloat16 on v6e/v7x: weights and the gate-preactivation stream are
# then stored/streamed in bf16 while accumulation and h/c state stay f32.
MATMUL_DTYPE = jnp.float32
_XLA_PRECISION = (lax.Precision.HIGHEST
                  if jnp.dtype(MATMUL_DTYPE) == jnp.dtype(jnp.float32)
                  else lax.Precision.DEFAULT)

_SUBLANE = 8
_LANE = 128


def _round_up(x, m):
    return ((x + m - 1) // m) * m


def _dtype_bytes(dt):
    return jnp.dtype(dt).itemsize


def _vmem_capacity_bytes():
    """Per-generation VMEM capacity (v5e/v6e: 128 MiB, v7x: 64 MiB)."""
    try:
        info = pltpu.get_tpu_info()
        cap = int(getattr(info, "vmem_capacity_bytes", 0))
        if cap > 0:
            return cap
    except Exception:
        pass
    return 64 * 1024 * 1024          # v7x-safe fallback


def _pack_w_t(w, H, Hp, in_dim, in_pad):
    """PyTorch packs LSTM gate rows [i; f; g; o] in a (4H, in) matrix.  Emit
    W^T with lane-dense column blocks [ i | f | o | g ] (each padded to Hp) and
    rows zero-padded to in_pad so padded input lanes contribute nothing."""
    blocks = (w[:H], w[H:2 * H], w[3 * H:4 * H], w[2 * H:3 * H])   # i, f, o, g
    cols = [jnp.pad(jnp.transpose(b), ((0, in_pad - in_dim), (0, Hp - H)))
            for b in blocks]
    return jnp.concatenate(cols, axis=1)                           # (in_pad, 4Hp)


def _pack_bias(b, H, Hp):
    blocks = (b[:H], b[H:2 * H], b[3 * H:4 * H], b[2 * H:3 * H])   # i, f, o, g
    return jnp.concatenate([jnp.pad(v, (0, Hp - H)) for v in blocks])


def _pick_tiles(T, B, H, O, L):
    """Choose (bblock, B_pad, Hp, O_pad, tchunk, T_pad, vmem_limit)."""
    Hp = _round_up(H, _LANE)
    O_pad = _round_up(O, _LANE)
    B_pad = _round_up(max(B, _SUBLANE), _SUBLANE)
    # Split large batches into multiple blocks: feeds the 'parallel' grid axis
    # (both v7x TensorCores) while keeping M >= 128 rows on the MXU.  Small
    # batches stay in one block so the padded HBM stream does not blow up.
    bblock = 128 if B_pad >= 256 else B_pad
    B_pad = _round_up(B_pad, bblock)

    cap = _vmem_capacity_bytes()
    wbytes = _dtype_bytes(MATMUL_DTYPE)
    gbytes = _dtype_bytes(MATMUL_DTYPE)
    lm1 = max(L - 1, 1)
    fixed = (L * Hp * 4 * Hp * wbytes                 # resident W_hh stack
             + lm1 * Hp * 4 * Hp * wbytes             # resident W_ih (layers>=1)
             + lm1 * _SUBLANE * 4 * Hp * 4            # biases (layers>=1)
             + Hp * O_pad * wbytes + _SUBLANE * O_pad * 4   # fc weight / bias
             + 4 * 2 * L * bblock * Hp * 4            # h0/c0 in + hN/cN out (x2 buf)
             + 2 * bblock * O_pad * 4                 # logits out (x2 buf)
             + 2 * L * bblock * Hp * 4)               # h/c scratch
    per_t = 2 * bblock * 4 * Hp * gbytes              # double-buffered gx chunk
    budget = int(0.7 * cap)
    tchunk = int(max(1, min(T, 32, max(budget - fixed, per_t) // per_t)))
    T_pad = _round_up(T, tchunk)
    need = fixed + per_t * tchunk
    vmem_limit = int(min(0.9 * cap, max(1.3 * need, 32 * 1024 * 1024)))
    return bblock, B_pad, Hp, O_pad, tchunk, T_pad, vmem_limit


# ----------------------------------------------------------------------------
# Single fused kernel: all LSTM layers + fc(relu(h_N_top)).
# grid = (batch_blocks [parallel], time_chunks [arbitrary]).
# gx_ref holds layer-0 gate pre-activations (x @ W_ih^T + b), gate column
# order [ i | f | o | g ], each Hp (multiple of 128) lanes wide.
# ----------------------------------------------------------------------------
def _fused_lstm_kernel(gx_ref, whh_ref, wih_ref, bias_ref, h0_ref, c0_ref,
                       fcw_ref, fcb_ref,
                       logits_ref, hN_ref, cN_ref,
                       h_scr, c_scr,
                       *, n_layers, hp, tchunk, t_total, unroll):
    L = n_layers
    ti = pl.program_id(1)
    needs_mask = (t_total % tchunk) != 0            # static: tail masking only
    t_base = ti * tchunk

    @pl.when(ti == 0)                               # per-batch-block state init
    def _():
        h_scr[...] = h0_ref[...]
        c_scr[...] = c0_ref[...]

    # Small per-layer bias loads hoisted out of the time loop ((1, 4Hp) each).
    biases = [bias_ref[l] for l in range(L - 1)]

    def step(t, carry):
        hs, cs = carry
        new_hs, new_cs = [], []
        x_in = None
        for l in range(L):
            # Weight loads stay inside the step: with hp padded to 128 a
            # hoisted (hp, 4hp) slab would pin ~64 vregs per layer.
            rec = jnp.dot(hs[l].astype(MATMUL_DTYPE), whh_ref[l],
                          preferred_element_type=jnp.float32)
            if l == 0:
                gates = gx_ref[t] + rec
            else:
                proj = jnp.dot(x_in.astype(MATMUL_DTYPE), wih_ref[l - 1],
                               preferred_element_type=jnp.float32)
                gates = proj + biases[l - 1] + rec
            # Gate order [ i | f | o | g ]; every slice is a whole-vreg slice.
            sig = jax.nn.sigmoid(gates[:, :3 * hp])
            g_t = jnp.tanh(gates[:, 3 * hp:])
            c_new = sig[:, hp:2 * hp] * cs[l] + sig[:, :hp] * g_t
            h_new = sig[:, 2 * hp:3 * hp] * jnp.tanh(c_new)
            if needs_mask:                          # emitted only for ragged T
                valid = (t_base + t) < t_total
                h_new = jnp.where(valid, h_new, hs[l])
                c_new = jnp.where(valid, c_new, cs[l])
            new_hs.append(h_new)
            new_cs.append(c_new)
            x_in = h_new                            # feeds the next layer in-kernel
        return tuple(new_hs), tuple(new_cs)

    init = (tuple(h_scr[l] for l in range(L)),
            tuple(c_scr[l] for l in range(L)))
    hs, cs = lax.fori_loop(0, tchunk, step, init, unroll=unroll)

    for l in range(L):
        h_scr[l] = hs[l]
        c_scr[l] = cs[l]

    @pl.when(ti == pl.num_programs(1) - 1)          # final state / logits ONCE
    def _():
        for l in range(L):
            hN_ref[l] = hs[l]
            cN_ref[l] = cs[l]
        x = jnp.maximum(hs[L - 1], 0.0)             # relu(out[:, -1]) == relu(h_N)
        logits_ref[...] = (jnp.dot(x.astype(MATMUL_DTYPE), fcw_ref[...],
                                   preferred_element_type=jnp.float32)
                           + fcb_ref[...]).astype(logits_ref.dtype)


# ----------------------------------------------------------------------------
# Full LSTMNet forward.
# ----------------------------------------------------------------------------
def lstm_net_forward(params, x_btd, h):
    """x_btd: (B, T, input_dim) batch-first; h = (h0, c0), each (L, B, H)."""
    h0_all, c0_all = h
    B, T, D_in = x_btd.shape
    L = len(params["lstm"])
    H = h0_all.shape[-1]
    O = params["fc"]["w"].shape[0]

    bblock, B_pad, Hp, O_pad, tchunk, T_pad, vmem_limit = _pick_tiles(T, B, H, O, L)
    nb = B_pad // bblock
    nt = T_pad // tchunk
    unroll = int(min(tchunk, 8))       # partial unroll: LLO visibility without
                                       # vreg-pressure blowup

    # ---- host-side packing: padding, gate reordering, optional bf16 casts ---
    x_p = jnp.pad(x_btd, ((0, B_pad - B), (0, 0), (0, 0)))
    h0_p = jnp.pad(h0_all, ((0, 0), (0, B_pad - B), (0, Hp - H))).astype(jnp.float32)
    c0_p = jnp.pad(c0_all, ((0, 0), (0, B_pad - B), (0, Hp - H))).astype(jnp.float32)

    whh_all = jnp.stack([_pack_w_t(lp["w_hh"], H, Hp, H, Hp)
                         for lp in params["lstm"]]).astype(MATMUL_DTYPE)
    if L > 1:
        wih_rest = jnp.stack([_pack_w_t(params["lstm"][l]["w_ih"], H, Hp, H, Hp)
                              for l in range(1, L)]).astype(MATMUL_DTYPE)
        b_rest = jnp.stack([_pack_bias(params["lstm"][l]["b_ih"]
                                       + params["lstm"][l]["b_hh"], H, Hp)
                            for l in range(1, L)]).reshape(L - 1, 1, 4 * Hp)
    else:
        wih_rest = jnp.zeros((1, Hp, 4 * Hp), MATMUL_DTYPE)     # unused dummy
        b_rest = jnp.zeros((1, 1, 4 * Hp), jnp.float32)
    b_rest = b_rest.astype(jnp.float32)                         # gate math stays f32

    fc_w_t = jnp.pad(jnp.transpose(params["fc"]["w"]),
                     ((0, Hp - H), (0, O_pad - O))).astype(MATMUL_DTYPE)
    fc_b = jnp.pad(params["fc"]["b"], (0, O_pad - O)).reshape(1, O_pad).astype(jnp.float32)

    # Layer-0 input projection hoisted out of the recurrence: one big GEMM,
    # emitted directly in time-major layout (folds the batch-first -> time-major
    # transpose into the GEMM output), bias folded in, lane-dense gate columns.
    lp0 = params["lstm"][0]
    wih0_t = _pack_w_t(lp0["w_ih"], H, Hp, D_in, D_in)
    b0 = _pack_bias(lp0["b_ih"] + lp0["b_hh"], H, Hp).reshape(1, 1, 4 * Hp)
    gates0 = (jnp.einsum("btd,dg->tbg",
                         x_p.astype(MATMUL_DTYPE), wih0_t.astype(MATMUL_DTYPE),
                         precision=_XLA_PRECISION,
                         preferred_element_type=jnp.float32)
              + b0).astype(MATMUL_DTYPE)
    gates0 = jnp.pad(gates0, ((0, T_pad - T), (0, 0), (0, 0)))   # masked tail

    kernel = functools.partial(_fused_lstm_kernel, n_layers=L, hp=Hp,
                               tchunk=tchunk, t_total=T, unroll=unroll)
    lm1 = max(L - 1, 1)

    grid_spec = pltpu.PrefetchScalarGridSpec(
        num_scalar_prefetch=0,
        grid=(nb, nt),
        in_specs=[
            pl.BlockSpec((tchunk, bblock, 4 * Hp), lambda b, t: (t, b, 0)),   # gx stream
            pl.BlockSpec((L, Hp, 4 * Hp), lambda b, t: (0, 0, 0)),            # W_hh (resident)
            pl.BlockSpec((lm1, Hp, 4 * Hp), lambda b, t: (0, 0, 0)),          # W_ih l>=1
            pl.BlockSpec((lm1, 1, 4 * Hp), lambda b, t: (0, 0, 0)),           # biases l>=1
            pl.BlockSpec((L, bblock, Hp), lambda b, t: (0, b, 0)),            # h0
            pl.BlockSpec((L, bblock, Hp), lambda b, t: (0, b, 0)),            # c0
            pl.BlockSpec((Hp, O_pad), lambda b, t: (0, 0)),                   # fc W^T
            pl.BlockSpec((1, O_pad), lambda b, t: (0, 0)),                    # fc bias
        ],
        out_specs=[
            pl.BlockSpec((bblock, O_pad), lambda b, t: (b, 0)),               # logits
            pl.BlockSpec((L, bblock, Hp), lambda b, t: (0, b, 0)),            # h_N
            pl.BlockSpec((L, bblock, Hp), lambda b, t: (0, b, 0)),            # c_N
        ],
        scratch_shapes=[pltpu.VMEM((L, bblock, Hp), jnp.float32),
                        pltpu.VMEM((L, bblock, Hp), jnp.float32)],
    )

    logits_pad, h_n, c_n = pl.pallas_call(
        kernel,
        grid_spec=grid_spec,
        out_shape=(jax.ShapeDtypeStruct((B_pad, O_pad), jnp.float32),
                   jax.ShapeDtypeStruct((L, B_pad, Hp), jnp.float32),
                   jax.ShapeDtypeStruct((L, B_pad, Hp), jnp.float32)),
        compiler_params=pltpu.CompilerParams(
            dimension_semantics=("parallel", "arbitrary"),
            vmem_limit_bytes=vmem_limit),
    )(gates0, whh_all, wih_rest, b_rest, h0_p, c0_p, fc_w_t, fc_b)

    logits = logits_pad[:B, :O]
    return logits, (h_n[:, :B, :H], c_n[:, :B, :H])


# ----------------------------------------------------------------------------
# Deterministic parameter init (PyTorch default: U(-1/sqrt(H), 1/sqrt(H))).
# ----------------------------------------------------------------------------
def init_params(key, input_dim, hidden_dim, output_dim, n_layers):
    bound = 1.0 / np.sqrt(hidden_dim)
    lstm_params = []
    for l in range(n_layers):
        in_dim = input_dim if l == 0 else hidden_dim
        key, k1, k2, k3, k4 = jax.random.split(key, 5)
        lstm_params.append(dict(
            w_ih=jax.random.uniform(k1, (4 * hidden_dim, in_dim),
                                    jnp.float32, -bound, bound),
            w_hh=jax.random.uniform(k2, (4 * hidden_dim, hidden_dim),
                                    jnp.float32, -bound, bound),
            b_ih=jax.random.uniform(k3, (4 * hidden_dim,),
                                    jnp.float32, -bound, bound),
            b_hh=jax.random.uniform(k4, (4 * hidden_dim,),
                                    jnp.float32, -bound, bound),
        ))
    key, kf1, kf2 = jax.random.split(key, 3)
    fc_params = dict(
        w=jax.random.uniform(kf1, (output_dim, hidden_dim), jnp.float32,
                             -bound, bound),
        b=jax.random.uniform(kf2, (output_dim,), jnp.float32, -bound, bound),
    )
    return {"lstm": lstm_params, "fc": fc_params}


# ----------------------------------------------------------------------------
# Pure-numpy (f64) reference of the PyTorch forward, for a self-check.
# ----------------------------------------------------------------------------
def _reference_forward_np(params, x_btd, h):
    def sig(z):
        return 1.0 / (1.0 + np.exp(-z))
    x = np.asarray(x_btd, np.float64)
    h0 = np.asarray(h[0], np.float64)
    c0 = np.asarray(h[1], np.float64)
    H = h0.shape[-1]
    layer_in = x
    hs, cs = [], []
    for l, lp in enumerate(params["lstm"]):
        w_ih = np.asarray(lp["w_ih"], np.float64)
        w_hh = np.asarray(lp["w_hh"], np.float64)
        b = np.asarray(lp["b_ih"], np.float64) + np.asarray(lp["b_hh"], np.float64)
        h_t, c_t = h0[l], c0[l]
        outs = []
        for t in range(layer_in.shape[1]):
            gates = layer_in[:, t] @ w_ih.T + h_t @ w_hh.T + b
            i, f = gates[:, :H], gates[:, H:2 * H]
            g, o = gates[:, 2 * H:3 * H], gates[:, 3 * H:]
            c_t = sig(f) * c_t + sig(i) * np.tanh(g)
            h_t = sig(o) * np.tanh(c_t)
            outs.append(h_t)
        layer_in = np.stack(outs, axis=1)
        hs.append(h_t)
        cs.append(c_t)
    last = np.maximum(layer_in[:, -1], 0.0)
    logits = (last @ np.asarray(params["fc"]["w"], np.float64).T
              + np.asarray(params["fc"]["b"], np.float64))
    return logits, (np.stack(hs, 0), np.stack(cs, 0))


if __name__ == "__main__":
    # Small shapes consistent with the module's forward.
    batch = 2
    seq_len = 8
    input_dim = 4
    hidden_dim = 32
    output_dim = 3
    n_layers = 2

    key = jax.random.PRNGKey(0)
    key, kp, kx = jax.random.split(key, 3)
    params = init_params(kp, input_dim, hidden_dim, output_dim, n_layers)
    x = jax.random.normal(kx, (batch, seq_len, input_dim), jnp.float32)

    # init_hidden(batch)
    h0 = jnp.zeros((n_layers, batch, hidden_dim), jnp.float32)
    c0 = jnp.zeros((n_layers, batch, hidden_dim), jnp.float32)

    fwd = jax.jit(functools.partial(lstm_net_forward, params))
    out, (h_n, c_n) = fwd(x, (h0, c0))
    jax.block_until_ready((out, h_n, c_n))

    assert out.shape == (batch, output_dim)
    assert h_n.shape == (n_layers, batch, hidden_dim)
    assert c_n.shape == (n_layers, batch, hidden_dim)

    # Numerical self-check against a pure-numpy f64 reference of the module.
    ref_out, (ref_h, ref_c) = _reference_forward_np(params, x, (h0, c0))
    np.testing.assert_allclose(np.asarray(out), ref_out, rtol=2e-3, atol=2e-3)
    np.testing.assert_allclose(np.asarray(h_n), ref_h, rtol=2e-3, atol=2e-3)
    np.testing.assert_allclose(np.asarray(c_n), ref_c, rtol=2e-3, atol=2e-3)

    print("KERNEL_OK")
</pallas_src>

<mosaic_0001>
module attributes {stable_mosaic.version = 11 : i64} {
  func.func @_fused_lstm_kernel(%arg0: i32, %arg1: i32, %arg2: memref<8x8x512xf32, #tpu.memory_space<vmem>>, %arg3: memref<2x128x512xf32, #tpu.memory_space<vmem>>, %arg4: memref<1x128x512xf32, #tpu.memory_space<vmem>>, %arg5: memref<1x1x512xf32, #tpu.memory_space<vmem>>, %arg6: memref<2x8x128xf32, #tpu.memory_space<vmem>>, %arg7: memref<2x8x128xf32, #tpu.memory_space<vmem>>, %arg8: memref<128x128xf32, #tpu.memory_space<vmem>>, %arg9: memref<1x128xf32, #tpu.memory_space<vmem>>, %arg10: memref<8x128xf32, #tpu.memory_space<vmem>>, %arg11: memref<2x8x128xf32, #tpu.memory_space<vmem>>, %arg12: memref<2x8x128xf32, #tpu.memory_space<vmem>>, %arg13: memref<2x8x128xf32, #tpu.memory_space<vmem>>, %arg14: memref<2x8x128xf32, #tpu.memory_space<vmem>>) attributes {dimension_semantics = [#tpu.dimension_semantics<parallel>, #tpu.dimension_semantics<arbitrary>], iteration_bounds = array<i64: 1, 1>, scalar_prefetch = 0 : i64, scratch_operands = 2 : i64, tpu.core_type = #tpu.core_type<tc>, window_params = [{transform_indices = @transform_0, window_bounds = array<i64: 8, 8, 512>}, {pipeline_mode = #tpu.pipeline_mode<synchronous>, transform_indices = @transform_1, window_bounds = array<i64: 2, 128, 512>}, {pipeline_mode = #tpu.pipeline_mode<synchronous>, transform_indices = @transform_2, window_bounds = array<i64: 1, 128, 512>}, {pipeline_mode = #tpu.pipeline_mode<synchronous>, transform_indices = @transform_3, window_bounds = array<i64: 1, 1, 512>}, {transform_indices = @transform_4, window_bounds = array<i64: 2, 8, 128>}, {transform_indices = @transform_5, window_bounds = array<i64: 2, 8, 128>}, {pipeline_mode = #tpu.pipeline_mode<synchronous>, transform_indices = @transform_6, window_bounds = array<i64: 128, 128>}, {pipeline_mode = #tpu.pipeline_mode<synchronous>, transform_indices = @transform_7, window_bounds = array<i64: 1, 128>}, {transform_indices = @transform_8, window_bounds = array<i64: 8, 128>}, {transform_indices = @transform_9, window_bounds = array<i64: 2, 8, 128>}, {transform_indices = @transform_10, window_bounds = array<i64: 2, 8, 128>}]} {
    %c0_i32 = arith.constant 0 : i32
    %0 = arith.cmpi eq, %arg1, %c0_i32 : i32
    %1 = arith.extui %0 : i1 to i32
    %c0_i32_0 = arith.constant 0 : i32
    %2 = arith.cmpi ne, %1, %c0_i32_0 : i32
    scf.if %2 {
      %c0_156 = arith.constant 0 : index
      %c0_157 = arith.constant 0 : index
      %c0_158 = arith.constant 0 : index
      %412 = vector.load %arg6[%c0_156, %c0_157, %c0_158] : memref<2x8x128xf32, #tpu.memory_space<vmem>>, vector<2x8x128xf32>
      %c0_159 = arith.constant 0 : index
      %c0_160 = arith.constant 0 : index
      %c0_161 = arith.constant 0 : index
      %413 = vector.load %arg13[%c0_159, %c0_160, %c0_161] : memref<2x8x128xf32, #tpu.memory_space<vmem>>, vector<2x8x128xf32>
      tpu.vector_store %arg13[%c0_159, %c0_160, %c0_161], %412 {strides = array<i32>} : memref<2x8x128xf32, #tpu.memory_space<vmem>>, vector<2x8x128xf32>,
      %c0_162 = arith.constant 0 : index
      %c0_163 = arith.constant 0 : index
      %c0_164 = arith.constant 0 : index
      %414 = vector.load %arg7[%c0_162, %c0_163, %c0_164] : memref<2x8x128xf32, #tpu.memory_space<vmem>>, vector<2x8x128xf32>
      %c0_165 = arith.constant 0 : index
      %c0_166 = arith.constant 0 : index
      %c0_167 = arith.constant 0 : index
      %415 = vector.load %arg14[%c0_165, %c0_166, %c0_167] : memref<2x8x128xf32, #tpu.memory_space<vmem>>, vector<2x8x128xf32>
      tpu.vector_store %arg14[%c0_165, %c0_166, %c0_167], %414 {strides = array<i32>} : memref<2x8x128xf32, #tpu.memory_space<vmem>>, vector<2x8x128xf32>,
    } else {
    }
    %c0 = arith.constant 0 : index
    %c0_1 = arith.constant 0 : index
    %c0_2 = arith.constant 0 : index
    %3 = vector.load %arg5[%c0, %c0_1, %c0_2] : memref<1x1x512xf32, #tpu.memory_space<vmem>>, vector<1x1x512xf32>
    %4 = vector.shape_cast %3 : vector<1x1x512xf32> to vector<1x512xf32>
    %c0_3 = arith.constant 0 : index
    %c0_4 = arith.constant 0 : index
    %c0_5 = arith.constant 0 : index
    %5 = vector.load %arg13[%c0_3, %c0_4, %c0_5] : memref<2x8x128xf32, #tpu.memory_space<vmem>>, vector<1x8x128xf32>
    %6 = vector.shape_cast %5 : vector<1x8x128xf32> to vector<8x128xf32>
    %c1 = arith.constant 1 : index
    %c0_6 = arith.constant 0 : index
    %c0_7 = arith.constant 0 : index
    %7 = vector.load %arg13[%c1, %c0_6, %c0_7] : memref<2x8x128xf32, #tpu.memory_space<vmem>>, vector<1x8x128xf32>
    %8 = vector.shape_cast %7 : vector<1x8x128xf32> to vector<8x128xf32>
    %c0_8 = arith.constant 0 : index
    %c0_9 = arith.constant 0 : index
    %c0_10 = arith.constant 0 : index
    %9 = vector.load %arg14[%c0_8, %c0_9, %c0_10] : memref<2x8x128xf32, #tpu.memory_space<vmem>>, vector<1x8x128xf32>
    %10 = vector.shape_cast %9 : vector<1x8x128xf32> to vector<8x128xf32>
    %c1_11 = arith.constant 1 : index
    %c0_12 = arith.constant 0 : index
    %c0_13 = arith.constant 0 : index
    %11 = vector.load %arg14[%c1_11, %c0_12, %c0_13] : memref<2x8x128xf32, #tpu.memory_space<vmem>>, vector<1x8x128xf32>
    %12 = vector.shape_cast %11 : vector<1x8x128xf32> to vector<8x128xf32>
    %c0_i32_14 = arith.constant 0 : i32
    %c0_15 = arith.constant 0 : index
    %c0_16 = arith.constant 0 : index
    %c0_17 = arith.constant 0 : index
    %13 = vector.load %arg3[%c0_15, %c0_16, %c0_17] : memref<2x128x512xf32, #tpu.memory_space<vmem>>, vector<1x128x512xf32>
    %14 = vector.shape_cast %13 : vector<1x128x512xf32> to vector<128x512xf32>
    %cst = arith.constant dense<0.000000e+00> : vector<8x512xf32>
    %15 = tpu.matmul %6, %14, %cst {dimension_numbers = #tpu.dot_dimension_numbers<[1], [0], [0], [1], [0, 0, 1, 1], [], []>} : vector<8x128xf32>, vector<128x512xf32>, vector<8x512xf32> -> vector<8x512xf32>
    %16 = arith.index_cast %c0_i32_14 : i32 to index
    %c0_18 = arith.constant 0 : index
    %c0_19 = arith.constant 0 : index
    %17 = vector.load %arg2[%16, %c0_18, %c0_19] : memref<8x8x512xf32, #tpu.memory_space<vmem>>, vector<1x8x512xf32>
    %18 = vector.shape_cast %17 : vector<1x8x512xf32> to vector<8x512xf32>
    %19 = arith.addf %18, %15 : vector<8x512xf32>
    %20 = vector.extract_strided_slice %19 {offsets = [0, 0], sizes = [8, 384], strides = [1, 1]} : vector<8x512xf32> to vector<8x384xf32>
    %21 = arith.negf %20 : vector<8x384xf32>
    %22 = math.exp %21 : vector<8x384xf32>
    %cst_20 = arith.constant 1.000000e+00 : f32
    %23 = vector.broadcast %cst_20 : f32 to vector<8x384xf32>
    %24 = arith.addf %23, %22 : vector<8x384xf32>
    %25 = arith.divf %23, %24 : vector<8x384xf32>
    %26 = vector.extract_strided_slice %19 {offsets = [0, 384], sizes = [8, 128], strides = [1, 1]} : vector<8x512xf32> to vector<8x128xf32>
    %27 = math.tanh %26 : vector<8x128xf32>
    %28 = vector.extract_strided_slice %25 {offsets = [0, 128], sizes = [8, 128], strides = [1, 1]} : vector<8x384xf32> to vector<8x128xf32>
    %29 = arith.mulf %28, %10 : vector<8x128xf32>
    %30 = vector.extract_strided_slice %25 {offsets = [0, 0], sizes = [8, 128], strides = [1, 1]} : vector<8x384xf32> to vector<8x128xf32>
    %31 = arith.mulf %30, %27 : vector<8x128xf32>
    %32 = arith.addf %29, %31 : vector<8x128xf32>
    %33 = vector.extract_strided_slice %25 {offsets = [0, 256], sizes = [8, 128], strides = [1, 1]} : vector<8x384xf32> to vector<8x128xf32>
    %34 = math.tanh %32 : vector<8x128xf32>
    %35 = arith.mulf %33, %34 : vector<8x128xf32>
    %c1_21 = arith.constant 1 : index
    %c0_22 = arith.constant 0 : index
    %c0_23 = arith.constant 0 : index
    %36 = vector.load %arg3[%c1_21, %c0_22, %c0_23] : memref<2x128x512xf32, #tpu.memory_space<vmem>>, vector<1x128x512xf32>
    %37 = vector.shape_cast %36 : vector<1x128x512xf32> to vector<128x512xf32>
    %cst_24 = arith.constant dense<0.000000e+00> : vector<8x512xf32>
    %38 = tpu.matmul %8, %37, %cst_24 {dimension_numbers = #tpu.dot_dimension_numbers<[1], [0], [0], [1], [0, 0, 1, 1], [], []>} : vector<8x128xf32>, vector<128x512xf32>, vector<8x512xf32> -> vector<8x512xf32>
    %c0_25 = arith.constant 0 : index
    %c0_26 = arith.constant 0 : index
    %c0_27 = arith.constant 0 : index
    %39 = vector.load %arg4[%c0_25, %c0_26, %c0_27] : memref<1x128x512xf32, #tpu.memory_space<vmem>>, vector<1x128x512xf32>
    %40 = vector.shape_cast %39 : vector<1x128x512xf32> to vector<128x512xf32>
    %cst_28 = arith.constant dense<0.000000e+00> : vector<8x512xf32>
    %41 = tpu.matmul %35, %40, %cst_28 {dimension_numbers = #tpu.dot_dimension_numbers<[1], [0], [0], [1], [0, 0, 1, 1], [], []>} : vector<8x128xf32>, vector<128x512xf32>, vector<8x512xf32> -> vector<8x512xf32>
    %42 = vector.broadcast %4 : vector<1x512xf32> to vector<8x512xf32>
    %43 = arith.addf %41, %42 : vector<8x512xf32>
    %44 = arith.addf %43, %38 : vector<8x512xf32>
    %45 = vector.extract_strided_slice %44 {offsets = [0, 0], sizes = [8, 384], strides = [1, 1]} : vector<8x512xf32> to vector<8x384xf32>
    %46 = arith.negf %45 : vector<8x384xf32>
    %47 = math.exp %46 : vector<8x384xf32>
    %cst_29 = arith.constant 1.000000e+00 : f32
    %48 = vector.broadcast %cst_29 : f32 to vector<8x384xf32>
    %49 = arith.addf %48, %47 : vector<8x384xf32>
    %50 = arith.divf %48, %49 : vector<8x384xf32>
    %51 = vector.extract_strided_slice %44 {offsets = [0, 384], sizes = [8, 128], strides = [1, 1]} : vector<8x512xf32> to vector<8x128xf32>
    %52 = math.tanh %51 : vector<8x128xf32>
    %53 = vector.extract_strided_slice %50 {offsets = [0, 128], sizes = [8, 128], strides = [1, 1]} : vector<8x384xf32> to vector<8x128xf32>
    %54 = arith.mulf %53, %12 : vector<8x128xf32>
    %55 = vector.extract_strided_slice %50 {offsets = [0, 0], sizes = [8, 128], strides = [1, 1]} : vector<8x384xf32> to vector<8x128xf32>
    %56 = arith.mulf %55, %52 : vector<8x128xf32>
    %57 = arith.addf %54, %56 : vector<8x128xf32>
    %58 = vector.extract_strided_slice %50 {offsets = [0, 256], sizes = [8, 128], strides = [1, 1]} : vector<8x384xf32> to vector<8x128xf32>
    %59 = math.tanh %57 : vector<8x128xf32>
    %60 = arith.mulf %58, %59 : vector<8x128xf32>
    %c1_i32 = arith.constant 1 : i32
    %c0_30 = arith.constant 0 : index
    %c0_31 = arith.constant 0 : index
    %c0_32 = arith.constant 0 : index
    %61 = vector.load %arg3[%c0_30, %c0_31, %c0_32] : memref<2x128x512xf32, #tpu.memory_space<vmem>>, vector<1x128x512xf32>
    %62 = vector.shape_cast %61 : vector<1x128x512xf32> to vector<128x512xf32>
    %cst_33 = arith.constant dense<0.000000e+00> : vector<8x512xf32>
    %63 = tpu.matmul %35, %62, %cst_33 {dimension_numbers = #tpu.dot_dimension_numbers<[1], [0], [0], [1], [0, 0, 1, 1], [], []>} : vector<8x128xf32>, vector<128x512xf32>, vector<8x512xf32> -> vector<8x512xf32>
    %64 = arith.index_cast %c1_i32 : i32 to index
    %c0_34 = arith.constant 0 : index
    %c0_35 = arith.constant 0 : index
    %65 = vector.load %arg2[%64, %c0_34, %c0_35] : memref<8x8x512xf32, #tpu.memory_space<vmem>>, vector<1x8x512xf32>
    %66 = vector.shape_cast %65 : vector<1x8x512xf32> to vector<8x512xf32>
    %67 = arith.addf %66, %63 : vector<8x512xf32>
    %68 = vector.extract_strided_slice %67 {offsets = [0, 0], sizes = [8, 384], strides = [1, 1]} : vector<8x512xf32> to vector<8x384xf32>
    %69 = arith.negf %68 : vector<8x384xf32>
    %70 = math.exp %69 : vector<8x384xf32>
    %cst_36 = arith.constant 1.000000e+00 : f32
    %71 = vector.broadcast %cst_36 : f32 to vector<8x384xf32>
    %72 = arith.addf %71, %70 : vector<8x384xf32>
    %73 = arith.divf %71, %72 : vector<8x384xf32>
    %74 = vector.extract_strided_slice %67 {offsets = [0, 384], sizes = [8, 128], strides = [1, 1]} : vector<8x512xf32> to vector<8x128xf32>
    %75 = math.tanh %74 : vector<8x128xf32>
    %76 = vector.extract_strided_slice %73 {offsets = [0, 128], sizes = [8, 128], strides = [1, 1]} : vector<8x384xf32> to vector<8x128xf32>
    %77 = arith.mulf %76, %32 : vector<8x128xf32>
    %78 = vector.extract_strided_slice %73 {offsets = [0, 0], sizes = [8, 128], strides = [1, 1]} : vector<8x384xf32> to vector<8x128xf32>
    %79 = arith.mulf %78, %75 : vector<8x128xf32>
    %80 = arith.addf %77, %79 : vector<8x128xf32>
    %81 = vector.extract_strided_slice %73 {offsets = [0, 256], sizes = [8, 128], strides = [1, 1]} : vector<8x384xf32> to vector<8x128xf32>
    %82 = math.tanh %80 : vector<8x128xf32>
    %83 = arith.mulf %81, %82 : vector<8x128xf32>
    %c1_37 = arith.constant 1 : index
    %c0_38 = arith.constant 0 : index
    %c0_39 = arith.constant 0 : index
    %84 = vector.load %arg3[%c1_37, %c0_38, %c0_39] : memref<2x128x512xf32, #tpu.memory_space<vmem>>, vector<1x128x512xf32>
    %85 = vector.shape_cast %84 : vector<1x128x512xf32> to vector<128x512xf32>
    %cst_40 = arith.constant dense<0.000000e+00> : vector<8x512xf32>
    %86 = tpu.matmul %60, %85, %cst_40 {dimension_numbers = #tpu.dot_dimension_numbers<[1], [0], [0], [1], [0, 0, 1, 1], [], []>} : vector<8x128xf32>, vector<128x512xf32>, vector<8x512xf32> -> vector<8x512xf32>
    %c0_41 = arith.constant 0 : index
    %c0_42 = arith.constant 0 : index
    %c0_43 = arith.constant 0 : index
    %87 = vector.load %arg4[%c0_41, %c0_42, %c0_43] : memref<1x128x512xf32, #tpu.memory_space<vmem>>, vector<1x128x512xf32>
    %88 = vector.shape_cast %87 : vector<1x128x512xf32> to vector<128x512xf32>
    %cst_44 = arith.constant dense<0.000000e+00> : vector<8x512xf32>
    %89 = tpu.matmul %83, %88, %cst_44 {dimension_numbers = #tpu.dot_dimension_numbers<[1], [0], [0], [1], [0, 0, 1, 1], [], []>} : vector<8x128xf32>, vector<128x512xf32>, vector<8x512xf32> -> vector<8x512xf32>
    %90 = vector.broadcast %4 : vector<1x512xf32> to vector<8x512xf32>
    %91 = arith.addf %89, %90 : vector<8x512xf32>
    %92 = arith.addf %91, %86 : vector<8x512xf32>
    %93 = vector.extract_strided_slice %92 {offsets = [0, 0], sizes = [8, 384], strides = [1, 1]} : vector<8x512xf32> to vector<8x384xf32>
    %94 = arith.negf %93 : vector<8x384xf32>
    %95 = math.exp %94 : vector<8x384xf32>
    %cst_45 = arith.constant 1.000000e+00 : f32
    %96 = vector.broadcast %cst_45 : f32 to vector<8x384xf32>
    %97 = arith.addf %96, %95 : vector<8x384xf32>
    %98 = arith.divf %96, %97 : vector<8x384xf32>
    %99 = vector.extract_strided_slice %92 {offsets = [0, 384], sizes = [8, 128], strides = [1, 1]} : vector<8x512xf32> to vector<8x128xf32>
    %100 = math.tanh %99 : vector<8x128xf32>
    %101 = vector.extract_strided_slice %98 {offsets = [0, 128], sizes = [8, 128], strides = [1, 1]} : vector<8x384xf32> to vector<8x128xf32>
    %102 = arith.mulf %101, %57 : vector<8x128xf32>
    %103 = vector.extract_strided_slice %98 {offsets = [0, 0], sizes = [8, 128], strides = [1, 1]} : vector<8x384xf32> to vector<8x128xf32>
    %104 = arith.mulf %103, %100 : vector<8x128xf32>
    %105 = arith.addf %102, %104 : vector<8x128xf32>
    %106 = vector.extract_strided_slice %98 {offsets = [0, 256], sizes = [8, 128], strides = [1, 1]} : vector<8x384xf32> to vector<8x128xf32>
    %107 = math.tanh %105 : vector<8x128xf32>
    %108 = arith.mulf %106, %107 : vector<8x128xf32>
    %c2_i32 = arith.constant 2 : i32
    %c0_46 = arith.constant 0 : index
    %c0_47 = arith.constant 0 : index
    %c0_48 = arith.constant 0 : index
    %109 = vector.load %arg3[%c0_46, %c0_47, %c0_48] : memref<2x128x512xf32, #tpu.memory_space<vmem>>, vector<1x128x512xf32>
    %110 = vector.shape_cast %109 : vector<1x128x512xf32> to vector<128x512xf32>
    %cst_49 = arith.constant dense<0.000000e+00> : vector<8x512xf32>
    %111 = tpu.matmul %83, %110, %cst_49 {dimension_numbers = #tpu.dot_dimension_numbers<[1], [0], [0], [1], [0, 0, 1, 1], [], []>} : vector<8x128xf32>, vector<128x512xf32>, vector<8x512xf32> -> vector<8x512xf32>
    %112 = arith.index_cast %c2_i32 : i32 to index
    %c0_50 = arith.constant 0 : index
    %c0_51 = arith.constant 0 : index
    %113 = vector.load %arg2[%112, %c0_50, %c0_51] : memref<8x8x512xf32, #tpu.memory_space<vmem>>, vector<1x8x512xf32>
    %114 = vector.shape_cast %113 : vector<1x8x512xf32> to vector<8x512xf32>
    %115 = arith.addf %114, %111 : vector<8x512xf32>
    %116 = vector.extract_strided_slice %115 {offsets = [0, 0], sizes = [8, 384], strides = [1, 1]} : vector<8x512xf32> to vector<8x384xf32>
    %117 = arith.negf %116 : vector<8x384xf32>
    %118 = math.exp %117 : vector<8x384xf32>
    %cst_52 = arith.constant 1.000000e+00 : f32
    %119 = vector.broadcast %cst_52 : f32 to vector<8x384xf32>
    %120 = arith.addf %119, %118 : vector<8x384xf32>
    %121 = arith.divf %119, %120 : vector<8x384xf32>
    %122 = vector.extract_strided_slice %115 {offsets = [0, 384], sizes = [8, 128], strides = [1, 1]} : vector<8x512xf32> to vector<8x128xf32>
    %123 = math.tanh %122 : vector<8x128xf32>
    %124 = vector.extract_strided_slice %121 {offsets = [0, 128], sizes = [8, 128], strides = [1, 1]} : vector<8x384xf32> to vector<8x128xf32>
    %125 = arith.mulf %124, %80 : vector<8x128xf32>
    %126 = vector.extract_strided_slice %121 {offsets = [0, 0], sizes = [8, 128], strides = [1, 1]} : vector<8x384xf32> to vector<8x128xf32>
    %127 = arith.mulf %126, %123 : vector<8x128xf32>
    %128 = arith.addf %125, %127 : vector<8x128xf32>
    %129 = vector.extract_strided_slice %121 {offsets = [0, 256], sizes = [8, 128], strides = [1, 1]} : vector<8x384xf32> to vector<8x128xf32>
    %130 = math.tanh %128 : vector<8x128xf32>
    %131 = arith.mulf %129, %130 : vector<8x128xf32>
    %c1_53 = arith.constant 1 : index
    %c0_54 = arith.constant 0 : index
    %c0_55 = arith.constant 0 : index
    %132 = vector.load %arg3[%c1_53, %c0_54, %c0_55] : memref<2x128x512xf32, #tpu.memory_space<vmem>>, vector<1x128x512xf32>
    %133 = vector.shape_cast %132 : vector<1x128x512xf32> to vector<128x512xf32>
    %cst_56 = arith.constant dense<0.000000e+00> : vector<8x512xf32>
    %134 = tpu.matmul %108, %133, %cst_56 {dimension_numbers = #tpu.dot_dimension_numbers<[1], [0], [0], [1], [0, 0, 1, 1], [], []>} : vector<8x128xf32>, vector<128x512xf32>, vector<8x512xf32> -> vector<8x512xf32>
    %c0_57 = arith.constant 0 : index
    %c0_58 = arith.constant 0 : index
    %c0_59 = arith.constant 0 : index
    %135 = vector.load %arg4[%c0_57, %c0_58, %c0_59] : memref<1x128x512xf32, #tpu.memory_space<vmem>>, vector<1x128x512xf32>
    %136 = vector.shape_cast %135 : vector<1x128x512xf32> to vector<128x512xf32>
    %cst_60 = arith.constant dense<0.000000e+00> : vector<8x512xf32>
    %137 = tpu.matmul %131, %136, %cst_60 {dimension_numbers = #tpu.dot_dimension_numbers<[1], [0], [0], [1], [0, 0, 1, 1], [], []>} : vector<8x128xf32>, vector<128x512xf32>, vector<8x512xf32> -> vector<8x512xf32>
    %138 = vector.broadcast %4 : vector<1x512xf32> to vector<8x512xf32>
    %139 = arith.addf %137, %138 : vector<8x512xf32>
    %140 = arith.addf %139, %134 : vector<8x512xf32>
    %141 = vector.extract_strided_slice %140 {offsets = [0, 0], sizes = [8, 384], strides = [1, 1]} : vector<8x512xf32> to vector<8x384xf32>
    %142 = arith.negf %141 : vector<8x384xf32>
    %143 = math.exp %142 : vector<8x384xf32>
    %cst_61 = arith.constant 1.000000e+00 : f32
    %144 = vector.broadcast %cst_61 : f32 to vector<8x384xf32>
    %145 = arith.addf %144, %143 : vector<8x384xf32>
    %146 = arith.divf %144, %145 : vector<8x384xf32>
    %147 = vector.extract_strided_slice %140 {offsets = [0, 384], sizes = [8, 128], strides = [1, 1]} : vector<8x512xf32> to vector<8x128xf32>
    %148 = math.tanh %147 : vector<8x128xf32>
    %149 = vector.extract_strided_slice %146 {offsets = [0, 128], sizes = [8, 128], strides = [1, 1]} : vector<8x384xf32> to vector<8x128xf32>
    %150 = arith.mulf %149, %105 : vector<8x128xf32>
    %151 = vector.extract_strided_slice %146 {offsets = [0, 0], sizes = [8, 128], strides = [1, 1]} : vector<8x384xf32> to vector<8x128xf32>
    %152 = arith.mulf %151, %148 : vector<8x128xf32>
    %153 = arith.addf %150, %152 : vector<8x128xf32>
    %154 = vector.extract_strided_slice %146 {offsets = [0, 256], sizes = [8, 128], strides = [1, 1]} : vector<8x384xf32> to vector<8x128xf32>
    %155 = math.tanh %153 : vector<8x128xf32>
    %156 = arith.mulf %154, %155 : vector<8x128xf32>
    %c3_i32 = arith.constant 3 : i32
    %c0_62 = arith.constant 0 : index
    %c0_63 = arith.constant 0 : index
    %c0_64 = arith.constant 0 : index
    %157 = vector.load %arg3[%c0_62, %c0_63, %c0_64] : memref<2x128x512xf32, #tpu.memory_space<vmem>>, vector<1x128x512xf32>
    %158 = vector.shape_cast %157 : vector<1x128x512xf32> to vector<128x512xf32>
    %cst_65 = arith.constant dense<0.000000e+00> : vector<8x512xf32>
    %159 = tpu.matmul %131, %158, %cst_65 {dimension_numbers = #tpu.dot_dimension_numbers<[1], [0], [0], [1], [0, 0, 1, 1], [], []>} : vector<8x128xf32>, vector<128x512xf32>, vector<8x512xf32> -> vector<8x512xf32>
    %160 = arith.index_cast %c3_i32 : i32 to index
    %c0_66 = arith.constant 0 : index
    %c0_67 = arith.constant 0 : index
    %161 = vector.load %arg2[%160, %c0_66, %c0_67] : memref<8x8x512xf32, #tpu.memory_space<vmem>>, vector<1x8x512xf32>
    %162 = vector.shape_cast %161 : vector<1x8x512xf32> to vector<8x512xf32>
    %163 = arith.addf %162, %159 : vector<8x512xf32>
    %164 = vector.extract_strided_slice %163 {offsets = [0, 0], sizes = [8, 384], strides = [1, 1]} : vector<8x512xf32> to vector<8x384xf32>
    %165 = arith.negf %164 : vector<8x384xf32>
    %166 = math.exp %165 : vector<8x384xf32>
    %cst_68 = arith.constant 1.000000e+00 : f32
    %167 = vector.broadcast %cst_68 : f32 to vector<8x384xf32>
    %168 = arith.addf %167, %166 : vector<8x384xf32>
    %169 = arith.divf %167, %168 : vector<8x384xf32>
    %170 = vector.extract_strided_slice %163 {offsets = [0, 384], sizes = [8, 128], strides = [1, 1]} : vector<8x512xf32> to vector<8x128xf32>
    %171 = math.tanh %170 : vector<8x128xf32>
    %172 = vector.extract_strided_slice %169 {offsets = [0, 128], sizes = [8, 128], strides = [1, 1]} : vector<8x384xf32> to vector<8x128xf32>
    %173 = arith.mulf %172, %128 : vector<8x128xf32>
    %174 = vector.extract_strided_slice %169 {offsets = [0, 0], sizes = [8, 128], strides = [1, 1]} : vector<8x384xf32> to vector<8x128xf32>
    %175 = arith.mulf %174, %171 : vector<8x128xf32>
    %176 = arith.addf %173, %175 : vector<8x128xf32>
    %177 = vector.extract_strided_slice %169 {offsets = [0, 256], sizes = [8, 128], strides = [1, 1]} : vector<8x384xf32> to vector<8x128xf32>
    %178 = math.tanh %176 : vector<8x128xf32>
    %179 = arith.mulf %177, %178 : vector<8x128xf32>
    %c1_69 = arith.constant 1 : index
    %c0_70 = arith.constant 0 : index
    %c0_71 = arith.constant 0 : index
    %180 = vector.load %arg3[%c1_69, %c0_70, %c0_71] : memref<2x128x512xf32, #tpu.memory_space<vmem>>, vector<1x128x512xf32>
    %181 = vector.shape_cast %180 : vector<1x128x512xf32> to vector<128x512xf32>
    %cst_72 = arith.constant dense<0.000000e+00> : vector<8x512xf32>
    %182 = tpu.matmul %156, %181, %cst_72 {dimension_numbers = #tpu.dot_dimension_numbers<[1], [0], [0], [1], [0, 0, 1, 1], [], []>} : vector<8x128xf32>, vector<128x512xf32>, vector<8x512xf32> -> vector<8x512xf32>
    %c0_73 = arith.constant 0 : index
    %c0_74 = arith.constant 0 : index
    %c0_75 = arith.constant 0 : index
    %183 = vector.load %arg4[%c0_73, %c0_74, %c0_75] : memref<1x128x512xf32, #tpu.memory_space<vmem>>, vector<1x128x512xf32>
    %184 = vector.shape_cast %183 : vector<1x128x512xf32> to vector<128x512xf32>
    %cst_76 = arith.constant dense<0.000000e+00> : vector<8x512xf32>
    %185 = tpu.matmul %179, %184, %cst_76 {dimension_numbers = #tpu.dot_dimension_numbers<[1], [0], [0], [1], [0, 0, 1, 1], [], []>} : vector<8x128xf32>, vector<128x512xf32>, vector<8x512xf32> -> vector<8x512xf32>
    %186 = vector.broadcast %4 : vector<1x512xf32> to vector<8x512xf32>
    %187 = arith.addf %185, %186 : vector<8x512xf32>
    %188 = arith.addf %187, %182 : vector<8x512xf32>
    %189 = vector.extract_strided_slice %188 {offsets = [0, 0], sizes = [8, 384], strides = [1, 1]} : vector<8x512xf32> to vector<8x384xf32>
    %190 = arith.negf %189 : vector<8x384xf32>
    %191 = math.exp %190 : vector<8x384xf32>
    %cst_77 = arith.constant 1.000000e+00 : f32
    %192 = vector.broadcast %cst_77 : f32 to vector<8x384xf32>
    %193 = arith.addf %192, %191 : vector<8x384xf32>
    %194 = arith.divf %192, %193 : vector<8x384xf32>
    %195 = vector.extract_strided_slice %188 {offsets = [0, 384], sizes = [8, 128], strides = [1, 1]} : vector<8x512xf32> to vector<8x128xf32>
    %196 = math.tanh %195 : vector<8x128xf32>
    %197 = vector.extract_strided_slice %194 {offsets = [0, 128], sizes = [8, 128], strides = [1, 1]} : vector<8x384xf32> to vector<8x128xf32>
    %198 = arith.mulf %197, %153 : vector<8x128xf32>
    %199 = vector.extract_strided_slice %194 {offsets = [0, 0], sizes = [8, 128], strides = [1, 1]} : vector<8x384xf32> to vector<8x128xf32>
    %200 = arith.mulf %199, %196 : vector<8x128xf32>
    %201 = arith.addf %198, %200 : vector<8x128xf32>
    %202 = vector.extract_strided_slice %194 {offsets = [0, 256], sizes = [8, 128], strides = [1, 1]} : vector<8x384xf32> to vector<8x128xf32>
    %203 = math.tanh %201 : vector<8x128xf32>
    %204 = arith.mulf %202, %203 : vector<8x128xf32>
    %c4_i32 = arith.constant 4 : i32
    %c0_78 = arith.constant 0 : index
    %c0_79 = arith.constant 0 : index
    %c0_80 = arith.constant 0 : index
    %205 = vector.load %arg3[%c0_78, %c0_79, %c0_80] : memref<2x128x512xf32, #tpu.memory_space<vmem>>, vector<1x128x512xf32>
    %206 = vector.shape_cast %205 : vector<1x128x512xf32> to vector<128x512xf32>
    %cst_81 = arith.constant dense<0.000000e+00> : vector<8x512xf32>
    %207 = tpu.matmul %179, %206, %cst_81 {dimension_numbers = #tpu.dot_dimension_numbers<[1], [0], [0], [1], [0, 0, 1, 1], [], []>} : vector<8x128xf32>, vector<128x512xf32>, vector<8x512xf32> -> vector<8x512xf32>
    %208 = arith.index_cast %c4_i32 : i32 to index
    %c0_82 = arith.constant 0 : index
    %c0_83 = arith.constant 0 : index
    %209 = vector.load %arg2[%208, %c0_82, %c0_83] : memref<8x8x512xf32, #tpu.memory_space<vmem>>, vector<1x8x512xf32>
    %210 = vector.shape_cast %209 : vector<1x8x512xf32> to vector<8x512xf32>
    %211 = arith.addf %210, %207 : vector<8x512xf32>
    %212 = vector.extract_strided_slice %211 {offsets = [0, 0], sizes = [8, 384], strides = [1, 1]} : vector<8x512xf32> to vector<8x384xf32>
    %213 = arith.negf %212 : vector<8x384xf32>
    %214 = math.exp %213 : vector<8x384xf32>
    %cst_84 = arith.constant 1.000000e+00 : f32
    %215 = vector.broadcast %cst_84 : f32 to vector<8x384xf32>
    %216 = arith.addf %215, %214 : vector<8x384xf32>
    %217 = arith.divf %215, %216 : vector<8x384xf32>
    %218 = vector.extract_strided_slice %211 {offsets = [0, 384], sizes = [8, 128], strides = [1, 1]} : vector<8x512xf32> to vector<8x128xf32>
    %219 = math.tanh %218 : vector<8x128xf32>
    %220 = vector.extract_strided_slice %217 {offsets = [0, 128], sizes = [8, 128], strides = [1, 1]} : vector<8x384xf32> to vector<8x128xf32>
    %221 = arith.mulf %220, %176 : vector<8x128xf32>
    %222 = vector.extract_strided_slice %217 {offsets = [0, 0], sizes = [8, 128], strides = [1, 1]} : vector<8x384xf32> to vector<8x128xf32>
    %223 = arith.mulf %222, %219 : vector<8x128xf32>
    %224 = arith.addf %221, %223 : vector<8x128xf32>
    %225 = vector.extract_strided_slice %217 {offsets = [0, 256], sizes = [8, 128], strides = [1, 1]} : vector<8x384xf32> to vector<8x128xf32>
    %226 = math.tanh %224 : vector<8x128xf32>
    %227 = arith.mulf %225, %226 : vector<8x128xf32>
    %c1_85 = arith.constant 1 : index
    %c0_86 = arith.constant 0 : index
    %c0_87 = arith.constant 0 : index
    %228 = vector.load %arg3[%c1_85, %c0_86, %c0_87] : memref<2x128x512xf32, #tpu.memory_space<vmem>>, vector<1x128x512xf32>
    %229 = vector.shape_cast %228 : vector<1x128x512xf32> to vector<128x512xf32>
    %cst_88 = arith.constant dense<0.000000e+00> : vector<8x512xf32>
    %230 = tpu.matmul %204, %229, %cst_88 {dimension_numbers = #tpu.dot_dimension_numbers<[1], [0], [0], [1], [0, 0, 1, 1], [], []>} : vector<8x128xf32>, vector<128x512xf32>, vector<8x512xf32> -> vector<8x512xf32>
    %c0_89 = arith.constant 0 : index
    %c0_90 = arith.constant 0 : index
    %c0_91 = arith.constant 0 : index
    %231 = vector.load %arg4[%c0_89, %c0_90, %c0_91] : memref<1x128x512xf32, #tpu.memory_space<vmem>>, vector<1x128x512xf32>
    %232 = vector.shape_cast %231 : vector<1x128x512xf32> to vector<128x512xf32>
    %cst_92 = arith.constant dense<0.000000e+00> : vector<8x512xf32>
    %233 = tpu.matmul %227, %232, %cst_92 {dimension_numbers = #tpu.dot_dimension_numbers<[1], [0], [0], [1], [0, 0, 1, 1], [], []>} : vector<8x128xf32>, vector<128x512xf32>, vector<8x512xf32> -> vector<8x512xf32>
    %234 = vector.broadcast %4 : vector<1x512xf32> to vector<8x512xf32>
    %235 = arith.addf %233, %234 : vector<8x512xf32>
    %236 = arith.addf %235, %230 : vector<8x512xf32>
    %237 = vector.extract_strided_slice %236 {offsets = [0, 0], sizes = [8, 384], strides = [1, 1]} : vector<8x512xf32> to vector<8x384xf32>
    %238 = arith.negf %237 : vector<8x384xf32>
    %239 = math.exp %238 : vector<8x384xf32>
    %cst_93 = arith.constant 1.000000e+00 : f32
    %240 = vector.broadcast %cst_93 : f32 to vector<8x384xf32>
    %241 = arith.addf %240, %239 : vector<8x384xf32>
    %242 = arith.divf %240, %241 : vector<8x384xf32>
    %243 = vector.extract_strided_slice %236 {offsets = [0, 384], sizes = [8, 128], strides = [1, 1]} : vector<8x512xf32> to vector<8x128xf32>
    %244 = math.tanh %243 : vector<8x128xf32>
    %245 = vector.extract_strided_slice %242 {offsets = [0, 128], sizes = [8, 128], strides = [1, 1]} : vector<8x384xf32> to vector<8x128xf32>
    %246 = arith.mulf %245, %201 : vector<8x128xf32>
    %247 = vector.extract_strided_slice %242 {offsets = [0, 0], sizes = [8, 128], strides = [1, 1]} : vector<8x384xf32> to vector<8x128xf32>
    %248 = arith.mulf %247, %244 : vector<8x128xf32>
    %249 = arith.addf %246, %248 : vector<8x128xf32>
    %250 = vector.extract_strided_slice %242 {offsets = [0, 256], sizes = [8, 128], strides = [1, 1]} : vector<8x384xf32> to vector<8x128xf32>
    %251 = math.tanh %249 : vector<8x128xf32>
    %252 = arith.mulf %250, %251 : vector<8x128xf32>
    %c5_i32 = arith.constant 5 : i32
    %c0_94 = arith.constant 0 : index
    %c0_95 = arith.constant 0 : index
    %c0_96 = arith.constant 0 : index
    %253 = vector.load %arg3[%c0_94, %c0_95, %c0_96] : memref<2x128x512xf32, #tpu.memory_space<vmem>>, vector<1x128x512xf32>
    %254 = vector.shape_cast %253 : vector<1x128x512xf32> to vector<128x512xf32>
    %cst_97 = arith.constant dense<0.000000e+00> : vector<8x512xf32>
    %255 = tpu.matmul %227, %254, %cst_97 {dimension_numbers = #tpu.dot_dimension_numbers<[1], [0], [0], [1], [0, 0, 1, 1], [], []>} : vector<8x128xf32>, vector<128x512xf32>, vector<8x512xf32> -> vector<8x512xf32>
    %256 = arith.index_cast %c5_i32 : i32 to index
    %c0_98 = arith.constant 0 : index
    %c0_99 = arith.constant 0 : index
    %257 = vector.load %arg2[%256, %c0_98, %c0_99] : memref<8x8x512xf32, #tpu.memory_space<vmem>>, vector<1x8x512xf32>
    %258 = vector.shape_cast %257 : vector<1x8x512xf32> to vector<8x512xf32>
    %259 = arith.addf %258, %255 : vector<8x512xf32>
    %260 = vector.extract_strided_slice %259 {offsets = [0, 0], sizes = [8, 384], strides = [1, 1]} : vector<8x512xf32> to vector<8x384xf32>
    %261 = arith.negf %260 : vector<8x384xf32>
    %262 = math.exp %261 : vector<8x384xf32>
    %cst_100 = arith.constant 1.000000e+00 : f32
    %263 = vector.broadcast %cst_100 : f32 to vector<8x384xf32>
    %264 = arith.addf %263, %262 : vector<8x384xf32>
    %265 = arith.divf %263, %264 : vector<8x384xf32>
    %266 = vector.extract_strided_slice %259 {offsets = [0, 384], sizes = [8, 128], strides = [1, 1]} : vector<8x512xf32> to vector<8x128xf32>
    %267 = math.tanh %266 : vector<8x128xf32>
    %268 = vector.extract_strided_slice %265 {offsets = [0, 128], sizes = [8, 128], strides = [1, 1]} : vector<8x384xf32> to vector<8x128xf32>
    %269 = arith.mulf %268, %224 : vector<8x128xf32>
    %270 = vector.extract_strided_slice %265 {offsets = [0, 0], sizes = [8, 128], strides = [1, 1]} : vector<8x384xf32> to vector<8x128xf32>
    %271 = arith.mulf %270, %267 : vector<8x128xf32>
    %272 = arith.addf %269, %271 : vector<8x128xf32>
    %273 = vector.extract_strided_slice %265 {offsets = [0, 256], sizes = [8, 128], strides = [1, 1]} : vector<8x384xf32> to vector<8x128xf32>
    %274 = math.tanh %272 : vector<8x128xf32>
    %275 = arith.mulf %273, %274 : vector<8x128xf32>
    %c1_101 = arith.constant 1 : index
    %c0_102 = arith.constant 0 : index
    %c0_103 = arith.constant 0 : index
    %276 = vector.load %arg3[%c1_101, %c0_102, %c0_103] : memref<2x128x512xf32, #tpu.memory_space<vmem>>, vector<1x128x512xf32>
    %277 = vector.shape_cast %276 : vector<1x128x512xf32> to vector<128x512xf32>
    %cst_104 = arith.constant dense<0.000000e+00> : vector<8x512xf32>
    %278 = tpu.matmul %252, %277, %cst_104 {dimension_numbers = #tpu.dot_dimension_numbers<[1], [0], [0], [1], [0, 0, 1, 1], [], []>} : vector<8x128xf32>, vector<128x512xf32>, vector<8x512xf32> -> vector<8x512xf32>
    %c0_105 = arith.constant 0 : index
    %c0_106 = arith.constant 0 : index
    %c0_107 = arith.constant 0 : index
    %279 = vector.load %arg4[%c0_105, %c0_106, %c0_107] : memref<1x128x512xf32, #tpu.memory_space<vmem>>, vector<1x128x512xf32>
    %280 = vector.shape_cast %279 : vector<1x128x512xf32> to vector<128x512xf32>
    %cst_108 = arith.constant dense<0.000000e+00> : vector<8x512xf32>
    %281 = tpu.matmul %275, %280, %cst_108 {dimension_numbers = #tpu.dot_dimension_numbers<[1], [0], [0], [1], [0, 0, 1, 1], [], []>} : vector<8x128xf32>, vector<128x512xf32>, vector<8x512xf32> -> vector<8x512xf32>
    %282 = vector.broadcast %4 : vector<1x512xf32> to vector<8x512xf32>
    %283 = arith.addf %281, %282 : vector<8x512xf32>
    %284 = arith.addf %283, %278 : vector<8x512xf32>
    %285 = vector.extract_strided_slice %284 {offsets = [0, 0], sizes = [8, 384], strides = [1, 1]} : vector<8x512xf32> to vector<8x384xf32>
    %286 = arith.negf %285 : vector<8x384xf32>
    %287 = math.exp %286 : vector<8x384xf32>
    %cst_109 = arith.constant 1.000000e+00 : f32
    %288 = vector.broadcast %cst_109 : f32 to vector<8x384xf32>
    %289 = arith.addf %288, %287 : vector<8x384xf32>
    %290 = arith.divf %288, %289 : vector<8x384xf32>
    %291 = vector.extract_strided_slice %284 {offsets = [0, 384], sizes = [8, 128], strides = [1, 1]} : vector<8x512xf32> to vector<8x128xf32>
    %292 = math.tanh %291 : vector<8x128xf32>
    %293 = vector.extract_strided_slice %290 {offsets = [0, 128], sizes = [8, 128], strides = [1, 1]} : vector<8x384xf32> to vector<8x128xf32>
    %294 = arith.mulf %293, %249 : vector<8x128xf32>
    %295 = vector.extract_strided_slice %290 {offsets = [0, 0], sizes = [8, 128], strides = [1, 1]} : vector<8x384xf32> to vector<8x128xf32>
    %296 = arith.mulf %295, %292 : vector<8x128xf32>
    %297 = arith.addf %294, %296 : vector<8x128xf32>
    %298 = vector.extract_strided_slice %290 {offsets = [0, 256], sizes = [8, 128], strides = [1, 1]} : vector<8x384xf32> to vector<8x128xf32>
    %299 = math.tanh %297 : vector<8x128xf32>
    %300 = arith.mulf %298, %299 : vector<8x128xf32>
    %c6_i32 = arith.constant 6 : i32
    %c0_110 = arith.constant 0 : index
    %c0_111 = arith.constant 0 : index
    %c0_112 = arith.constant 0 : index
    %301 = vector.load %arg3[%c0_110, %c0_111, %c0_112] : memref<2x128x512xf32, #tpu.memory_space<vmem>>, vector<1x128x512xf32>
    %302 = vector.shape_cast %301 : vector<1x128x512xf32> to vector<128x512xf32>
    %cst_113 = arith.constant dense<0.000000e+00> : vector<8x512xf32>
    %303 = tpu.matmul %275, %302, %cst_113 {dimension_numbers = #tpu.dot_dimension_numbers<[1], [0], [0], [1], [0, 0, 1, 1], [], []>} : vector<8x128xf32>, vector<128x512xf32>, vector<8x512xf32> -> vector<8x512xf32>
    %304 = arith.index_cast %c6_i32 : i32 to index
    %c0_114 = arith.constant 0 : index
    %c0_115 = arith.constant 0 : index
    %305 = vector.load %arg2[%304, %c0_114, %c0_115] : memref<8x8x512xf32, #tpu.memory_space<vmem>>, vector<1x8x512xf32>
    %306 = vector.shape_cast %305 : vector<1x8x512xf32> to vector<8x512xf32>
    %307 = arith.addf %306, %303 : vector<8x512xf32>
    %308 = vector.extract_strided_slice %307 {offsets = [0, 0], sizes = [8, 384], strides = [1, 1]} : vector<8x512xf32> to vector<8x384xf32>
    %309 = arith.negf %308 : vector<8x384xf32>
    %310 = math.exp %309 : vector<8x384xf32>
    %cst_116 = arith.constant 1.000000e+00 : f32
    %311 = vector.broadcast %cst_116 : f32 to vector<8x384xf32>
    %312 = arith.addf %311, %310 : vector<8x384xf32>
    %313 = arith.divf %311, %312 : vector<8x384xf32>
    %314 = vector.extract_strided_slice %307 {offsets = [0, 384], sizes = [8, 128], strides = [1, 1]} : vector<8x512xf32> to vector<8x128xf32>
    %315 = math.tanh %314 : vector<8x128xf32>
    %316 = vector.extract_strided_slice %313 {offsets = [0, 128], sizes = [8, 128], strides = [1, 1]} : vector<8x384xf32> to vector<8x128xf32>
    %317 = arith.mulf %316, %272 : vector<8x128xf32>
    %318 = vector.extract_strided_slice %313 {offsets = [0, 0], sizes = [8, 128], strides = [1, 1]} : vector<8x384xf32> to vector<8x128xf32>
    %319 = arith.mulf %318, %315 : vector<8x128xf32>
    %320 = arith.addf %317, %319 : vector<8x128xf32>
    %321 = vector.extract_strided_slice %313 {offsets = [0, 256], sizes = [8, 128], strides = [1, 1]} : vector<8x384xf32> to vector<8x128xf32>
    %322 = math.tanh %320 : vector<8x128xf32>
    %323 = arith.mulf %321, %322 : vector<8x128xf32>
    %c1_117 = arith.constant 1 : index
    %c0_118 = arith.constant 0 : index
    %c0_119 = arith.constant 0 : index
    %324 = vector.load %arg3[%c1_117, %c0_118, %c0_119] : memref<2x128x512xf32, #tpu.memory_space<vmem>>, vector<1x128x512xf32>
    %325 = vector.shape_cast %324 : vector<1x128x512xf32> to vector<128x512xf32>
    %cst_120 = arith.constant dense<0.000000e+00> : vector<8x512xf32>
    %326 = tpu.matmul %300, %325, %cst_120 {dimension_numbers = #tpu.dot_dimension_numbers<[1], [0], [0], [1], [0, 0, 1, 1], [], []>} : vector<8x128xf32>, vector<128x512xf32>, vector<8x512xf32> -> vector<8x512xf32>
    %c0_121 = arith.constant 0 : index
    %c0_122 = arith.constant 0 : index
    %c0_123 = arith.constant 0 : index
    %327 = vector.load %arg4[%c0_121, %c0_122, %c0_123] : memref<1x128x512xf32, #tpu.memory_space<vmem>>, vector<1x128x512xf32>
    %328 = vector.shape_cast %327 : vector<1x128x512xf32> to vector<128x512xf32>
    %cst_124 = arith.constant dense<0.000000e+00> : vector<8x512xf32>
    %329 = tpu.matmul %323, %328, %cst_124 {dimension_numbers = #tpu.dot_dimension_numbers<[1], [0], [0], [1], [0, 0, 1, 1], [], []>} : vector<8x128xf32>, vector<128x512xf32>, vector<8x512xf32> -> vector<8x512xf32>
    %330 = vector.broadcast %4 : vector<1x512xf32> to vector<8x512xf32>
    %331 = arith.addf %329, %330 : vector<8x512xf32>
    %332 = arith.addf %331, %326 : vector<8x512xf32>
    %333 = vector.extract_strided_slice %332 {offsets = [0, 0], sizes = [8, 384], strides = [1, 1]} : vector<8x512xf32> to vector<8x384xf32>
    %334 = arith.negf %333 : vector<8x384xf32>
    %335 = math.exp %334 : vector<8x384xf32>
    %cst_125 = arith.constant 1.000000e+00 : f32
    %336 = vector.broadcast %cst_125 : f32 to vector<8x384xf32>
    %337 = arith.addf %336, %335 : vector<8x384xf32>
    %338 = arith.divf %336, %337 : vector<8x384xf32>
    %339 = vector.extract_strided_slice %332 {offsets = [0, 384], sizes = [8, 128], strides = [1, 1]} : vector<8x512xf32> to vector<8x128xf32>
    %340 = math.tanh %339 : vector<8x128xf32>
    %341 = vector.extract_strided_slice %338 {offsets = [0, 128], sizes = [8, 128], strides = [1, 1]} : vector<8x384xf32> to vector<8x128xf32>
    %342 = arith.mulf %341, %297 : vector<8x128xf32>
    %343 = vector.extract_strided_slice %338 {offsets = [0, 0], sizes = [8, 128], strides = [1, 1]} : vector<8x384xf32> to vector<8x128xf32>
    %344 = arith.mulf %343, %340 : vector<8x128xf32>
    %345 = arith.addf %342, %344 : vector<8x128xf32>
    %346 = vector.extract_strided_slice %338 {offsets = [0, 256], sizes = [8, 128], strides = [1, 1]} : vector<8x384xf32> to vector<8x128xf32>
    %347 = math.tanh %345 : vector<8x128xf32>
    %348 = arith.mulf %346, %347 : vector<8x128xf32>
    %c7_i32 = arith.constant 7 : i32
    %c0_126 = arith.constant 0 : index
    %c0_127 = arith.constant 0 : index
    %c0_128 = arith.constant 0 : index
    %349 = vector.load %arg3[%c0_126, %c0_127, %c0_128] : memref<2x128x512xf32, #tpu.memory_space<vmem>>, vector<1x128x512xf32>
    %350 = vector.shape_cast %349 : vector<1x128x512xf32> to vector<128x512xf32>
    %cst_129 = arith.constant dense<0.000000e+00> : vector<8x512xf32>
    %351 = tpu.matmul %323, %350, %cst_129 {dimension_numbers = #tpu.dot_dimension_numbers<[1], [0], [0], [1], [0, 0, 1, 1], [], []>} : vector<8x128xf32>, vector<128x512xf32>, vector<8x512xf32> -> vector<8x512xf32>
    %352 = arith.index_cast %c7_i32 : i32 to index
    %c0_130 = arith.constant 0 : index
    %c0_131 = arith.constant 0 : index
    %353 = vector.load %arg2[%352, %c0_130, %c0_131] : memref<8x8x512xf32, #tpu.memory_space<vmem>>, vector<1x8x512xf32>
    %354 = vector.shape_cast %353 : vector<1x8x512xf32> to vector<8x512xf32>
    %355 = arith.addf %354, %351 : vector<8x512xf32>
    %356 = vector.extract_strided_slice %355 {offsets = [0, 0], sizes = [8, 384], strides = [1, 1]} : vector<8x512xf32> to vector<8x384xf32>
    %357 = arith.negf %356 : vector<8x384xf32>
    %358 = math.exp %357 : vector<8x384xf32>
    %cst_132 = arith.constant 1.000000e+00 : f32
    %359 = vector.broadcast %cst_132 : f32 to vector<8x384xf32>
    %360 = arith.addf %359, %358 : vector<8x384xf32>
    %361 = arith.divf %359, %360 : vector<8x384xf32>
    %362 = vector.extract_strided_slice %355 {offsets = [0, 384], sizes = [8, 128], strides = [1, 1]} : vector<8x512xf32> to vector<8x128xf32>
    %363 = math.tanh %362 : vector<8x128xf32>
    %364 = vector.extract_strided_slice %361 {offsets = [0, 128], sizes = [8, 128], strides = [1, 1]} : vector<8x384xf32> to vector<8x128xf32>
    %365 = arith.mulf %364, %320 : vector<8x128xf32>
    %366 = vector.extract_strided_slice %361 {offsets = [0, 0], sizes = [8, 128], strides = [1, 1]} : vector<8x384xf32> to vector<8x128xf32>
    %367 = arith.mulf %366, %363 : vector<8x128xf32>
    %368 = arith.addf %365, %367 : vector<8x128xf32>
    %369 = vector.extract_strided_slice %361 {offsets = [0, 256], sizes = [8, 128], strides = [1, 1]} : vector<8x384xf32> to vector<8x128xf32>
    %370 = math.tanh %368 : vector<8x128xf32>
    %371 = arith.mulf %369, %370 : vector<8x128xf32>
    %c1_133 = arith.constant 1 : index
    %c0_134 = arith.constant 0 : index
    %c0_135 = arith.constant 0 : index
    %372 = vector.load %arg3[%c1_133, %c0_134, %c0_135] : memref<2x128x512xf32, #tpu.memory_space<vmem>>, vector<1x128x512xf32>
    %373 = vector.shape_cast %372 : vector<1x128x512xf32> to vector<128x512xf32>
    %cst_136 = arith.constant dense<0.000000e+00> : vector<8x512xf32>
    %374 = tpu.matmul %348, %373, %cst_136 {dimension_numbers = #tpu.dot_dimension_numbers<[1], [0], [0], [1], [0, 0, 1, 1], [], []>} : vector<8x128xf32>, vector<128x512xf32>, vector<8x512xf32> -> vector<8x512xf32>
    %c0_137 = arith.constant 0 : index
    %c0_138 = arith.constant 0 : index
    %c0_139 = arith.constant 0 : index
    %375 = vector.load %arg4[%c0_137, %c0_138, %c0_139] : memref<1x128x512xf32, #tpu.memory_space<vmem>>, vector<1x128x512xf32>
    %376 = vector.shape_cast %375 : vector<1x128x512xf32> to vector<128x512xf32>
    %cst_140 = arith.constant dense<0.000000e+00> : vector<8x512xf32>
    %377 = tpu.matmul %371, %376, %cst_140 {dimension_numbers = #tpu.dot_dimension_numbers<[1], [0], [0], [1], [0, 0, 1, 1], [], []>} : vector<8x128xf32>, vector<128x512xf32>, vector<8x512xf32> -> vector<8x512xf32>
    %378 = vector.broadcast %4 : vector<1x512xf32> to vector<8x512xf32>
    %379 = arith.addf %377, %378 : vector<8x512xf32>
    %380 = arith.addf %379, %374 : vector<8x512xf32>
    %381 = vector.extract_strided_slice %380 {offsets = [0, 0], sizes = [8, 384], strides = [1, 1]} : vector<8x512xf32> to vector<8x384xf32>
    %382 = arith.negf %381 : vector<8x384xf32>
    %383 = math.exp %382 : vector<8x384xf32>
    %cst_141 = arith.constant 1.000000e+00 : f32
    %384 = vector.broadcast %cst_141 : f32 to vector<8x384xf32>
    %385 = arith.addf %384, %383 : vector<8x384xf32>
    %386 = arith.divf %384, %385 : vector<8x384xf32>
    %387 = vector.extract_strided_slice %380 {offsets = [0, 384], sizes = [8, 128], strides = [1, 1]} : vector<8x512xf32> to vector<8x128xf32>
    %388 = math.tanh %387 : vector<8x128xf32>
    %389 = vector.extract_strided_slice %386 {offsets = [0, 128], sizes = [8, 128], strides = [1, 1]} : vector<8x384xf32> to vector<8x128xf32>
    %390 = arith.mulf %389, %345 : vector<8x128xf32>
    %391 = vector.extract_strided_slice %386 {offsets = [0, 0], sizes = [8, 128], strides = [1, 1]} : vector<8x384xf32> to vector<8x128xf32>
    %392 = arith.mulf %391, %388 : vector<8x128xf32>
    %393 = arith.addf %390, %392 : vector<8x128xf32>
    %394 = vector.extract_strided_slice %386 {offsets = [0, 256], sizes = [8, 128], strides = [1, 1]} : vector<8x384xf32> to vector<8x128xf32>
    %395 = math.tanh %393 : vector<8x128xf32>
    %396 = arith.mulf %394, %395 : vector<8x128xf32>
    %c8_i32 = arith.constant 8 : i32
    %c0_142 = arith.constant 0 : index
    %c0_143 = arith.constant 0 : index
    %c0_144 = arith.constant 0 : index
    %397 = vector.load %arg13[%c0_142, %c0_143, %c0_144] : memref<2x8x128xf32, #tpu.memory_space<vmem>>, vector<1x8x128xf32>
    %398 = vector.shape_cast %397 : vector<1x8x128xf32> to vector<8x128xf32>
    %399 = vector.shape_cast %371 : vector<8x128xf32> to vector<1x8x128xf32>
    tpu.vector_store %arg13[%c0_142, %c0_143, %c0_144], %399 {strides = array<i32>} : memref<2x8x128xf32, #tpu.memory_space<vmem>>, vector<1x8x128xf32>,
    %c0_145 = arith.constant 0 : index
    %c0_146 = arith.constant 0 : index
    %c0_147 = arith.constant 0 : index
    %400 = vector.load %arg14[%c0_145, %c0_146, %c0_147] : memref<2x8x128xf32, #tpu.memory_space<vmem>>, vector<1x8x128xf32>
    %401 = vector.shape_cast %400 : vector<1x8x128xf32> to vector<8x128xf32>
    %402 = vector.shape_cast %368 : vector<8x128xf32> to vector<1x8x128xf32>
    tpu.vector_store %arg14[%c0_145, %c0_146, %c0_147], %402 {strides = array<i32>} : memref<2x8x128xf32, #tpu.memory_space<vmem>>, vector<1x8x128xf32>,
    %c1_148 = arith.constant 1 : index
    %c0_149 = arith.constant 0 : index
    %c0_150 = arith.constant 0 : index
    %403 = vector.load %arg13[%c1_148, %c0_149, %c0_150] : memref<2x8x128xf32, #tpu.memory_space<vmem>>, vector<1x8x128xf32>
    %404 = vector.shape_cast %403 : vector<1x8x128xf32> to vector<8x128xf32>
    %405 = vector.shape_cast %396 : vector<8x128xf32> to vector<1x8x128xf32>
    tpu.vector_store %arg13[%c1_148, %c0_149, %c0_150], %405 {strides = array<i32>} : memref<2x8x128xf32, #tpu.memory_space<vmem>>, vector<1x8x128xf32>,
    %c1_151 = arith.constant 1 : index
    %c0_152 = arith.constant 0 : index
    %c0_153 = arith.constant 0 : index
    %406 = vector.load %arg14[%c1_151, %c0_152, %c0_153] : memref<2x8x128xf32, #tpu.memory_space<vmem>>, vector<1x8x128xf32>
    %407 = vector.shape_cast %406 : vector<1x8x128xf32> to vector<8x128xf32>
    %408 = vector.shape_cast %393 : vector<8x128xf32> to vector<1x8x128xf32>
    tpu.vector_store %arg14[%c1_151, %c0_152, %c0_153], %408 {strides = array<i32>} : memref<2x8x128xf32, #tpu.memory_space<vmem>>, vector<1x8x128xf32>,
    %c0_i32_154 = arith.constant 0 : i32
    %409 = arith.cmpi eq, %arg1, %c0_i32_154 : i32
    %410 = arith.extui %409 : i1 to i32
    %c0_i32_155 = arith.constant 0 : i32
    %411 = arith.cmpi ne, %410, %c0_i32_155 : i32
    scf.if %411 {
      %c0_156 = arith.constant 0 : index
      %c0_157 = arith.constant 0 : index
      %c0_158 = arith.constant 0 : index
      %412 = vector.load %arg11[%c0_156, %c0_157, %c0_158] : memref<2x8x128xf32, #tpu.memory_space<vmem>>, vector<1x8x128xf32>
      %413 = vector.shape_cast %412 : vector<1x8x128xf32> to vector<8x128xf32>
      %414 = vector.shape_cast %371 : vector<8x128xf32> to vector<1x8x128xf32>
      tpu.vector_store %arg11[%c0_156, %c0_157, %c0_158], %414 {strides = array<i32>} : memref<2x8x128xf32, #tpu.memory_space<vmem>>, vector<1x8x128xf32>,
      %c0_159 = arith.constant 0 : index
      %c0_160 = arith.constant 0 : index
      %c0_161 = arith.constant 0 : index
      %415 = vector.load %arg12[%c0_159, %c0_160, %c0_161] : memref<2x8x128xf32, #tpu.memory_space<vmem>>, vector<1x8x128xf32>
      %416 = vector.shape_cast %415 : vector<1x8x128xf32> to vector<8x128xf32>
      %417 = vector.shape_cast %368 : vector<8x128xf32> to vector<1x8x128xf32>
      tpu.vector_store %arg12[%c0_159, %c0_160, %c0_161], %417 {strides = array<i32>} : memref<2x8x128xf32, #tpu.memory_space<vmem>>, vector<1x8x128xf32>,
      %c1_162 = arith.constant 1 : index
      %c0_163 = arith.constant 0 : index
      %c0_164 = arith.constant 0 : index
      %418 = vector.load %arg11[%c1_162, %c0_163, %c0_164] : memref<2x8x128xf32, #tpu.memory_space<vmem>>, vector<1x8x128xf32>
      %419 = vector.shape_cast %418 : vector<1x8x128xf32> to vector<8x128xf32>
      %420 = vector.shape_cast %396 : vector<8x128xf32> to vector<1x8x128xf32>
      tpu.vector_store %arg11[%c1_162, %c0_163, %c0_164], %420 {strides = array<i32>} : memref<2x8x128xf32, #tpu.memory_space<vmem>>, vector<1x8x128xf32>,
      %c1_165 = arith.constant 1 : index
      %c0_166 = arith.constant 0 : index
      %c0_167 = arith.constant 0 : index
      %421 = vector.load %arg12[%c1_165, %c0_166, %c0_167] : memref<2x8x128xf32, #tpu.memory_space<vmem>>, vector<1x8x128xf32>
      %422 = vector.shape_cast %421 : vector<1x8x128xf32> to vector<8x128xf32>
      %423 = vector.shape_cast %393 : vector<8x128xf32> to vector<1x8x128xf32>
      tpu.vector_store %arg12[%c1_165, %c0_166, %c0_167], %423 {strides = array<i32>} : memref<2x8x128xf32, #tpu.memory_space<vmem>>, vector<1x8x128xf32>,
      %cst_168 = arith.constant 0.000000e+00 : f32
      %424 = vector.broadcast %cst_168 : f32 to vector<8x128xf32>
      %425 = arith.maximumf %396, %424 : vector<8x128xf32>
      %c0_169 = arith.constant 0 : index
      %c0_170 = arith.constant 0 : index
      %426 = vector.load %arg8[%c0_169, %c0_170] : memref<128x128xf32, #tpu.memory_space<vmem>>, vector<128x128xf32>
      %cst_171 = arith.constant dense<0.000000e+00> : vector<8x128xf32>
      %427 = tpu.matmul %425, %426, %cst_171 {dimension_numbers = #tpu.dot_dimension_numbers<[1], [0], [0], [1], [0, 0, 1, 1], [], []>} : vector<8x128xf32>, vector<128x128xf32>, vector<8x128xf32> -> vector<8x128xf32>
      %c0_172 = arith.constant 0 : index
      %c0_173 = arith.constant 0 : index
      %428 = vector.load %arg9[%c0_172, %c0_173] : memref<1x128xf32, #tpu.memory_space<vmem>>, vector<1x128xf32>
      %429 = vector.broadcast %428 : vector<1x128xf32> to vector<8x128xf32>
      %430 = arith.addf %427, %429 : vector<8x128xf32>
      %c0_174 = arith.constant 0 : index
      %c0_175 = arith.constant 0 : index
      %431 = vector.load %arg10[%c0_174, %c0_175] : memref<8x128xf32, #tpu.memory_space<vmem>>, vector<8x128xf32>
      tpu.vector_store %arg10[%c0_174, %c0_175], %430 {strides = array<i32>} : memref<8x128xf32, #tpu.memory_space<vmem>>, vector<8x128xf32>,
    } else {
    }
    return
  }
  func.func @transform_0(%arg0: i32, %arg1: i32) -> (i32, i32, i32) {
    %c0_i32 = arith.constant 0 : i32
    %c0_i32_0 = arith.constant 0 : i32
    return %arg1, %arg0, %c0_i32 : i32, i32, i32
  }
  func.func @transform_1(%arg0: i32, %arg1: i32) -> (i32, i32, i32) {
    %c0_i32 = arith.constant 0 : i32
    %c0_i32_0 = arith.constant 0 : i32
    %c0_i32_1 = arith.constant 0 : i32
    %c0_i32_2 = arith.constant 0 : i32
    return %c0_i32, %c0_i32_0, %c0_i32_1 : i32, i32, i32
  }
  func.func @transform_2(%arg0: i32, %arg1: i32) -> (i32, i32, i32) {
    %c0_i32 = arith.constant 0 : i32
    %c0_i32_0 = arith.constant 0 : i32
    %c0_i32_1 = arith.constant 0 : i32
    %c0_i32_2 = arith.constant 0 : i32
    return %c0_i32, %c0_i32_0, %c0_i32_1 : i32, i32, i32
  }
  func.func @transform_3(%arg0: i32, %arg1: i32) -> (i32, i32, i32) {
    %c0_i32 = arith.constant 0 : i32
    %c0_i32_0 = arith.constant 0 : i32
    %c0_i32_1 = arith.constant 0 : i32
    %c0_i32_2 = arith.constant 0 : i32
    return %c0_i32, %c0_i32_0, %c0_i32_1 : i32, i32, i32
  }
  func.func @transform_4(%arg0: i32, %arg1: i32) -> (i32, i32, i32) {
    %c0_i32 = arith.constant 0 : i32
    %c0_i32_0 = arith.constant 0 : i32
    %c0_i32_1 = arith.constant 0 : i32
    return %c0_i32, %arg0, %c0_i32_0 : i32, i32, i32
  }
  func.func @transform_5(%arg0: i32, %arg1: i32) -> (i32, i32, i32) {
    %c0_i32 = arith.constant 0 : i32
    %c0_i32_0 = arith.constant 0 : i32
    %c0_i32_1 = arith.constant 0 : i32
    return %c0_i32, %arg0, %c0_i32_0 : i32, i32, i32
  }
  func.func @transform_6(%arg0: i32, %arg1: i32) -> (i32, i32) {
    %c0_i32 = arith.constant 0 : i32
    %c0_i32_0 = arith.constant 0 : i32
    %c0_i32_1 = arith.constant 0 : i32
    return %c0_i32, %c0_i32_0 : i32, i32
  }
  func.func @transform_7(%arg0: i32, %arg1: i32) -> (i32, i32) {
    %c0_i32 = arith.constant 0 : i32
    %c0_i32_0 = arith.constant 0 : i32
    %c0_i32_1 = arith.constant 0 : i32
    return %c0_i32, %c0_i32_0 : i32, i32
  }
  func.func @transform_8(%arg0: i32, %arg1: i32) -> (i32, i32) {
    %c0_i32 = arith.constant 0 : i32
    %c0_i32_0 = arith.constant 0 : i32
    return %arg0, %c0_i32 : i32, i32
  }
  func.func @transform_9(%arg0: i32, %arg1: i32) -> (i32, i32, i32) {
    %c0_i32 = arith.constant 0 : i32
    %c0_i32_0 = arith.constant 0 : i32
    %c0_i32_1 = arith.constant 0 : i32
    return %c0_i32, %arg0, %c0_i32_0 : i32, i32, i32
  }
  func.func @transform_10(%arg0: i32, %arg1: i32) -> (i32, i32, i32) {
    %c0_i32 = arith.constant 0 : i32
    %c0_i32_0 = arith.constant 0 : i32
    %c0_i32_1 = arith.constant 0 : i32
    return %c0_i32, %arg0, %c0_i32_0 : i32, i32, i32
  }
}

</mosaic_0001>

<bundles_post_ra>
// kernel: lstm_net_forward.1
= control target key start
LH: loop header
LB: loop body
LE: loop exit
PB: predicated region body
PF: predicated region fallthrough
CT: control target
= control target key end

     0   :  { %16 = vsyncpa [#allocation5], 0  ;;  %s7744_s0 = inlined_call_operand.vmem [shape: f32[8,8,512], index: 0, kind: input, shape index: {}]   ;;  %s7745_s1 = inlined_call_operand.hbm [shape: f32[2,128,512], index: 1, kind: input, shape index: {}]   ;;  %s7746_s2 = inlined_call_operand.hbm [shape: f32[1,128,512], index: 2, kind: input, shape index: {}]   ;;  %s7747_s3 = inlined_call_operand.vmem [shape: f32[1,1,512], index: 3, kind: input, shape index: {}]   ;;  %s7748_s4 = inlined_call_operand.vmem [shape: f32[2,8,128], index: 4, kind: input, shape index: {}]   ;;  %s7749_s5 = inlined_call_operand.vmem [shape: f32[2,8,128], index: 5, kind: input, shape index: {}]   ;;  %s7750_s6 = inlined_call_operand.vmem [shape: f32[128,128], index: 6, kind: input, shape index: {}]   ;;  %s7751_s7 = inlined_call_operand.vmem [shape: f32[1,128], index: 7, kind: input, shape index: {}]   ;;  %s7752_s8 = inlined_call_operand.vmem [shape: f32[8,128], index: 8, kind: output, shape index: {0}]   ;;  %s7753_s9 = inlined_call_operand.vmem [shape: f32[2,8,128], index: 9, kind: output, shape index: {1}]   ;;  %s7754_s10 = inlined_call_operand.vmem [shape: f32[2,8,128], index: 10, kind: output, shape index: {2}]  }
   0x1   :  { %17 = vsyncpa [#allocation7], 0  ;;  %s6376_s13 = smov [#allocation4]   ;;  %s6328_s17 = scalar_lea.hbm %s7745_s1, 16384 }
   0x2   :  { %s25_s14 = sshll.u32 %s6376_s13, 4  ;;  %p6329_p0 = scmp.ne.s32.totalorder %s7745_s1, %s6328_s17  ;;  %s26_s14 = int_to_ptr.vmem [resolvable:$true] %s25_s14 }
   0x3   :  { %p6332_p1 = scmp.lt.u32.totalorder %s6328_s17, %s7745_s1 }
   0x5   :  { %p6334_p2 = pnand %p6332_p1, %p6329_p0 }
   0x7   :  { %6337 = shalt.err (!%p6334_p2)
}
   0x8   :  { %s6338_s22 = scalar_lea.vmem %s26_s14, 16384  ;;  %p6343_p4 = scmp.lt.s32.totalorder %s26_s14, %s26_s14 }
   0x9   :  { %p6339_p3 = scmp.ne.s32.totalorder %s26_s14, %s6338_s22  ;;  %p6344_p5 = scmp.lt.s32.totalorder %s6338_s22, %s6338_s22 }
   0xb   :  { %p6345_p6 = por %p6344_p5, %p6343_p4 }
   0xd   :  { %p6346_p7 = pnand %p6345_p6, %p6339_p3 }
   0xf   :  { %6349 = shalt.err (!%p6346_p7)
}
  0x10   :  { %s6377_s23 = smov 512   ;;  %s6378_s24 = smov 32  }
  0x11   :  { %31 = dma.hbm_to_vmem [thread:$0]  %s7745_s1, 16384, %s26_s14, [#allocation5], %s6377_s23, %s6377_s23, %s6378_s24  }
  0x12   :  { %s6379_s27 = smov [#allocation6]   ;;  %s6350_s11 = scalar_lea.hbm %s7746_s2, 8192 }
  0x13   :  { %s37_s28 = sshll.u32 %s6379_s27, 4  ;;  %p6351_p8 = scmp.ne.s32.totalorder %s7746_s2, %s6350_s11  ;;  %s38_s28 = int_to_ptr.vmem [resolvable:$true] %s37_s28 }
  0x14   :  { %p6354_p9 = scmp.lt.u32.totalorder %s6350_s11, %s7746_s2 }
  0x16   :  { %p6356_p10 = pnand %p6354_p9, %p6351_p8 }
  0x18   :  { %6359 = shalt.err (!%p6356_p10)
}
  0x19   :  { %s6360_s17 = scalar_lea.vmem %s38_s28, 8192  ;;  %p6365_p12 = scmp.lt.s32.totalorder %s38_s28, %s38_s28 }
  0x1a   :  { %p6361_p11 = scmp.ne.s32.totalorder %s38_s28, %s6360_s17  ;;  %p6366_p13 = scmp.lt.s32.totalorder %s6360_s17, %s6360_s17 }
  0x1c   :  { %p6367_p0 = por %p6366_p13, %p6365_p12 }
  0x1e   :  { %p6368_p1 = pnand %p6367_p0, %p6361_p11 }
  0x20   :  { %6371 = shalt.err (!%p6368_p1)
}
  0x21   :  { %43 = dma.hbm_to_vmem [thread:$0]  %s7746_s2, 8192, %s38_s28, [#allocation7], %s6377_s23, %s6377_s23, %s6378_s24  }
  0x22   :  { %6372 = dma.done.wait [#allocation5], 16384  }
  0x23   :  { %6373 = vsyncadd [#allocation5], 4294950912 }
  0x24   :  { %6374 = dma.done.wait [#allocation7], 8192  }
  0x25   :  { %6375 = vsyncadd [#allocation7], 4294959104  ;;  %v7755_v0 = vmov 0.0   ;;  %v80_v1 = vld [vmem:[#allocation4 + $0x8] sm:$0xff]  ;;  %v79_v3 = vld [vmem:[#allocation4] sm:$0xff]  ;;  %vm6382_vm0 = vmmov 0  }
  0x26   :  { %207 = vmatprep.mubr.f32.mxu0 %v7755_v0  ;;  %278 = vmatprep.mubr.f32.mxu1 %v7755_v0  ;;  %v84_v2 = vld [vmem:[#allocation4 + $0x28] sm:$0xff]  ;;  %v83_v5 = vld [vmem:[#allocation4 + $0x20] sm:$0xff]  ;;  %v82_v19 = vld [vmem:[#allocation4 + $0x18] sm:$0xff] }
  0x27   :  { %v6464_v4 = vpack.c.bf16 %v84_v2, %v80_v1  ;;  %v88_v6 = vld [vmem:[#allocation4 + $0x48] sm:$0xff]  ;;  %v6466_v8 = vpack.c.bf16 %v83_v5, %v79_v3  ;;  %v87_v10 = vld [vmem:[#allocation4 + $0x40] sm:$0xff]  ;;  %v86_v20 = vld [vmem:[#allocation4 + $0x38] sm:$0xff] }
  0x28   :  { %v92_v7 = vld [vmem:[#allocation4 + $0x68] sm:$0xff]  ;;  %v91_v11 = vld [vmem:[#allocation4 + $0x60] sm:$0xff]  ;;  %v6477_v22 = vpack.c.bf16 %v86_v20, %v82_v19  ;;  %v81_v23 = vld [vmem:[#allocation4 + $0x10] sm:$0xff] }
  0x29   :  { %7928 = vst [vmem:[#allocation10_spill] sm:$0xff] %v6464_v4  ;;  %v6468_v9 = vpack.c.bf16 %v92_v7, %v88_v6  ;;  %v96_v12 = vld [vmem:[#allocation4 + $0x88] sm:$0xff]  ;;  %4442 = vmatprep.subr.bf16.mxu0 %v6464_v4  ;;  %v6472_v14 = vpack.c.bf16 %v91_v11, %v87_v10  ;;  %v95_v15 = vld [vmem:[#allocation4 + $0x80] sm:$0xff]  ;;  %v85_v24 = vld [vmem:[#allocation4 + $0x30] sm:$0xff] }
  0x2a   :  { %v100_v13 = vld [vmem:[#allocation4 + $0xa8] sm:$0xff]  ;;  %4444 = vmatpush1.bf16.msra.mxu0 %v6466_v8  ;;  %v99_v16 = vld [vmem:[#allocation4 + $0xa0] sm:$0xff]  ;;  %7929 = vst [vmem:[#allocation11_spill] sm:$0xff] %v6477_v22  ;;  %v6479_v25 = vpack.c.bf16 %v85_v24, %v81_v23  ;;  %4474 = vmatprep.subr.bf16.mxu1 %v6477_v22  ;;  %v90_v27 = vld [vmem:[#allocation4 + $0x58] sm:$0xff] }
  0x2b   :  { %4446 = vmatprep.subr.bf16.mxu0 %v6468_v9  ;;  %v6475_v17 = vpack.c.bf16 %v100_v13, %v96_v12  ;;  %v104_v18 = vld [vmem:[#allocation4 + $0xc8] sm:$0xff]  ;;  %v6482_v26 = vpack.c.bf16 %v99_v16, %v95_v15  ;;  %v94_v28 = vld [vmem:[#allocation4 + $0x78] sm:$0xff]  ;;  %v89_v29 = vld [vmem:[#allocation4 + $0x50] sm:$0xff] }
  0x2c   :  { %v108_v21 = vld [vmem:[#allocation4 + $0xe8] sm:$0xff]  ;;  %v103_v31 = vld [vmem:[#allocation4 + $0xc0] sm:$0xff]  ;;  %4476 = vmatpush1.bf16.msra.mxu1 %v6479_v25  ;;  %v6489_v33 = vpack.c.bf16 %v94_v28, %v90_v27  ;;  %v93_v34 = vld [vmem:[#allocation4 + $0x70] sm:$0xff] }
  0x2d   :  { %v6486_v30 = vpack.c.bf16 %v108_v21, %v104_v18  ;;  %v107_v32 = vld [vmem:[#allocation4 + $0xe0] sm:$0xff]  ;;  %v112_v35 = vld [vmem:[#allocation4 + $0x108] sm:$0xff]  ;;  %v6491_v37 = vpack.c.bf16 %v93_v34, %v89_v29  ;;  %v98_v38 = vld [vmem:[#allocation4 + $0x98] sm:$0xff] }
  0x2e   :  { %4448 = vmatpush1.bf16.msra.mxu0 %v6472_v14  ;;  %v116_v36 = vld [vmem:[#allocation4 + $0x128] sm:$0xff]  ;;  %4478 = vmatprep.subr.bf16.mxu1 %v6489_v33  ;;  %v102_v39 = vld [vmem:[#allocation4 + $0xb8] sm:$0xff]  ;;  %v97_v40 = vld [vmem:[#allocation4 + $0x90] sm:$0xff]  ;;  %v6495_v42 = vpack.c.bf16 %v107_v32, %v103_v31 }
  0x2f   :  { %4450 = vmatprep.subr.bf16.mxu0 %v6475_v17  ;;  %7930 = vst [vmem:[#allocation12_spill] sm:$0xff] %v6486_v30  ;;  %v101_v41 = vld [vmem:[#allocation4 + $0xb0] sm:$0xff]  ;;  %v111_v43 = vld [vmem:[#allocation4 + $0x100] sm:$0xff]  ;;  %v6497_v45 = vpack.c.bf16 %v102_v39, %v98_v38  ;;  %v6500_v46 = vpack.c.bf16 %v116_v36, %v112_v35  ;;  %v120_v47 = vld [vmem:[#allocation4 + $0x148] sm:$0xff] }
  0x30   :  { %7931 = vst [vmem:[#allocation13_spill] sm:$0xff] %v6495_v42  ;;  %v115_v44 = vld [vmem:[#allocation4 + $0x120] sm:$0xff]  ;;  %4480 = vmatpush1.bf16.msra.mxu1 %v6491_v37  ;;  %v6503_v48 = vpack.c.bf16 %v101_v41, %v97_v40  ;;  %v106_v49 = vld [vmem:[#allocation4 + $0xd8] sm:$0xff]  ;;  %v124_v51 = vld [vmem:[#allocation4 + $0x168] sm:$0xff] }
  0x31   :  { %7932 = vst [vmem:[#allocation14_spill] sm:$0xff] %v6500_v46  ;;  %v110_v50 = vld [vmem:[#allocation4 + $0xf8] sm:$0xff]  ;;  %4482 = vmatprep.subr.bf16.mxu1 %v6497_v45  ;;  %v105_v53 = vld [vmem:[#allocation4 + $0xd0] sm:$0xff]  ;;  %v6509_v55 = vpack.c.bf16 %v115_v44, %v111_v43  ;;  %v6512_v58 = vpack.c.bf16 %v124_v51, %v120_v47  ;;  %v119_v59 = vld [vmem:[#allocation4 + $0x140] sm:$0xff] }
  0x32   :  { %4452 = vmatpush1.bf16.msra.mxu0 %v6482_v26  ;;  %v6506_v52 = vpack.c.bf16 %v110_v50, %v106_v49  ;;  %v109_v54 = vld [vmem:[#allocation4 + $0xf0] sm:$0xff]  ;;  %v114_v56 = vld [vmem:[#allocation4 + $0x118] sm:$0xff]  ;;  %v123_v60 = vld [vmem:[#allocation4 + $0x160] sm:$0xff] }
  0x33   :  { %4454 = vmatprep.subr.bf16.mxu0 %v6486_v30  ;;  %7934 = vst [vmem:[#allocation16_spill] sm:$0xff] %v6509_v55  ;;  %v118_v57 = vld [vmem:[#allocation4 + $0x138] sm:$0xff]  ;;  %7935 = vst [vmem:[#allocation17_spill] sm:$0xff] %v6512_v58  ;;  %v128_v61 = vld [vmem:[#allocation4 + $0x188] sm:$0xff]  ;;  %v6515_v62 = vpack.c.bf16 %v109_v54, %v105_v53  ;;  %v6521_v7 = vpack.c.bf16 %v123_v60, %v119_v59 }
  0x34   :  { %7933 = vst [vmem:[#allocation15_spill] sm:$0xff] %v6506_v52  ;;  %4484 = vmatpush1.bf16.msra.mxu1 %v6503_v48  ;;  %v132_v63 = vld [vmem:[#allocation4 + $0x1a8] sm:$0xff]  ;;  %v6518_v1 = vpack.c.bf16 %v118_v57, %v114_v56  ;;  %v113_v2 = vld [vmem:[#allocation4 + $0x110] sm:$0xff]  ;;  %v122_v5 = vld [vmem:[#allocation4 + $0x158] sm:$0xff] }
  0x35   :  { %7936 = vst [vmem:[#allocation18_spill] sm:$0xff] %v6515_v62  ;;  %4486 = vmatprep.subr.bf16.mxu1 %v6506_v52  ;;  %v117_v3 = vld [vmem:[#allocation4 + $0x130] sm:$0xff]  ;;  %v126_v6 = vld [vmem:[#allocation4 + $0x178] sm:$0xff]  ;;  %7938 = vst [vmem:[#allocation20_spill] sm:$0xff] %v6521_v7  ;;  %v6524_v10 = vpack.c.bf16 %v132_v63, %v128_v61 }
  0x36   :  { %4456 = vmatpush1.bf16.msra.mxu0 %v6495_v42  ;;  %7937 = vst [vmem:[#allocation19_spill] sm:$0xff] %v6518_v1  ;;  %v127_v11 = vld [vmem:[#allocation4 + $0x180] sm:$0xff]  ;;  %v136_v13 = vld [vmem:[#allocation4 + $0x1c8] sm:$0xff]  ;;  %v6527_v15 = vpack.c.bf16 %v117_v3, %v113_v2  ;;  %v6530_v18 = vpack.c.bf16 %v126_v6, %v122_v5  ;;  %v121_v19 = vld [vmem:[#allocation4 + $0x150] sm:$0xff] }
  0x37   :  { %4458 = vmatprep.subr.bf16.mxu0 %v6500_v46  ;;  %7939 = vst [vmem:[#allocation21_spill] sm:$0xff] %v6524_v10  ;;  %v131_v12 = vld [vmem:[#allocation4 + $0x1a0] sm:$0xff]  ;;  %v140_v16 = vld [vmem:[#allocation4 + $0x1e8] sm:$0xff]  ;;  %v125_v20 = vld [vmem:[#allocation4 + $0x170] sm:$0xff] }
  0x38   :  { %4488 = vmatpush1.bf16.msra.mxu1 %v6515_v62  ;;  %7940 = vst [vmem:[#allocation22_spill] sm:$0xff] %v6527_v15  ;;  %7941 = vst [vmem:[#allocation23_spill] sm:$0xff] %v6530_v18  ;;  %v130_v21 = vld [vmem:[#allocation4 + $0x198] sm:$0xff]  ;;  %v6533_v24 = vpack.c.bf16 %v131_v12, %v127_v11  ;;  %v6536_v27 = vpack.c.bf16 %v140_v16, %v136_v13  ;;  %v135_v28 = vld [vmem:[#allocation4 + $0x1c0] sm:$0xff]  ;;  %v6539_v31 = vpack.c.bf16 %v125_v20, %v121_v19 }
  0x39   :  { %4490 = vmatprep.subr.bf16.mxu1 %v6518_v1  ;;  %v134_v23 = vld [vmem:[#allocation4 + $0x1b8] sm:$0xff]  ;;  %v139_v29 = vld [vmem:[#allocation4 + $0x1e0] sm:$0xff]  ;;  %v129_v32 = vld [vmem:[#allocation4 + $0x190] sm:$0xff] }
  0x3a   :  { %4460 = vmatpush1.bf16.msra.mxu0 %v6509_v55  ;;  %7942 = vst [vmem:[#allocation24_spill] sm:$0xff] %v6533_v24  ;;  %7943 = vst [vmem:[#allocation25_spill] sm:$0xff] %v6536_v27  ;;  %v6542_v34 = vpack.c.bf16 %v134_v23, %v130_v21  ;;  %v133_v35 = vld [vmem:[#allocation4 + $0x1b0] sm:$0xff]  ;;  %v319_v36 = vld [vmem:[#allocation4 + $0x208] sm:$0xff]  ;;  %v6545_v41 = vpack.c.bf16 %v139_v29, %v135_v28 }
  0x3b   :  { %4462 = vmatprep.subr.bf16.mxu0 %v6512_v58  ;;  %7944 = vst [vmem:[#allocation26_spill] sm:$0xff] %v6539_v31  ;;  %v323_v38 = vld [vmem:[#allocation4 + $0x228] sm:$0xff]  ;;  %v138_v39 = vld [vmem:[#allocation4 + $0x1d8] sm:$0xff]  ;;  %v6549_v43 = vpack.c.bf16 %v133_v35, %v129_v32  ;;  %v137_v44 = vld [vmem:[#allocation4 + $0x1d0] sm:$0xff] }
  0x3c   :  { %4492 = vmatpush1.bf16.msra.mxu1 %v6527_v15  ;;  %7945 = vst [vmem:[#allocation27_spill] sm:$0xff] %v6542_v34  ;;  %v142_v40 = vld [vmem:[#allocation4 + $0x1f8] sm:$0xff]  ;;  %7946 = vst [vmem:[#allocation28_spill] sm:$0xff] %v6545_v41  ;;  %v6551_v47 = vpack.c.bf16 %v323_v38, %v319_v36  ;;  %v318_v49 = vld [vmem:[#allocation4 + $0x200] sm:$0xff] }
  0x3d   :  { %4494 = vmatprep.subr.bf16.mxu1 %v6530_v18  ;;  %7947 = vst [vmem:[#allocation29_spill] sm:$0xff] %v6549_v43  ;;  %v322_v50 = vld [vmem:[#allocation4 + $0x220] sm:$0xff]  ;;  %v6554_v51 = vpack.c.bf16 %v142_v40, %v138_v39  ;;  %v141_v53 = vld [vmem:[#allocation4 + $0x1f0] sm:$0xff]  ;;  %v327_v54 = vld [vmem:[#allocation4 + $0x248] sm:$0xff] }
  0x3e   :  { %4464 = vmatpush1.bf16.msra.mxu0 %v6521_v7  ;;  %7948 = vst [vmem:[#allocation30_spill] sm:$0xff] %v6551_v47  ;;  %v331_v56 = vld [vmem:[#allocation4 + $0x268] sm:$0xff]  ;;  %v321_v57 = vld [vmem:[#allocation4 + $0x218] sm:$0xff]  ;;  %v64_v60 = vld [vmem:[%s7748_s4] sm:$0xff]  ;;  %v6560_v61 = vpack.c.bf16 %v322_v50, %v318_v49  ;;  %v6563_v63 = vpack.c.bf16 %v141_v53, %v137_v44 }
  0x3f   :  { %4466 = vmatprep.subr.bf16.mxu0 %v6524_v10  ;;  %7949 = vst [vmem:[#allocation31_spill] sm:$0xff] %v6554_v51  ;;  %v325_v59 = vld [vmem:[#allocation4 + $0x238] sm:$0xff]  ;;  %v320_v2 = vld [vmem:[#allocation4 + $0x210] sm:$0xff]  ;;  %v6566_v3 = vpack.c.bf16 %v331_v56, %v327_v54  ;;  %v326_v5 = vld [vmem:[#allocation4 + $0x240] sm:$0xff] }
  0x40   :  { %4496 = vmatpush1.bf16.msra.mxu1 %v6539_v31  ;;  %7950 = vst [vmem:[#allocation32_spill] sm:$0xff] %v6560_v61  ;;  %7951 = vst [vmem:[#allocation33_spill] sm:$0xff] %v6563_v63  ;;  %v330_v6 = vld [vmem:[#allocation4 + $0x260] sm:$0xff]  ;;  %v6569_v11 = vpack.c.bf16 %v325_v59, %v321_v57  ;;  %v324_v12 = vld [vmem:[#allocation4 + $0x230] sm:$0xff] }
  0x41   :  { %4498 = vmatprep.subr.bf16.mxu1 %v6542_v34  ;;  %7952 = vst [vmem:[#allocation34_spill] sm:$0xff] %v6566_v3  ;;  %v335_v13 = vld [vmem:[#allocation4 + $0x288] sm:$0xff]  ;;  %v329_v19 = vld [vmem:[#allocation4 + $0x258] sm:$0xff]  ;;  %v6572_v21 = vpack.c.bf16 %v330_v6, %v326_v5  ;;  %v6576_v23 = vpack.c.bf16 %v324_v12, %v320_v2  ;;  %v328_v28 = vld [vmem:[#allocation4 + $0x250] sm:$0xff] }
  0x42   :  { %4468 = vmatpush1.bf16.msra.mxu0 %v6533_v24  ;;  %7953 = vst [vmem:[#allocation35_spill] sm:$0xff] %v6569_v11  ;;  %v339_v16 = vld [vmem:[#allocation4 + $0x2a8] sm:$0xff]  ;;  %v333_v20 = vld [vmem:[#allocation4 + $0x278] sm:$0xff]  ;;  %v334_v32 = vld [vmem:[#allocation4 + $0x280] sm:$0xff] }
  0x43   :  { %4470 = vmatprep.subr.bf16.mxu0 %v6536_v27  ;;  %7954 = vst [vmem:[#allocation36_spill] sm:$0xff] %v6572_v21  ;;  %7955 = vst [vmem:[#allocation37_spill] sm:$0xff] %v6576_v23  ;;  %v6579_v29 = vpack.c.bf16 %v339_v16, %v335_v13  ;;  %v338_v35 = vld [vmem:[#allocation4 + $0x2a0] sm:$0xff]  ;;  %v6582_v36 = vpack.c.bf16 %v333_v20, %v329_v19  ;;  %v332_v38 = vld [vmem:[#allocation4 + $0x270] sm:$0xff] }
  0x44   :  { %4500 = vmatpush1.bf16.msra.mxu1 %v6549_v43  ;;  %v343_v39 = vld [vmem:[#allocation4 + $0x2c8] sm:$0xff]  ;;  %v337_v44 = vld [vmem:[#allocation4 + $0x298] sm:$0xff]  ;;  %v6585_v50 = vpack.c.bf16 %v338_v35, %v334_v32  ;;  %v6588_v53 = vpack.c.bf16 %v332_v38, %v328_v28  ;;  %v336_v54 = vld [vmem:[#allocation4 + $0x290] sm:$0xff] }
  0x45   :  { %4502 = vmatprep.subr.bf16.mxu1 %v6554_v51  ;;  %7956 = vst [vmem:[#allocation38_spill] sm:$0xff] %v6579_v29  ;;  %7957 = vst [vmem:[#allocation39_spill] sm:$0xff] %v6582_v36  ;;  %v347_v40 = vld [vmem:[#allocation4 + $0x2e8] sm:$0xff]  ;;  %v341_v49 = vld [vmem:[#allocation4 + $0x2b8] sm:$0xff] }
  0x46   :  { %4472 = vmatpush1.bf16.msra.mxu0 %v6545_v41  ;;  %7958 = vst [vmem:[#allocation40_spill] sm:$0xff] %v6585_v50  ;;  %7959 = vst [vmem:[#allocation41_spill] sm:$0xff] %v6588_v53  ;;  %v6591_v56 = vpack.c.bf16 %v347_v40, %v343_v39  ;;  %v342_v57 = vld [vmem:[#allocation4 + $0x2c0] sm:$0xff]  ;;  %v6594_v2 = vpack.c.bf16 %v341_v49, %v337_v44  ;;  %v351_v5 = vld [vmem:[#allocation4 + $0x308] sm:$0xff] }
  0x47   :  { %4506 = vmatprep.subr.bf16.mxu0 %v6551_v47  ;;  %v346_v59 = vld [vmem:[#allocation4 + $0x2e0] sm:$0xff]  ;;  %v355_v6 = vld [vmem:[#allocation4 + $0x328] sm:$0xff]  ;;  %v345_v12 = vld [vmem:[#allocation4 + $0x2d8] sm:$0xff] }
  0x48   :  { %4504 = vmatpush1.bf16.msra.mxu1 %v6563_v63  ;;  %7960 = vst [vmem:[#allocation42_spill] sm:$0xff] %v6591_v56  ;;  %7961 = vst [vmem:[#allocation43_spill] sm:$0xff] %v6594_v2  ;;  %v349_v13 = vld [vmem:[#allocation4 + $0x2f8] sm:$0xff]  ;;  %v6598_v16 = vpack.c.bf16 %v346_v59, %v342_v57  ;;  %v6604_v20 = vpack.c.bf16 %v355_v6, %v351_v5  ;;  %v350_v28 = vld [vmem:[#allocation4 + $0x300] sm:$0xff] }
  0x49   :  { %208 = vmatmul.mubr.f32.vlgmr.msra.gmra.mrb[0].mxu0 %v64_v60  ;;  %4538 = vmatprep.subr.bf16.mxu1 %v6569_v11  ;;  %v354_v32 = vld [vmem:[#allocation4 + $0x320] sm:$0xff]  ;;  %v6607_v35 = vpack.c.bf16 %v349_v13, %v345_v12  ;;  %v344_v38 = vld [vmem:[#allocation4 + $0x2d0] sm:$0xff]  ;;  %v353_v40 = vld [vmem:[#allocation4 + $0x318] sm:$0xff] }
  0x4a   :  { %4508 = vmatpush1.bf16.msra.mxu0 %v6560_v61  ;;  %446 = vmatprep.mubr.f32.mxu0 %v7755_v0  ;;  %7962 = vst [vmem:[#allocation44_spill] sm:$0xff] %v6598_v16  ;;  %7964 = vst [vmem:[#allocation46_spill] sm:$0xff] %v6604_v20  ;;  %v348_v39 = vld [vmem:[#allocation4 + $0x2f0] sm:$0xff]  ;;  %v357_v44 = vld [vmem:[#allocation4 + $0x338] sm:$0xff]  ;;  %v6610_v49 = vpack.c.bf16 %v354_v32, %v350_v28 }
  0x4b   :  { %4510 = vmatprep.subr.bf16.mxu0 %v6566_v3  ;;  %279 = vmatmul.mubr.f32.vlgmr.msra.gmra.mrb[0].mxu1 %v64_v60  ;;  %v340_v60 = vld [vmem:[#allocation4 + $0x2b0] sm:$0xff]  ;;  %7965 = vst [vmem:[#allocation47_spill] sm:$0xff] %v6607_v35  ;;  %v6617_v57 = vpack.c.bf16 %v357_v44, %v353_v40  ;;  %v359_v6 = vld [vmem:[#allocation4 + $0x348] sm:$0xff]  ;;  %v361_v13 = vld [vmem:[#allocation4 + $0x358] sm:$0xff] }
  0x4c   :  { %4540 = vmatpush1.bf16.msra.mxu1 %v6576_v23  ;;  %517 = vmatprep.mubr.f32.mxu1 %v7755_v0  ;;  %v6601_v19 = vpack.c.bf16 %v340_v60, %v336_v54  ;;  %7966 = vst [vmem:[#allocation48_spill] sm:$0xff] %v6610_v49  ;;  %v6613_v54 = vpack.c.bf16 %v348_v39, %v344_v38  ;;  %v352_v59 = vld [vmem:[#allocation4 + $0x310] sm:$0xff]  ;;  %v363_v12 = vld [vmem:[#allocation4 + $0x368] sm:$0xff]  ;;  %v365_v32 = vld [vmem:[#allocation4 + $0x378] sm:$0xff] }
  0x4d   :  { %4542 = vmatprep.subr.bf16.mxu1 %v6582_v36  ;;  %7968 = vst [vmem:[#allocation50_spill] sm:$0xff] %v6617_v57  ;;  %v356_v60 = vld [vmem:[#allocation4 + $0x330] sm:$0xff]  ;;  %v6625_v28 = vpack.c.bf16 %v363_v12, %v359_v6  ;;  %v358_v38 = vld [vmem:[#allocation4 + $0x340] sm:$0xff]  ;;  %v6627_v39 = vpack.c.bf16 %v365_v32, %v361_v13  ;;  %v373_v12 = vld [vmem:[#allocation4 + $0x3b8] sm:$0xff] }
  0x4e   :  { %4512 = vmatpush1.bf16.msra.mxu0 %v6572_v21  ;;  %7963 = vst [vmem:[#allocation45_spill] sm:$0xff] %v6601_v19  ;;  %7967 = vst [vmem:[#allocation49_spill] sm:$0xff] %v6613_v54  ;;  %v6621_v5 = vpack.c.bf16 %v356_v60, %v352_v59  ;;  %v362_v40 = vld [vmem:[#allocation4 + $0x360] sm:$0xff]  ;;  %v360_v44 = vld [vmem:[#allocation4 + $0x350] sm:$0xff] }
  0x4f   :  { %4514 = vmatprep.subr.bf16.mxu0 %v6579_v29  ;;  %7970 = vst [vmem:[#allocation52_spill] sm:$0xff] %v6625_v28  ;;  %7971 = vst [vmem:[#allocation53_spill] sm:$0xff] %v6627_v39  ;;  %v6630_v0 = vpack.c.bf16 %v362_v40, %v358_v38  ;;  %v364_v59 = vld [vmem:[#allocation4 + $0x370] sm:$0xff]  ;;  %v366_v13 = vld [vmem:[#allocation4 + $0x380] sm:$0xff] }
  0x50   :  { %4544 = vmatpush1.bf16.msra.mxu1 %v6588_v53  ;;  %7969 = vst [vmem:[#allocation51_spill] sm:$0xff] %v6621_v5  ;;  %v6633_v60 = vpack.c.bf16 %v364_v59, %v360_v44  ;;  %v370_v32 = vld [vmem:[#allocation4 + $0x3a0] sm:$0xff]  ;;  %v368_v40 = vld [vmem:[#allocation4 + $0x390] sm:$0xff]  ;;  %v375_v59 = vld [vmem:[#allocation4 + $0x3c8] sm:$0xff] }
  0x51   :  { %4546 = vmatprep.subr.bf16.mxu1 %v6594_v2  ;;  %7972 = vst [vmem:[#allocation54_spill] sm:$0xff] %v6630_v0  ;;  %v6641_v38 = vpack.c.bf16 %v370_v32, %v366_v13 }
  0x52   :  { %4516 = vmatpush1.bf16.msra.mxu0 %v6585_v50  ;;  %7973 = vst [vmem:[#allocation55_spill] sm:$0xff] %v6633_v60 }
  0x53   :  { %4518 = vmatprep.subr.bf16.mxu0 %v6591_v56  ;;  %7976 = vst [vmem:[#allocation58_spill] sm:$0xff] %v6641_v38 }
  0x54   :  { %4548 = vmatpush1.bf16.msra.mxu1 %v6601_v19 }
  0x55   :  { %4550 = vmatprep.subr.bf16.mxu1 %v6607_v35 }
  0x56   :  { %4520 = vmatpush1.bf16.msra.mxu0 %v6598_v16  ;;  %v572_v16 = vld [vmem:[#allocation6 + $0x180] sm:$0xff] }
  0x57   :  { %4522 = vmatprep.subr.bf16.mxu0 %v6604_v20 }
  0x58   :  { %4552 = vmatpush1.bf16.msra.mxu1 %v6613_v54  ;;  %v577_v54 = vld [vmem:[#allocation6 + $0x1a8] sm:$0xff] }
  0x59   :  { %4554 = vmatprep.subr.bf16.mxu1 %v6617_v57  ;;  %v369_v57 = vld [vmem:[#allocation4 + $0x398] sm:$0xff] }
  0x5a   :  { %4524 = vmatpush1.bf16.msra.mxu0 %v6610_v49  ;;  %v371_v49 = vld [vmem:[#allocation4 + $0x3a8] sm:$0xff] }
  0x5b   :  { %4526 = vmatprep.subr.bf16.mxu0 %v6625_v28  ;;  %v6639_v28 = vpack.c.bf16 %v373_v12, %v369_v57  ;;  %v374_v57 = vld [vmem:[#allocation4 + $0x3c0] sm:$0xff] }
  0x5c   :  { %4556 = vmatpush1.bf16.msra.mxu1 %v6621_v5  ;;  %v367_v5 = vld [vmem:[#allocation4 + $0x388] sm:$0xff]  ;;  %v378_v12 = vld [vmem:[#allocation4 + $0x3e0] sm:$0xff] }
  0x5d   :  { %4558 = vmatprep.subr.bf16.mxu1 %v6627_v39  ;;  %v6636_v6 = vpack.c.bf16 %v371_v49, %v367_v5  ;;  %7975 = vst [vmem:[#allocation57_spill] sm:$0xff] %v6639_v28  ;;  %v372_v39 = vld [vmem:[#allocation4 + $0x3b0] sm:$0xff]  ;;  %v379_v49 = vld [vmem:[#allocation4 + $0x3e8] sm:$0xff]  ;;  %v377_v5 = vld [vmem:[#allocation4 + $0x3d8] sm:$0xff]  ;;  %v6653_v32 = vpack.c.bf16 %v378_v12, %v374_v57 }
  0x5e   :  { %4528 = vmatpush1.bf16.msra.mxu0 %v6630_v0  ;;  %v6644_v44 = vpack.c.bf16 %v372_v39, %v368_v40  ;;  %v6648_v0 = vpack.c.bf16 %v379_v49, %v375_v59  ;;  %v376_v39 = vld [vmem:[#allocation4 + $0x3d0] sm:$0xff]  ;;  %v529_v59 = vld [vmem:[#allocation6 + $0x28] sm:$0xff]  ;;  %v527_v49 = vld [vmem:[#allocation6 + $0x18] sm:$0xff] }
  0x5f   :  { %7974 = vst [vmem:[#allocation56_spill] sm:$0xff] %v6636_v6  ;;  %4530 = vmatprep.subr.bf16.mxu0 %v6636_v6  ;;  %7980 = vst [vmem:[#allocation62_spill] sm:$0xff] %v6653_v32  ;;  %v380_v40 = vld [vmem:[#allocation4 + $0x3f0] sm:$0xff] }
  0x60   :  { %4560 = vmatpush1.bf16.msra.mxu1 %v6633_v60  ;;  %7977 = vst [vmem:[#allocation59_spill] sm:$0xff] %v6644_v44  ;;  %7978 = vst [vmem:[#allocation60_spill] sm:$0xff] %v6648_v0  ;;  %v381_v60 = vld [vmem:[#allocation4 + $0x3f8] sm:$0xff] }
  0x61   :  { %4562 = vmatprep.subr.bf16.mxu1 %v6639_v28  ;;  %v6651_v13 = vpack.c.bf16 %v381_v60, %v377_v5  ;;  %v6656_v28 = vpack.c.bf16 %v380_v40, %v376_v39  ;;  %v524_v60 = vld [vmem:[#allocation6] sm:$0xff]  ;;  %v526_v39 = vld [vmem:[#allocation6 + $0x10] sm:$0xff] }
  0x62   :  { %4532 = vmatpush1.bf16.msra.mxu0 %v6641_v38  ;;  %v525_v38 = vld [vmem:[#allocation6 + $0x8] sm:$0xff]  ;;  %v528_v5 = vld [vmem:[#allocation6 + $0x20] sm:$0xff]  ;;  %v530_v40 = vld [vmem:[#allocation6 + $0x30] sm:$0xff] }
  0x63   :  { %7979 = vst [vmem:[#allocation61_spill] sm:$0xff] %v6651_v13  ;;  %4534 = vmatprep.subr.bf16.mxu0 %v6648_v0  ;;  %7981 = vst [vmem:[#allocation63_spill] sm:$0xff] %v6656_v28  ;;  %v6660_v6 = vpack.c.bf16 %v529_v59, %v525_v38  ;;  %v6665_v12 = vpack.c.bf16 %v528_v5, %v524_v60  ;;  %v533_v38 = vld [vmem:[#allocation6 + $0x48] sm:$0xff]  ;;  %v535_v59 = vld [vmem:[#allocation6 + $0x58] sm:$0xff] }
  0x64   :  { %4564 = vmatpush1.bf16.msra.mxu1 %v6644_v44  ;;  %v531_v44 = vld [vmem:[#allocation6 + $0x38] sm:$0xff]  ;;  %v538_v0 = vld [vmem:[#allocation6 + $0x70] sm:$0xff] }
  0x65   :  { %4566 = vmatprep.subr.bf16.mxu1 %v6651_v13  ;;  %7982 = vst [vmem:[#allocation64_spill] sm:$0xff] %v6660_v6  ;;  %v6663_v57 = vpack.c.bf16 %v531_v44, %v527_v49  ;;  %7984 = vst [vmem:[#allocation66_spill] sm:$0xff] %v6665_v12  ;;  %v65_v13 = vld [vmem:[%s7748_s4 + $0x8] sm:$0xff]  ;;  %v539_v49 = vld [vmem:[#allocation6 + $0x78] sm:$0xff] }
  0x66   :  { %4536 = vmatpush1.bf16.msra.mxu0 %v6653_v32  ;;  %v6671_v32 = vpack.c.bf16 %v530_v40, %v526_v39  ;;  %v537_v44 = vld [vmem:[#allocation6 + $0x68] sm:$0xff]  ;;  %v6678_v5 = vpack.c.bf16 %v539_v49, %v535_v59  ;;  %v534_v39 = vld [vmem:[#allocation6 + $0x50] sm:$0xff]  ;;  %v7988_v40 = vmov 0.0   ;;  %v543_v59 = vld [vmem:[#allocation6 + $0x98] sm:$0xff] }
  0x67   :  { %7983 = vst [vmem:[#allocation65_spill] sm:$0xff] %v6663_v57  ;;  %4570 = vmatprep.subr.bf16.mxu0 %v6660_v6  ;;  %v6676_v60 = vpack.c.bf16 %v537_v44, %v533_v38  ;;  %v532_v6 = vld [vmem:[#allocation6 + $0x40] sm:$0xff]  ;;  %v541_v38 = vld [vmem:[#allocation6 + $0x88] sm:$0xff] }
  0x68   :  { %4568 = vmatpush1.bf16.msra.mxu1 %v6656_v28  ;;  %7985 = vst [vmem:[#allocation67_spill] sm:$0xff] %v6671_v32  ;;  %7987 = vst [vmem:[#allocation69_spill] sm:$0xff] %v6678_v5  ;;  %v536_v28 = vld [vmem:[#allocation6 + $0x60] sm:$0xff]  ;;  %v545_v44 = vld [vmem:[#allocation6 + $0xa8] sm:$0xff] }
  0x69   :  { %4602 = vmatprep.subr.bf16.mxu1 %v6663_v57  ;;  %447 = vmatmul.mubr.f32.vlgmr.msra.gmra.mrb[2].mxu0 %v65_v13  ;;  %7986 = vst [vmem:[#allocation68_spill] sm:$0xff] %v6676_v60  ;;  %v6681_v57 = vpack.c.bf16 %v536_v28, %v532_v6  ;;  %v6689_v49 = vpack.c.bf16 %v545_v44, %v541_v38  ;;  %v544_v28 = vld [vmem:[#allocation6 + $0xa0] sm:$0xff]  ;;  %v553_v38 = vld [vmem:[#allocation6 + $0xe8] sm:$0xff]  ;;  %v551_v44 = vld [vmem:[#allocation6 + $0xd8] sm:$0xff] }
  0x6a   :  { %4572 = vmatpush1.bf16.msra.mxu0 %v6665_v12  ;;  %673 = vmatprep.mubr.f32.mxu0 %v7988_v40  ;;  %v540_v12 = vld [vmem:[#allocation6 + $0x80] sm:$0xff] }
  0x6b   :  { %518 = vmatmul.mubr.f32.vlgmr.msra.gmra.mrb[2].mxu1 %v65_v13  ;;  %7989 = vst [vmem:[#allocation70_spill] sm:$0xff] %v6681_v57  ;;  %4574 = vmatprep.subr.bf16.mxu0 %v6676_v60  ;;  %v6686_v13 = vpack.c.bf16 %v538_v0, %v534_v39  ;;  %7991 = vst [vmem:[#allocation72_spill] sm:$0xff] %v6689_v49  ;;  %v6694_v20 = vpack.c.bf16 %v544_v28, %v540_v12  ;;  %v542_v60 = vld [vmem:[#allocation6 + $0x90] sm:$0xff]  ;;  %v549_v39 = vld [vmem:[#allocation6 + $0xc8] sm:$0xff] }
  0x6c   :  { %4604 = vmatpush1.bf16.msra.mxu1 %v6671_v32  ;;  %744 = vmatprep.mubr.f32.mxu1 %v7988_v40  ;;  %v547_v32 = vld [vmem:[#allocation6 + $0xb8] sm:$0xff] }
  0x6d   :  { %4606 = vmatprep.subr.bf16.mxu1 %v6678_v5  ;;  %7990 = vst [vmem:[#allocation71_spill] sm:$0xff] %v6686_v13  ;;  %v6692_v6 = vpack.c.bf16 %v547_v32, %v543_v59  ;;  %7993 = vst [vmem:[#allocation74_spill] sm:$0xff] %v6694_v20  ;;  %v546_v5 = vld [vmem:[#allocation6 + $0xb0] sm:$0xff]  ;;  %v548_v32 = vld [vmem:[#allocation6 + $0xc0] sm:$0xff] }
  0x6e   :  { %4576 = vmatpush1.bf16.msra.mxu0 %v6681_v57  ;;  %v6697_v0 = vpack.c.bf16 %v546_v5, %v542_v60  ;;  %v6701_v57 = vpack.c.bf16 %v553_v38, %v549_v39  ;;  %v552_v59 = vld [vmem:[#allocation6 + $0xe0] sm:$0xff]  ;;  %v550_v60 = vld [vmem:[#allocation6 + $0xd0] sm:$0xff]  ;;  %v561_v39 = vld [vmem:[#allocation6 + $0x128] sm:$0xff] }
  0x6f   :  { %7992 = vst [vmem:[#allocation73_spill] sm:$0xff] %v6692_v6  ;;  %4578 = vmatprep.subr.bf16.mxu0 %v6689_v49  ;;  %v6706_v28 = vpack.c.bf16 %v552_v59, %v548_v32  ;;  %v554_v5 = vld [vmem:[#allocation6 + $0xf0] sm:$0xff]  ;;  %v559_v38 = vld [vmem:[#allocation6 + $0x118] sm:$0xff] }
  0x70   :  { %4608 = vmatpush1.bf16.msra.mxu1 %v6686_v13  ;;  %7994 = vst [vmem:[#allocation75_spill] sm:$0xff] %v6697_v0  ;;  %7995 = vst [vmem:[#allocation76_spill] sm:$0xff] %v6701_v57  ;;  %v555_v13 = vld [vmem:[#allocation6 + $0xf8] sm:$0xff] }
  0x71   :  { %4610 = vmatprep.subr.bf16.mxu1 %v6692_v6  ;;  %v6704_v12 = vpack.c.bf16 %v555_v13, %v551_v44  ;;  %7997 = vst [vmem:[#allocation78_spill] sm:$0xff] %v6706_v28  ;;  %v6709_v6 = vpack.c.bf16 %v554_v5, %v550_v60  ;;  %v556_v13 = vld [vmem:[#allocation6 + $0x100] sm:$0xff]  ;;  %v558_v60 = vld [vmem:[#allocation6 + $0x110] sm:$0xff] }
  0x72   :  { %4580 = vmatpush1.bf16.msra.mxu0 %v6694_v20  ;;  %v557_v20 = vld [vmem:[#allocation6 + $0x108] sm:$0xff]  ;;  %v560_v44 = vld [vmem:[#allocation6 + $0x120] sm:$0xff]  ;;  %v562_v5 = vld [vmem:[#allocation6 + $0x130] sm:$0xff] }
  0x73   :  { %7996 = vst [vmem:[#allocation77_spill] sm:$0xff] %v6704_v12  ;;  %4582 = vmatprep.subr.bf16.mxu0 %v6701_v57  ;;  %7998 = vst [vmem:[#allocation79_spill] sm:$0xff] %v6709_v6  ;;  %v6713_v49 = vpack.c.bf16 %v561_v39, %v557_v20  ;;  %v6718_v59 = vpack.c.bf16 %v560_v44, %v556_v13  ;;  %v569_v20 = vld [vmem:[#allocation6 + $0x168] sm:$0xff]  ;;  %v567_v39 = vld [vmem:[#allocation6 + $0x158] sm:$0xff] }
  0x74   :  { %4612 = vmatpush1.bf16.msra.mxu1 %v6697_v0  ;;  %v563_v0 = vld [vmem:[#allocation6 + $0x138] sm:$0xff] }
  0x75   :  { %4614 = vmatprep.subr.bf16.mxu1 %v6704_v12  ;;  %7999 = vst [vmem:[#allocation80_spill] sm:$0xff] %v6713_v49  ;;  %v6716_v32 = vpack.c.bf16 %v563_v0, %v559_v38  ;;  %8001 = vst [vmem:[#allocation82_spill] sm:$0xff] %v6718_v59  ;;  %v6721_v12 = vpack.c.bf16 %v562_v5, %v558_v60  ;;  %v564_v0 = vld [vmem:[#allocation6 + $0x140] sm:$0xff]  ;;  %v566_v60 = vld [vmem:[#allocation6 + $0x150] sm:$0xff] }
  0x76   :  { %4584 = vmatpush1.bf16.msra.mxu0 %v6706_v28  ;;  %v565_v28 = vld [vmem:[#allocation6 + $0x148] sm:$0xff]  ;;  %v568_v38 = vld [vmem:[#allocation6 + $0x160] sm:$0xff]  ;;  %v570_v5 = vld [vmem:[#allocation6 + $0x170] sm:$0xff] }
  0x77   :  { %8000 = vst [vmem:[#allocation81_spill] sm:$0xff] %v6716_v32  ;;  %4586 = vmatprep.subr.bf16.mxu0 %v6713_v49  ;;  %8002 = vst [vmem:[#allocation83_spill] sm:$0xff] %v6721_v12  ;;  %v6725_v57 = vpack.c.bf16 %v569_v20, %v565_v28  ;;  %v6730_v44 = vpack.c.bf16 %v568_v38, %v564_v0  ;;  %v573_v49 = vld [vmem:[#allocation6 + $0x188] sm:$0xff]  ;;  %v579_v20 = vld [vmem:[#allocation6 + $0x1b8] sm:$0xff] }
  0x78   :  { %4616 = vmatpush1.bf16.msra.mxu1 %v6709_v6  ;;  %v571_v6 = vld [vmem:[#allocation6 + $0x178] sm:$0xff]  ;;  %v6736_v28 = vpack.c.bf16 %v577_v54, %v573_v49  ;;  %v574_v0 = vld [vmem:[#allocation6 + $0x190] sm:$0xff]  ;;  %v585_v54 = vld [vmem:[#allocation6 + $0x1e8] sm:$0xff] }
  0x79   :  { %4618 = vmatprep.subr.bf16.mxu1 %v6716_v32  ;;  %8003 = vst [vmem:[#allocation84_spill] sm:$0xff] %v6725_v57  ;;  %v6728_v13 = vpack.c.bf16 %v571_v6, %v567_v39  ;;  %8005 = vst [vmem:[#allocation86_spill] sm:$0xff] %v6730_v44  ;;  %v6733_v32 = vpack.c.bf16 %v570_v5, %v566_v60  ;;  %v578_v38 = vld [vmem:[#allocation6 + $0x1b0] sm:$0xff]  ;;  %v581_v60 = vld [vmem:[#allocation6 + $0x1c8] sm:$0xff] }
  0x7a   :  { %4588 = vmatpush1.bf16.msra.mxu0 %v6718_v59  ;;  %v575_v59 = vld [vmem:[#allocation6 + $0x198] sm:$0xff]  ;;  %8007 = vst [vmem:[#allocation88_spill] sm:$0xff] %v6736_v28  ;;  %v6745_v5 = vpack.c.bf16 %v578_v38, %v574_v0  ;;  %v286_v38 = vld [vmem:[%s7744_s0 + $0x8] sm:$0xff] }
  0x7b   :  { %8004 = vst [vmem:[#allocation85_spill] sm:$0xff] %v6728_v13  ;;  %4590 = vmatprep.subr.bf16.mxu0 %v6725_v57  ;;  %8006 = vst [vmem:[#allocation87_spill] sm:$0xff] %v6733_v32  ;;  %v6739_v6 = vpack.c.bf16 %v579_v20, %v575_v59  ;;  %v583_v49 = vld [vmem:[#allocation6 + $0x1d8] sm:$0xff]  ;;  %v6748_v57 = vpack.c.bf16 %v585_v54, %v581_v60  ;;  %v582_v20 = vld [vmem:[#allocation6 + $0x1d0] sm:$0xff] }
  0x7c   :  { %4620 = vmatpush1.bf16.msra.mxu1 %v6721_v12  ;;  %v576_v12 = vld [vmem:[#allocation6 + $0x1a0] sm:$0xff]  ;;  %8008 = vst [vmem:[#allocation89_spill] sm:$0xff] %v6745_v5 }
  0x7d   :  { %4622 = vmatprep.subr.bf16.mxu1 %v6728_v13  ;;  %v6741_v39 = vpack.c.bf16 %v576_v12, %v572_v16  ;;  %v587_v13 = vld [vmem:[#allocation6 + $0x1f8] sm:$0xff]  ;;  %8009 = vst [vmem:[#allocation90_spill] sm:$0xff] %v6748_v57  ;;  %v580_v16 = vld [vmem:[#allocation6 + $0x1c0] sm:$0xff] }
  0x7e   :  { %4592 = vmatpush1.bf16.msra.mxu0 %v6730_v44  ;;  %v6750_v59 = vpack.c.bf16 %v587_v13, %v583_v49  ;;  %v584_v12 = vld [vmem:[#allocation6 + $0x1e0] sm:$0xff]  ;;  %v586_v44 = vld [vmem:[#allocation6 + $0x1f0] sm:$0xff] }
  0x7f   :  { %4594 = vmatprep.subr.bf16.mxu0 %v6736_v28  ;;  %v6757_v0 = vpack.c.bf16 %v586_v44, %v582_v20  ;;  %v285_v13 = vld [vmem:[%s7744_s0] sm:$0xff]  ;;  %v287_v20 = vld [vmem:[%s7744_s0 + $0x10] sm:$0xff] }
  0x80   :  { %4624 = vmatpush1.bf16.msra.mxu1 %v6733_v32  ;;  %8010 = vst [vmem:[#allocation91_spill] sm:$0xff] %v6750_v59  ;;  %v6753_v32 = vpack.c.bf16 %v584_v12, %v580_v16 }
  0x81   :  { %4626 = vmatprep.subr.bf16.mxu1 %v6739_v6  ;;  %8012 = vst [vmem:[#allocation93_spill] sm:$0xff] %v6757_v0 }
  0x82   :  { %4596 = vmatpush1.bf16.msra.mxu0 %v6741_v39  ;;  %8011 = vst [vmem:[#allocation92_spill] sm:$0xff] %v6753_v32 }
  0x83   :  { %4598 = vmatprep.subr.bf16.mxu0 %v6748_v57 }
  0x84   :  { %4628 = vmatpush1.bf16.msra.mxu1 %v6745_v5 }
  0x85   :  { %4630 = vmatprep.subr.bf16.mxu1 %v6750_v59 }
  0x86   :  { %4600 = vmatpush1.bf16.msra.mxu0 %v6753_v32  ;;  %v288_v32 = vld [vmem:[%s7744_s0 + $0x18] sm:$0xff] }
  0x87   :  { %4634 = vmatprep.subr.bf16.mxu0 %v6464_v4 }
  0x88   :  { %4632 = vmatpush1.bf16.msra.mxu1 %v6757_v0 }
  0x89   :  { %4666 = vmatprep.subr.bf16.mxu1 %v6477_v22 }
 0x11c   :  { %v209_v44 = vpop.f32.mrb[0].mxu0 }
 0x11d   :  { %v289_v60 = vadd.f32 %v285_v13, %v209_v44  ;;  %v211_v54 = vpop.f32.mrb[1].mxu0 }
 0x11e   :  { %v290_v49 = vadd.f32 %v286_v38, %v211_v54  ;;  %v280_v22 = vpop.f32.mrb[0].mxu1 }
 0x11f   :  { %v4310_v16 = vmul.f32 -1.442695, %v289_v60  ;;  %v282_v4 = vpop.f32.mrb[1].mxu1  ;;  %v291_v0 = vadd.f32 %v287_v20, %v280_v22  ;;  %v68_v22 = vld [vmem:[%s7749_s5] sm:$0xff] }
 0x120   :  { %v4311_v12 = vmul.f32 -1.442695, %v290_v49  ;;  %v292_v57 = vadd.f32 %v288_v32, %v282_v4 }
 0x121   :  { %6072 = vpow2.f32 %v4310_v16  ;;  %v4312_v59 = vmul.f32 -1.442695, %v291_v0 }
 0x122   :  { %6074 = vpow2.f32 %v4311_v12 }
 0x123   :  { %6076 = vpow2.f32 %v4312_v59 }
 0x124   :  { %6078 = vtanh.f32 %v292_v57 }
 0x12b   :  { %v6073_v13 = vpop.eup %6072 }
 0x12c   :  { %v6075_v38 = vpop.eup %6074  ;;  %v302_v44 = vadd.f32 1.0, %v6073_v13  ;;  %v8014_v13 = vld [vmem:[#allocation49_spill] sm:$0xff] }
 0x12d   :  { %v303_v60 = vadd.f32 1.0, %v6075_v38  ;;  %v6077_v54 = vpop.eup %6076  ;;  %v8015_v38 = vld [vmem:[#allocation46_spill] sm:$0xff] }
 0x12e   :  { %6080 = vrcp.f32 %v302_v44  ;;  %v6079_v49 = vpop.eup %6078  ;;  %v304_v12 = vadd.f32 1.0, %v6077_v54  ;;  %v8016_v44 = vld [vmem:[#allocation50_spill] sm:$0xff]  ;;  %v8018_v54 = vld [vmem:[#allocation51_spill] sm:$0xff] }
 0x12f   :  { %6082 = vrcp.f32 %v303_v60  ;;  %v8017_v60 = vld [vmem:[#allocation48_spill] sm:$0xff] }
 0x130   :  { %6084 = vrcp.f32 %v304_v12  ;;  %v8022_v12 = vld [vmem:[#allocation55_spill] sm:$0xff] }
 0x138   :  { %v6081_v16 = vpop.eup %6080 }
 0x139   :  { %v6083_v20 = vpop.eup %6082  ;;  %v313_v5 = vmul.f32 %v6081_v16, %v6079_v49  ;;  %v8019_v49 = vld [vmem:[#allocation52_spill] sm:$0xff]  ;;  %v8021_v16 = vld [vmem:[#allocation54_spill] sm:$0xff] }
 0x13a   :  { %v312_v0 = vmul.f32 %v6083_v20, %v68_v22  ;;  %v6085_v57 = vpop.eup %6084  ;;  %v8020_v22 = vld [vmem:[#allocation53_spill] sm:$0xff]  ;;  %v8023_v20 = vld [vmem:[#allocation56_spill] sm:$0xff] }
 0x13c   :  { %v6779_v4 = vadd.f32 %v313_v5, %v312_v0  ;;  %v8013_v5 = vld [vmem:[#allocation44_spill] sm:$0xff]  ;;  %v8024_v0 = vld [vmem:[#allocation57_spill] sm:$0xff] }
 0x13e   :  { %6086 = vtanh.f32 %v6779_v4 }
 0x148   :  { %v6087_v32 = vpop.eup %6086 }
 0x149   :  { %v316_v59 = vmul.f32 %v6087_v32, %v6085_v57  ;;  %v8025_v57 = vld [vmem:[#allocation58_spill] sm:$0xff]  ;;  %v8026_v32 = vld [vmem:[#allocation59_spill] sm:$0xff] }
 0x14b   :  { %674 = vmatmul.mubr.f32.vlgmr.msra.gmra.mrb[2].mxu0 %v316_v59  ;;  %745 = vmatmul.mubr.f32.vlgmr.msra.gmra.mrb[2].mxu1 %v316_v59 }
 0x14c   :  { %4636 = vmatpush1.bf16.msra.mxu0 %v6466_v8  ;;  %4668 = vmatpush1.bf16.msra.mxu1 %v6479_v25 }
 0x14d   :  { %4638 = vmatprep.subr.bf16.mxu0 %v6468_v9  ;;  %4670 = vmatprep.subr.bf16.mxu1 %v6489_v33 }
 0x14e   :  { %843 = vmatprep.mubr.f32.mxu0 %v7988_v40  ;;  %914 = vmatprep.mubr.f32.mxu1 %v7988_v40 }
 0x150   :  { %4640 = vmatpush1.bf16.msra.mxu0 %v6472_v14  ;;  %4672 = vmatpush1.bf16.msra.mxu1 %v6491_v37 }
 0x151   :  { %4642 = vmatprep.subr.bf16.mxu0 %v6475_v17  ;;  %4674 = vmatprep.subr.bf16.mxu1 %v6497_v45 }
 0x154   :  { %4644 = vmatpush1.bf16.msra.mxu0 %v6482_v26  ;;  %4676 = vmatpush1.bf16.msra.mxu1 %v6503_v48 }
 0x155   :  { %4646 = vmatprep.subr.bf16.mxu0 %v6486_v30  ;;  %4678 = vmatprep.subr.bf16.mxu1 %v6506_v52 }
 0x158   :  { %4648 = vmatpush1.bf16.msra.mxu0 %v6495_v42  ;;  %4680 = vmatpush1.bf16.msra.mxu1 %v6515_v62 }
 0x159   :  { %4650 = vmatprep.subr.bf16.mxu0 %v6500_v46  ;;  %4682 = vmatprep.subr.bf16.mxu1 %v6518_v1 }
 0x15c   :  { %4652 = vmatpush1.bf16.msra.mxu0 %v6509_v55  ;;  %4684 = vmatpush1.bf16.msra.mxu1 %v6527_v15 }
 0x15d   :  { %4654 = vmatprep.subr.bf16.mxu0 %v6512_v58  ;;  %4686 = vmatprep.subr.bf16.mxu1 %v6530_v18 }
 0x160   :  { %4656 = vmatpush1.bf16.msra.mxu0 %v6521_v7  ;;  %4688 = vmatpush1.bf16.msra.mxu1 %v6539_v31 }
 0x161   :  { %4658 = vmatprep.subr.bf16.mxu0 %v6524_v10  ;;  %4690 = vmatprep.subr.bf16.mxu1 %v6542_v34 }
 0x164   :  { %4660 = vmatpush1.bf16.msra.mxu0 %v6533_v24  ;;  %4692 = vmatpush1.bf16.msra.mxu1 %v6549_v43 }
 0x165   :  { %4662 = vmatprep.subr.bf16.mxu0 %v6536_v27  ;;  %4694 = vmatprep.subr.bf16.mxu1 %v6554_v51 }
 0x168   :  { %4664 = vmatpush1.bf16.msra.mxu0 %v6545_v41  ;;  %4696 = vmatpush1.bf16.msra.mxu1 %v6563_v63 }
 0x169   :  { %4698 = vmatprep.subr.bf16.mxu0 %v6551_v47  ;;  %4730 = vmatprep.subr.bf16.mxu1 %v6569_v11 }
 0x16b   :  { %844 = vmatmul.mubr.f32.vlgmr.msra.gmra.mrb[4].mxu0 %v316_v59  ;;  %915 = vmatmul.mubr.f32.vlgmr.msra.gmra.mrb[4].mxu1 %v316_v59  ;;  %v8027_v59 = vld [vmem:[#allocation60_spill] sm:$0xff] }
 0x16c   :  { %4700 = vmatpush1.bf16.msra.mxu0 %v6560_v61  ;;  %4732 = vmatpush1.bf16.msra.mxu1 %v6576_v23 }
 0x16d   :  { %4702 = vmatprep.subr.bf16.mxu0 %v6566_v3  ;;  %4734 = vmatprep.subr.bf16.mxu1 %v6582_v36 }
 0x16e   :  { %1018 = vmatprep.mubr.f32.mxu0 %v7988_v40  ;;  %1089 = vmatprep.mubr.f32.mxu1 %v7988_v40 }
 0x170   :  { %4704 = vmatpush1.bf16.msra.mxu0 %v6572_v21  ;;  %4736 = vmatpush1.bf16.msra.mxu1 %v6588_v53 }
 0x171   :  { %4706 = vmatprep.subr.bf16.mxu0 %v6579_v29  ;;  %4738 = vmatprep.subr.bf16.mxu1 %v6594_v2 }
 0x174   :  { %4708 = vmatpush1.bf16.msra.mxu0 %v6585_v50  ;;  %4740 = vmatpush1.bf16.msra.mxu1 %v6601_v19 }
 0x175   :  { %4710 = vmatprep.subr.bf16.mxu0 %v6591_v56  ;;  %4742 = vmatprep.subr.bf16.mxu1 %v6607_v35 }
 0x178   :  { %4712 = vmatpush1.bf16.msra.mxu0 %v8013_v5  ;;  %4744 = vmatpush1.bf16.msra.mxu1 %v8014_v13 }
 0x179   :  { %4714 = vmatprep.subr.bf16.mxu0 %v8015_v38  ;;  %4746 = vmatprep.subr.bf16.mxu1 %v8016_v44 }
 0x17c   :  { %4716 = vmatpush1.bf16.msra.mxu0 %v8017_v60  ;;  %4748 = vmatpush1.bf16.msra.mxu1 %v8018_v54  ;;  %v8028_v60 = vld [vmem:[#allocation61_spill] sm:$0xff]  ;;  %v8029_v54 = vld [vmem:[#allocation62_spill] sm:$0xff] }
 0x17d   :  { %4718 = vmatprep.subr.bf16.mxu0 %v8019_v49  ;;  %4750 = vmatprep.subr.bf16.mxu1 %v8020_v22  ;;  %v8030_v49 = vld [vmem:[#allocation63_spill] sm:$0xff]  ;;  %v8031_v22 = vld [vmem:[#allocation64_spill] sm:$0xff] }
 0x180   :  { %4720 = vmatpush1.bf16.msra.mxu0 %v8021_v16  ;;  %4752 = vmatpush1.bf16.msra.mxu1 %v8022_v12  ;;  %v8032_v16 = vld [vmem:[#allocation65_spill] sm:$0xff]  ;;  %v589_v12 = vlaneseq }
 0x181   :  { %4722 = vmatprep.subr.bf16.mxu0 %v8023_v20  ;;  %4754 = vmatprep.subr.bf16.mxu1 %v8024_v0 }
 0x182   :  { %v590_v20 = vshrl.u32 %v589_v12, 7 }
 0x184   :  { %4724 = vmatpush1.bf16.msra.mxu0 %v8025_v57  ;;  %4756 = vmatpush1.bf16.msra.mxu1 %v8026_v32  ;;  %v591_v44 = vsub.s32 0, %v590_v20  ;;  %v72_v57 = vld [vmem:[%s7747_s3] sm:$0xf]  ;;  %v595_v32 = vsub.s32 1, %v590_v20  ;;  %v599_v38 = vsub.s32 2, %v590_v20  ;;  %v603_v35 = vsub.s32 3, %v590_v20 }
 0x185   :  { %4726 = vmatprep.subr.bf16.mxu0 %v8027_v59  ;;  %4758 = vmatprep.subr.bf16.mxu1 %v8028_v60 }
 0x186   :  { %v6853_v0 = vrot.slane %v72_v57, %v591_v44  ;;  %v6855_v59 = vrot.slane %v72_v57, %v595_v32  ;;  %v6859_v56 = vrot.slane %v72_v57, %v599_v38  ;;  %v6861_v44 = vrot.slane %v72_v57, %v603_v35  ;;  %v69_v35 = vld [vmem:[%s7749_s5 + $0x8] sm:$0xff] }
 0x188   :  { %4728 = vmatpush1.bf16.msra.mxu0 %v8029_v54  ;;  %4760 = vmatpush1.bf16.msra.mxu1 %v8030_v49  ;;  %8033 = vst [vmem:[#allocation94_spill] sm:$0xff] %v6853_v0 }
 0x189   :  { %4762 = vmatprep.subr.bf16.mxu0 %v8031_v22  ;;  %4794 = vmatprep.subr.bf16.mxu1 %v8032_v16 }
 0x21e   :  { %v675_v60 = vpop.f32.mrb[2].mxu0  ;;  %v746_v54 = vpop.f32.mrb[2].mxu1 }
 0x21f   :  { %v676_v49 = vadd.f32 %v675_v60, %v6853_v0  ;;  %v677_v22 = vpop.f32.mrb[3].mxu0  ;;  %v748_v13 = vpop.f32.mrb[3].mxu1  ;;  %v747_v32 = vadd.f32 %v746_v54, %v6859_v56 }
 0x220   :  { %v678_v16 = vadd.f32 %v677_v22, %v6855_v59  ;;  %v749_v19 = vadd.f32 %v748_v13, %v6861_v44  ;;  %v4316_v13 = vld [vmem:[%s7744_s0 + $0x20] sm:$0xff] }
 0x221   :  { %v4313_v12 = vmul.f32 -1.442695, %v676_v49  ;;  %v4315_v50 = vmul.f32 -1.442695, %v747_v32 }
 0x222   :  { %v4314_v5 = vmul.f32 -1.442695, %v678_v16 }
 0x223   :  { %6088 = vpow2.f32 %v4313_v12 }
 0x224   :  { %6090 = vpow2.f32 %v4314_v5 }
 0x225   :  { %6092 = vtanh.f32 %v749_v19 }
 0x226   :  { %6094 = vpow2.f32 %v4315_v50  ;;  %v4317_v50 = vld [vmem:[%s7744_s0 + $0x28] sm:$0xff] }
 0x22d   :  { %v6089_v60 = vpop.eup %6088 }
 0x22e   :  { %v764_v0 = vadd.f32 1.0, %v6089_v60  ;;  %v6091_v2 = vpop.eup %6090 }
 0x22f   :  { %v765_v49 = vadd.f32 1.0, %v6091_v2  ;;  %v6093_v22 = vpop.eup %6092 }
 0x230   :  { %6096 = vrcp.f32 %v764_v0  ;;  %v6095_v16 = vpop.eup %6094 }
 0x231   :  { %6098 = vrcp.f32 %v765_v49  ;;  %v766_v20 = vadd.f32 1.0, %v6095_v16 }
 0x233   :  { %6100 = vrcp.f32 %v766_v20 }
 0x23a   :  { %v6097_v38 = vpop.eup %6096 }
 0x23b   :  { %v775_v5 = vmul.f32 %v6097_v38, %v6093_v22  ;;  %v6099_v54 = vpop.eup %6098  ;;  %v4318_v38 = vld [vmem:[%s7744_s0 + $0x30] sm:$0xff] }
 0x23c   :  { %v774_v19 = vmul.f32 %v6099_v54, %v69_v35 }
 0x23d   :  { %v6101_v54 = vpop.eup %6100 }
 0x23e   :  { %v845_v2 = vpop.f32.mrb[4].mxu0  ;;  %v916_v0 = vpop.f32.mrb[4].mxu1  ;;  %v6874_v57 = vadd.f32 %v775_v5, %v774_v19  ;;  %v4319_v5 = vld [vmem:[%s7744_s0 + $0x38] sm:$0xff] }
 0x23f   :  { %v926_v12 = vadd.f32 %v4316_v13, %v845_v2  ;;  %v847_v32 = vpop.f32.mrb[5].mxu0  ;;  %v918_v60 = vpop.f32.mrb[5].mxu1  ;;  %v928_v35 = vadd.f32 %v4318_v38, %v916_v0  ;;  %v8037_v38 = vld [vmem:[#allocation69_spill] sm:$0xff] }
 0x240   :  { %v927_v49 = vadd.f32 %v4317_v50, %v847_v32  ;;  %6102 = vtanh.f32 %v6874_v57  ;;  %v929_v13 = vadd.f32 %v4319_v5, %v918_v60  ;;  %v8038_v60 = vld [vmem:[#allocation70_spill] sm:$0xff]  ;;  %v8040_v5 = vld [vmem:[#allocation72_spill] sm:$0xff] }
 0x241   :  { %v4320_v22 = vmul.f32 -1.442695, %v926_v12  ;;  %v4322_v20 = vmul.f32 -1.442695, %v928_v35  ;;  %v8039_v35 = vld [vmem:[#allocation71_spill] sm:$0xff] }
 0x242   :  { %v4321_v16 = vmul.f32 -1.442695, %v927_v49  ;;  %v8034_v49 = vld [vmem:[#allocation66_spill] sm:$0xff] }
 0x243   :  { %6104 = vpow2.f32 %v4320_v22  ;;  %v8035_v22 = vld [vmem:[#allocation67_spill] sm:$0xff] }
 0x244   :  { %6106 = vpow2.f32 %v4321_v16  ;;  %v8036_v16 = vld [vmem:[#allocation68_spill] sm:$0xff] }
 0x245   :  { %6108 = vtanh.f32 %v929_v13  ;;  %v8042_v13 = vld [vmem:[#allocation74_spill] sm:$0xff] }
 0x246   :  { %6110 = vpow2.f32 %v4322_v20 }
 0x24a   :  { %v6103_v19 = vpop.eup %6102 }
 0x24b   :  { %v778_v50 = vmul.f32 %v6103_v19, %v6101_v54  ;;  %v8041_v54 = vld [vmem:[#allocation73_spill] sm:$0xff]  ;;  %v8043_v19 = vld [vmem:[#allocation75_spill] sm:$0xff] }
 0x24d   :  { %v6105_v2 = vpop.eup %6104  ;;  %1019 = vmatmul.mubr.f32.vlgmr.msra.gmra.mrb[6].mxu0 %v778_v50  ;;  %1090 = vmatmul.mubr.f32.vlgmr.msra.gmra.mrb[6].mxu1 %v778_v50  ;;  %v8044_v50 = vld [vmem:[#allocation76_spill] sm:$0xff] }
 0x24e   :  { %v939_v32 = vadd.f32 1.0, %v6105_v2  ;;  %v6107_v12 = vpop.eup %6106  ;;  %4764 = vmatpush1.bf16.msra.mxu0 %v8034_v49  ;;  %4796 = vmatpush1.bf16.msra.mxu1 %v8035_v22  ;;  %v8045_v2 = vld [vmem:[#allocation77_spill] sm:$0xff] }
 0x24f   :  { %v940_v0 = vadd.f32 1.0, %v6107_v12  ;;  %4766 = vmatprep.subr.bf16.mxu0 %v8036_v16  ;;  %4798 = vmatprep.subr.bf16.mxu1 %v8037_v38  ;;  %v6109_v20 = vpop.eup %6108  ;;  %v8046_v38 = vld [vmem:[#allocation78_spill] sm:$0xff]  ;;  %v8048_v16 = vld [vmem:[#allocation80_spill] sm:$0xff] }
 0x250   :  { %6112 = vrcp.f32 %v939_v32  ;;  %1160 = vmatprep.mubr.f32.mxu0 %v7988_v40  ;;  %1231 = vmatprep.mubr.f32.mxu1 %v7988_v40  ;;  %v6111_v32 = vpop.eup %6110 }
 0x251   :  { %6114 = vrcp.f32 %v940_v0 }
 0x252   :  { %4768 = vmatpush1.bf16.msra.mxu0 %v8038_v60  ;;  %4800 = vmatpush1.bf16.msra.mxu1 %v8039_v35  ;;  %v8047_v60 = vld [vmem:[#allocation79_spill] sm:$0xff] }
 0x253   :  { %4770 = vmatprep.subr.bf16.mxu0 %v8040_v5  ;;  %4802 = vmatprep.subr.bf16.mxu1 %v8041_v54  ;;  %v941_v5 = vadd.f32 1.0, %v6111_v32  ;;  %v8049_v54 = vld [vmem:[#allocation81_spill] sm:$0xff]  ;;  %v8054_v32 = vld [vmem:[#allocation86_spill] sm:$0xff] }
 0x255   :  { %6116 = vrcp.f32 %v941_v5  ;;  %v8058_v5 = vld [vmem:[#allocation91_spill] sm:$0xff] }
 0x256   :  { %4772 = vmatpush1.bf16.msra.mxu0 %v8042_v13  ;;  %4804 = vmatpush1.bf16.msra.mxu1 %v8043_v19 }
 0x257   :  { %4774 = vmatprep.subr.bf16.mxu0 %v8044_v50  ;;  %4806 = vmatprep.subr.bf16.mxu1 %v8045_v2  ;;  %v8050_v50 = vld [vmem:[#allocation82_spill] sm:$0xff]  ;;  %v8051_v2 = vld [vmem:[#allocation83_spill] sm:$0xff] }
 0x25a   :  { %v6113_v12 = vpop.eup %6112  ;;  %4776 = vmatpush1.bf16.msra.mxu0 %v8046_v38  ;;  %4808 = vmatpush1.bf16.msra.mxu1 %v8047_v60 }
 0x25b   :  { %v950_v0 = vmul.f32 %v6113_v12, %v6109_v20  ;;  %v6115_v35 = vpop.eup %6114  ;;  %4778 = vmatprep.subr.bf16.mxu0 %v8048_v16  ;;  %4810 = vmatprep.subr.bf16.mxu1 %v8049_v54  ;;  %v8052_v20 = vld [vmem:[#allocation84_spill] sm:$0xff]  ;;  %v8053_v12 = vld [vmem:[#allocation85_spill] sm:$0xff]  ;;  %v8055_v16 = vld [vmem:[#allocation87_spill] sm:$0xff] }
 0x25c   :  { %v949_v19 = vmul.f32 %v6115_v35, %v6779_v4  ;;  %v8056_v4 = vld [vmem:[#allocation89_spill] sm:$0xff]  ;;  %v8057_v35 = vld [vmem:[#allocation90_spill] sm:$0xff] }
 0x25e   :  { %v6902_v13 = vadd.f32 %v950_v0, %v949_v19  ;;  %4780 = vmatpush1.bf16.msra.mxu0 %v8050_v50  ;;  %4812 = vmatpush1.bf16.msra.mxu1 %v8051_v2 }
 0x25f   :  { %4782 = vmatprep.subr.bf16.mxu0 %v8052_v20  ;;  %4814 = vmatprep.subr.bf16.mxu1 %v8053_v12  ;;  %v6117_v19 = vpop.eup %6116  ;;  %v8059_v12 = vld [vmem:[#allocation92_spill] sm:$0xff]  ;;  %v8060_v20 = vld [vmem:[#allocation93_spill] sm:$0xff] }
 0x260   :  { %6118 = vtanh.f32 %v6902_v13 }
 0x262   :  { %4784 = vmatpush1.bf16.msra.mxu0 %v8054_v32  ;;  %4816 = vmatpush1.bf16.msra.mxu1 %v8055_v16  ;;  %v8061_v16 = vld [vmem:[#allocation10_spill] sm:$0xff] }
 0x263   :  { %4786 = vmatprep.subr.bf16.mxu0 %v6736_v28  ;;  %4818 = vmatprep.subr.bf16.mxu1 %v6739_v6  ;;  %v8062_v28 = vld [vmem:[#allocation11_spill] sm:$0xff] }
 0x266   :  { %4788 = vmatpush1.bf16.msra.mxu0 %v6741_v39  ;;  %4820 = vmatpush1.bf16.msra.mxu1 %v8056_v4 }
 0x267   :  { %4790 = vmatprep.subr.bf16.mxu0 %v8057_v35  ;;  %4822 = vmatprep.subr.bf16.mxu1 %v8058_v5 }
 0x26a   :  { %v6119_v0 = vpop.eup %6118  ;;  %4792 = vmatpush1.bf16.msra.mxu0 %v8059_v12  ;;  %4824 = vmatpush1.bf16.msra.mxu1 %v8060_v20 }
 0x26b   :  { %v953_v32 = vmul.f32 %v6119_v0, %v6117_v19  ;;  %4826 = vmatprep.subr.bf16.mxu0 %v8061_v16  ;;  %4858 = vmatprep.subr.bf16.mxu1 %v8062_v28  ;;  %v8063_v19 = vld [vmem:[#allocation43_spill] sm:$0xff]  ;;  %v8065_v0 = vld [vmem:[#allocation45_spill] sm:$0xff] }
 0x26d   :  { %1161 = vmatmul.mubr.f32.vlgmr.msra.gmra.mrb[6].mxu0 %v953_v32  ;;  %1232 = vmatmul.mubr.f32.vlgmr.msra.gmra.mrb[6].mxu1 %v953_v32 }
 0x26e   :  { %4828 = vmatpush1.bf16.msra.mxu0 %v6466_v8  ;;  %4860 = vmatpush1.bf16.msra.mxu1 %v6479_v25 }
 0x26f   :  { %4830 = vmatprep.subr.bf16.mxu0 %v6468_v9  ;;  %4862 = vmatprep.subr.bf16.mxu1 %v6489_v33 }
 0x270   :  { %1330 = vmatprep.mubr.f32.mxu0 %v7988_v40  ;;  %1401 = vmatprep.mubr.f32.mxu1 %v7988_v40 }
 0x272   :  { %4832 = vmatpush1.bf16.msra.mxu0 %v6472_v14  ;;  %4864 = vmatpush1.bf16.msra.mxu1 %v6491_v37 }
 0x273   :  { %4834 = vmatprep.subr.bf16.mxu0 %v6475_v17  ;;  %4866 = vmatprep.subr.bf16.mxu1 %v6497_v45 }
 0x276   :  { %4836 = vmatpush1.bf16.msra.mxu0 %v6482_v26  ;;  %4868 = vmatpush1.bf16.msra.mxu1 %v6503_v48 }
 0x277   :  { %4838 = vmatprep.subr.bf16.mxu0 %v6486_v30  ;;  %4870 = vmatprep.subr.bf16.mxu1 %v6506_v52 }
 0x27a   :  { %4840 = vmatpush1.bf16.msra.mxu0 %v6495_v42  ;;  %4872 = vmatpush1.bf16.msra.mxu1 %v6515_v62 }
 0x27b   :  { %4842 = vmatprep.subr.bf16.mxu0 %v6500_v46  ;;  %4874 = vmatprep.subr.bf16.mxu1 %v6518_v1 }
 0x27e   :  { %4844 = vmatpush1.bf16.msra.mxu0 %v6509_v55  ;;  %4876 = vmatpush1.bf16.msra.mxu1 %v6527_v15 }
 0x27f   :  { %4846 = vmatprep.subr.bf16.mxu0 %v6512_v58  ;;  %4878 = vmatprep.subr.bf16.mxu1 %v6530_v18 }
 0x282   :  { %4848 = vmatpush1.bf16.msra.mxu0 %v6521_v7  ;;  %4880 = vmatpush1.bf16.msra.mxu1 %v6539_v31 }
 0x283   :  { %4850 = vmatprep.subr.bf16.mxu0 %v6524_v10  ;;  %4882 = vmatprep.subr.bf16.mxu1 %v6542_v34 }
 0x286   :  { %4852 = vmatpush1.bf16.msra.mxu0 %v6533_v24  ;;  %4884 = vmatpush1.bf16.msra.mxu1 %v6549_v43 }
 0x287   :  { %4854 = vmatprep.subr.bf16.mxu0 %v6536_v27  ;;  %4886 = vmatprep.subr.bf16.mxu1 %v6554_v51 }
 0x28a   :  { %4856 = vmatpush1.bf16.msra.mxu0 %v6545_v41  ;;  %4888 = vmatpush1.bf16.msra.mxu1 %v6563_v63 }
 0x28b   :  { %4890 = vmatprep.subr.bf16.mxu0 %v6551_v47  ;;  %4922 = vmatprep.subr.bf16.mxu1 %v6569_v11  ;;  %v8070_v11 = vld [vmem:[#allocation46_spill] sm:$0xff] }
 0x28c   :  { %v8088_v47 = vld [vmem:[#allocation94_spill] sm:$0xff] }
 0x28d   :  { %1331 = vmatmul.mubr.f32.vlgmr.msra.gmra.mrb[8].mxu0 %v953_v32  ;;  %1402 = vmatmul.mubr.f32.vlgmr.msra.gmra.mrb[8].mxu1 %v953_v32  ;;  %v8064_v32 = vld [vmem:[#allocation40_spill] sm:$0xff] }
 0x28e   :  { %4892 = vmatpush1.bf16.msra.mxu0 %v6560_v61  ;;  %4924 = vmatpush1.bf16.msra.mxu1 %v6576_v23  ;;  %v8066_v23 = vld [vmem:[#allocation42_spill] sm:$0xff]  ;;  %v8069_v61 = vld [vmem:[#allocation49_spill] sm:$0xff] }
 0x28f   :  { %4894 = vmatprep.subr.bf16.mxu0 %v6566_v3  ;;  %4926 = vmatprep.subr.bf16.mxu1 %v6582_v36  ;;  %v8067_v3 = vld [vmem:[#allocation47_spill] sm:$0xff]  ;;  %v8068_v36 = vld [vmem:[#allocation44_spill] sm:$0xff] }
 0x290   :  { %1505 = vmatprep.mubr.f32.mxu0 %v7988_v40  ;;  %1576 = vmatprep.mubr.f32.mxu1 %v7988_v40 }
 0x292   :  { %4896 = vmatpush1.bf16.msra.mxu0 %v6572_v21  ;;  %4928 = vmatpush1.bf16.msra.mxu1 %v6588_v53  ;;  %v8071_v21 = vld [vmem:[#allocation50_spill] sm:$0xff]  ;;  %v8072_v53 = vld [vmem:[#allocation48_spill] sm:$0xff] }
 0x293   :  { %4898 = vmatprep.subr.bf16.mxu0 %v6579_v29  ;;  %4930 = vmatprep.subr.bf16.mxu1 %v8063_v19  ;;  %v8073_v29 = vld [vmem:[#allocation51_spill] sm:$0xff]  ;;  %v8074_v19 = vld [vmem:[#allocation52_spill] sm:$0xff] }
 0x296   :  { %4900 = vmatpush1.bf16.msra.mxu0 %v8064_v32  ;;  %4932 = vmatpush1.bf16.msra.mxu1 %v8065_v0  ;;  %v8075_v32 = vld [vmem:[#allocation53_spill] sm:$0xff]  ;;  %v8076_v0 = vld [vmem:[#allocation54_spill] sm:$0xff] }
 0x297   :  { %4902 = vmatprep.subr.bf16.mxu0 %v8066_v23  ;;  %4934 = vmatprep.subr.bf16.mxu1 %v8067_v3  ;;  %v8077_v23 = vld [vmem:[#allocation55_spill] sm:$0xff]  ;;  %v8078_v3 = vld [vmem:[#allocation56_spill] sm:$0xff] }
 0x29a   :  { %4904 = vmatpush1.bf16.msra.mxu0 %v8068_v36  ;;  %4936 = vmatpush1.bf16.msra.mxu1 %v8069_v61  ;;  %v8079_v36 = vld [vmem:[#allocation57_spill] sm:$0xff]  ;;  %v8080_v61 = vld [vmem:[#allocation58_spill] sm:$0xff] }
 0x29b   :  { %4906 = vmatprep.subr.bf16.mxu0 %v8070_v11  ;;  %4938 = vmatprep.subr.bf16.mxu1 %v8071_v21  ;;  %v8081_v11 = vld [vmem:[#allocation59_spill] sm:$0xff]  ;;  %v8082_v21 = vld [vmem:[#allocation60_spill] sm:$0xff] }
 0x29e   :  { %4908 = vmatpush1.bf16.msra.mxu0 %v8072_v53  ;;  %4940 = vmatpush1.bf16.msra.mxu1 %v8073_v29  ;;  %v8083_v53 = vld [vmem:[#allocation61_spill] sm:$0xff]  ;;  %v8084_v29 = vld [vmem:[#allocation62_spill] sm:$0xff] }
 0x29f   :  { %4910 = vmatprep.subr.bf16.mxu0 %v8074_v19  ;;  %4942 = vmatprep.subr.bf16.mxu1 %v8075_v32  ;;  %v8085_v19 = vld [vmem:[#allocation63_spill] sm:$0xff]  ;;  %v8086_v32 = vld [vmem:[#allocation64_spill] sm:$0xff] }
 0x2a2   :  { %4912 = vmatpush1.bf16.msra.mxu0 %v8076_v0  ;;  %4944 = vmatpush1.bf16.msra.mxu1 %v8077_v23  ;;  %v8087_v0 = vld [vmem:[#allocation65_spill] sm:$0xff] }
 0x2a3   :  { %4914 = vmatprep.subr.bf16.mxu0 %v8078_v3  ;;  %4946 = vmatprep.subr.bf16.mxu1 %v8079_v36 }
 0x2a6   :  { %4916 = vmatpush1.bf16.msra.mxu0 %v8080_v61  ;;  %4948 = vmatpush1.bf16.msra.mxu1 %v8081_v11 }
 0x2a7   :  { %4918 = vmatprep.subr.bf16.mxu0 %v8082_v21  ;;  %4950 = vmatprep.subr.bf16.mxu1 %v8083_v53 }
 0x2aa   :  { %4920 = vmatpush1.bf16.msra.mxu0 %v8084_v29  ;;  %4952 = vmatpush1.bf16.msra.mxu1 %v8085_v19 }
 0x2ab   :  { %4954 = vmatprep.subr.bf16.mxu0 %v8086_v32  ;;  %4986 = vmatprep.subr.bf16.mxu1 %v8087_v0 }
 0x340   :  { %v1162_v23 = vpop.f32.mrb[6].mxu0  ;;  %v1233_v3 = vpop.f32.mrb[6].mxu1 }
 0x341   :  { %v1163_v36 = vadd.f32 %v1162_v23, %v8088_v47  ;;  %v1164_v63 = vpop.f32.mrb[7].mxu0  ;;  %v1235_v61 = vpop.f32.mrb[7].mxu1  ;;  %v1234_v29 = vadd.f32 %v1233_v3, %v6859_v56  ;;  %v4326_v3 = vld [vmem:[%s7744_s0 + $0x40] sm:$0xff] }
 0x342   :  { %v1165_v11 = vadd.f32 %v1164_v63, %v6855_v59  ;;  %v1236_v19 = vadd.f32 %v1235_v61, %v6861_v44 }
 0x343   :  { %v4323_v41 = vmul.f32 -1.442695, %v1163_v36  ;;  %v4325_v53 = vmul.f32 -1.442695, %v1234_v29 }
 0x344   :  { %v4324_v21 = vmul.f32 -1.442695, %v1165_v11 }
 0x345   :  { %6120 = vpow2.f32 %v4323_v41 }
 0x346   :  { %6122 = vpow2.f32 %v4324_v21  ;;  %v4327_v21 = vld [vmem:[%s7744_s0 + $0x48] sm:$0xff] }
 0x347   :  { %6124 = vtanh.f32 %v1236_v19 }
 0x348   :  { %6126 = vpow2.f32 %v4325_v53 }
 0x34f   :  { %v6121_v32 = vpop.eup %6120 }
 0x350   :  { %v1251_v51 = vadd.f32 1.0, %v6121_v32  ;;  %v6123_v0 = vpop.eup %6122 }
 0x351   :  { %v1252_v23 = vadd.f32 1.0, %v6123_v0  ;;  %v6125_v47 = vpop.eup %6124 }
 0x352   :  { %6128 = vrcp.f32 %v1251_v51  ;;  %v6127_v27 = vpop.eup %6126 }
 0x353   :  { %6130 = vrcp.f32 %v1252_v23  ;;  %v1253_v41 = vadd.f32 1.0, %v6127_v27 }
 0x355   :  { %6132 = vrcp.f32 %v1253_v41 }
 0x35c   :  { %v6129_v63 = vpop.eup %6128 }
 0x35d   :  { %v1262_v36 = vmul.f32 %v6129_v63, %v6125_v47  ;;  %v6131_v11 = vpop.eup %6130 }
 0x35e   :  { %v1261_v61 = vmul.f32 %v6131_v11, %v6874_v57  ;;  %v4328_v57 = vld [vmem:[%s7744_s0 + $0x50] sm:$0xff] }
 0x35f   :  { %v6133_v11 = vpop.eup %6132 }
 0x360   :  { %v1332_v29 = vpop.f32.mrb[8].mxu0  ;;  %v1403_v51 = vpop.f32.mrb[8].mxu1  ;;  %v7000_v53 = vadd.f32 %v1262_v36, %v1261_v61  ;;  %v4329_v36 = vld [vmem:[%s7744_s0 + $0x58] sm:$0xff] }
 0x361   :  { %v1413_v19 = vadd.f32 %v4326_v3, %v1332_v29  ;;  %v1334_v32 = vpop.f32.mrb[9].mxu0  ;;  %v1405_v0 = vpop.f32.mrb[9].mxu1  ;;  %v1415_v63 = vadd.f32 %v4328_v57, %v1403_v51  ;;  %v8093_v57 = vld [vmem:[#allocation72_spill] sm:$0xff] }
 0x362   :  { %v1414_v47 = vadd.f32 %v4327_v21, %v1334_v32  ;;  %6134 = vtanh.f32 %v7000_v53  ;;  %v1416_v3 = vadd.f32 %v4329_v36, %v1405_v0  ;;  %v8091_v0 = vld [vmem:[#allocation70_spill] sm:$0xff] }
 0x363   :  { %v4330_v27 = vmul.f32 -1.442695, %v1413_v19  ;;  %v4332_v41 = vmul.f32 -1.442695, %v1415_v63  ;;  %v8094_v63 = vld [vmem:[#allocation73_spill] sm:$0xff]  ;;  %v8095_v36 = vld [vmem:[#allocation74_spill] sm:$0xff] }
 0x364   :  { %v4331_v23 = vmul.f32 -1.442695, %v1414_v47  ;;  %v8089_v47 = vld [vmem:[#allocation68_spill] sm:$0xff] }
 0x365   :  { %6136 = vpow2.f32 %v4330_v27  ;;  %v8090_v27 = vld [vmem:[#allocation69_spill] sm:$0xff] }
 0x366   :  { %6138 = vpow2.f32 %v4331_v23  ;;  %v8092_v23 = vld [vmem:[#allocation71_spill] sm:$0xff] }
 0x367   :  { %6140 = vtanh.f32 %v1416_v3 }
 0x368   :  { %6142 = vpow2.f32 %v4332_v41  ;;  %v8098_v41 = vld [vmem:[#allocation77_spill] sm:$0xff] }
 0x36c   :  { %v6135_v61 = vpop.eup %6134 }
 0x36d   :  { %v1265_v21 = vmul.f32 %v6135_v61, %v6133_v11  ;;  %v8096_v11 = vld [vmem:[#allocation75_spill] sm:$0xff]  ;;  %v8097_v61 = vld [vmem:[#allocation76_spill] sm:$0xff] }
 0x36f   :  { %v6137_v29 = vpop.eup %6136  ;;  %1506 = vmatmul.mubr.f32.vlgmr.msra.gmra.mrb[10].mxu0 %v1265_v21  ;;  %1577 = vmatmul.mubr.f32.vlgmr.msra.gmra.mrb[10].mxu1 %v1265_v21 }
 0x370   :  { %v1426_v32 = vadd.f32 1.0, %v6137_v29  ;;  %v6139_v19 = vpop.eup %6138  ;;  %4956 = vmatpush1.bf16.msra.mxu0 %v8034_v49  ;;  %4988 = vmatpush1.bf16.msra.mxu1 %v8035_v22 }
 0x371   :  { %v1427_v51 = vadd.f32 1.0, %v6139_v19  ;;  %4958 = vmatprep.subr.bf16.mxu0 %v8089_v47  ;;  %4990 = vmatprep.subr.bf16.mxu1 %v8090_v27  ;;  %v6141_v3 = vpop.eup %6140 }
 0x372   :  { %6144 = vrcp.f32 %v1426_v32  ;;  %1647 = vmatprep.mubr.f32.mxu0 %v7988_v40  ;;  %1718 = vmatprep.mubr.f32.mxu1 %v7988_v40  ;;  %v6143_v21 = vpop.eup %6142 }
 0x373   :  { %6146 = vrcp.f32 %v1427_v51  ;;  %v1428_v51 = vadd.f32 1.0, %v6143_v21  ;;  %v8102_v21 = vld [vmem:[#allocation86_spill] sm:$0xff] }
 0x374   :  { %4960 = vmatpush1.bf16.msra.mxu0 %v8091_v0  ;;  %4992 = vmatpush1.bf16.msra.mxu1 %v8092_v23 }
 0x375   :  { %4962 = vmatprep.subr.bf16.mxu0 %v8093_v57  ;;  %4994 = vmatprep.subr.bf16.mxu1 %v8094_v63  ;;  %v8099_v57 = vld [vmem:[#allocation80_spill] sm:$0xff]  ;;  %6148 = vrcp.f32 %v1428_v51  ;;  %v8106_v51 = vld [vmem:[#allocation31_spill] sm:$0xff] }
 0x378   :  { %4964 = vmatpush1.bf16.msra.mxu0 %v8095_v36  ;;  %4996 = vmatpush1.bf16.msra.mxu1 %v8096_v11 }
 0x379   :  { %4966 = vmatprep.subr.bf16.mxu0 %v8097_v61  ;;  %4998 = vmatprep.subr.bf16.mxu1 %v8098_v41 }
 0x37c   :  { %v6145_v29 = vpop.eup %6144  ;;  %4968 = vmatpush1.bf16.msra.mxu0 %v8046_v38  ;;  %5000 = vmatpush1.bf16.msra.mxu1 %v8047_v60 }
 0x37d   :  { %v1437_v32 = vmul.f32 %v6145_v29, %v6141_v3  ;;  %v6147_v19 = vpop.eup %6146  ;;  %4970 = vmatprep.subr.bf16.mxu0 %v8099_v57  ;;  %5002 = vmatprep.subr.bf16.mxu1 %v8049_v54  ;;  %v8100_v3 = vld [vmem:[#allocation84_spill] sm:$0xff]  ;;  %v8101_v29 = vld [vmem:[#allocation85_spill] sm:$0xff]  ;;  %v8103_v57 = vld [vmem:[#allocation87_spill] sm:$0xff] }
 0x37e   :  { %v1436_v11 = vmul.f32 %v6147_v19, %v6902_v13  ;;  %v8104_v54 = vld [vmem:[#allocation88_spill] sm:$0xff]  ;;  %v8105_v19 = vld [vmem:[#allocation25_spill] sm:$0xff] }
 0x37f   :  { %v6149_v13 = vpop.eup %6148 }
 0x380   :  { %v7028_v36 = vadd.f32 %v1437_v32, %v1436_v11  ;;  %4972 = vmatpush1.bf16.msra.mxu0 %v8050_v50  ;;  %5004 = vmatpush1.bf16.msra.mxu1 %v8051_v2 }
 0x381   :  { %4974 = vmatprep.subr.bf16.mxu0 %v8100_v3  ;;  %5006 = vmatprep.subr.bf16.mxu1 %v8101_v29 }
 0x382   :  { %6150 = vtanh.f32 %v7028_v36 }
 0x384   :  { %4976 = vmatpush1.bf16.msra.mxu0 %v8102_v21  ;;  %5008 = vmatpush1.bf16.msra.mxu1 %v8103_v57 }
 0x385   :  { %4978 = vmatprep.subr.bf16.mxu0 %v8104_v54  ;;  %5010 = vmatprep.subr.bf16.mxu1 %v6739_v6 }
 0x388   :  { %4980 = vmatpush1.bf16.msra.mxu0 %v6741_v39  ;;  %5012 = vmatpush1.bf16.msra.mxu1 %v8056_v4 }
 0x389   :  { %4982 = vmatprep.subr.bf16.mxu0 %v8057_v35  ;;  %5014 = vmatprep.subr.bf16.mxu1 %v8058_v5 }
 0x38c   :  { %v6151_v11 = vpop.eup %6150  ;;  %4984 = vmatpush1.bf16.msra.mxu0 %v8059_v12  ;;  %5016 = vmatpush1.bf16.msra.mxu1 %v8060_v20 }
 0x38d   :  { %5018 = vmatprep.subr.bf16.mxu0 %v8061_v16  ;;  %5050 = vmatprep.subr.bf16.mxu1 %v8062_v28  ;;  %v1440_v32 = vmul.f32 %v6151_v11, %v6149_v13  ;;  %v8107_v13 = vld [vmem:[#allocation28_spill] sm:$0xff]  ;;  %v8108_v11 = vld [vmem:[#allocation33_spill] sm:$0xff] }
 0x38f   :  { %1648 = vmatmul.mubr.f32.vlgmr.msra.gmra.mrb[10].mxu0 %v1440_v32  ;;  %1719 = vmatmul.mubr.f32.vlgmr.msra.gmra.mrb[10].mxu1 %v1440_v32 }
 0x390   :  { %5020 = vmatpush1.bf16.msra.mxu0 %v6466_v8  ;;  %5052 = vmatpush1.bf16.msra.mxu1 %v6479_v25 }
 0x391   :  { %5022 = vmatprep.subr.bf16.mxu0 %v6468_v9  ;;  %5054 = vmatprep.subr.bf16.mxu1 %v6489_v33 }
 0x392   :  { %1817 = vmatprep.mubr.f32.mxu0 %v7988_v40  ;;  %1888 = vmatprep.mubr.f32.mxu1 %v7988_v40 }
 0x394   :  { %5024 = vmatpush1.bf16.msra.mxu0 %v6472_v14  ;;  %5056 = vmatpush1.bf16.msra.mxu1 %v6491_v37 }
 0x395   :  { %5026 = vmatprep.subr.bf16.mxu0 %v6475_v17  ;;  %5058 = vmatprep.subr.bf16.mxu1 %v6497_v45 }
 0x398   :  { %5028 = vmatpush1.bf16.msra.mxu0 %v6482_v26  ;;  %5060 = vmatpush1.bf16.msra.mxu1 %v6503_v48 }
 0x399   :  { %5030 = vmatprep.subr.bf16.mxu0 %v6486_v30  ;;  %5062 = vmatprep.subr.bf16.mxu1 %v6506_v52 }
 0x39c   :  { %5032 = vmatpush1.bf16.msra.mxu0 %v6495_v42  ;;  %5064 = vmatpush1.bf16.msra.mxu1 %v6515_v62 }
 0x39d   :  { %5034 = vmatprep.subr.bf16.mxu0 %v6500_v46  ;;  %5066 = vmatprep.subr.bf16.mxu1 %v6518_v1 }
 0x3a0   :  { %5036 = vmatpush1.bf16.msra.mxu0 %v6509_v55  ;;  %5068 = vmatpush1.bf16.msra.mxu1 %v6527_v15 }
 0x3a1   :  { %5038 = vmatprep.subr.bf16.mxu0 %v6512_v58  ;;  %5070 = vmatprep.subr.bf16.mxu1 %v6530_v18  ;;  %v8109_v18 = vld [vmem:[#allocation30_spill] sm:$0xff] }
 0x3a4   :  { %5040 = vmatpush1.bf16.msra.mxu0 %v6521_v7  ;;  %5072 = vmatpush1.bf16.msra.mxu1 %v6539_v31  ;;  %v8110_v7 = vld [vmem:[#allocation35_spill] sm:$0xff]  ;;  %v8143_v31 = vld [vmem:[#allocation94_spill] sm:$0xff] }
 0x3a5   :  { %5042 = vmatprep.subr.bf16.mxu0 %v6524_v10  ;;  %5074 = vmatprep.subr.bf16.mxu1 %v6542_v34  ;;  %v8111_v10 = vld [vmem:[#allocation32_spill] sm:$0xff]  ;;  %v8112_v34 = vld [vmem:[#allocation37_spill] sm:$0xff] }
 0x3a8   :  { %5044 = vmatpush1.bf16.msra.mxu0 %v6533_v24  ;;  %5076 = vmatpush1.bf16.msra.mxu1 %v6549_v43  ;;  %v8113_v24 = vld [vmem:[#allocation34_spill] sm:$0xff]  ;;  %v8114_v43 = vld [vmem:[#allocation39_spill] sm:$0xff] }
 0x3a9   :  { %5046 = vmatprep.subr.bf16.mxu0 %v8105_v19  ;;  %5078 = vmatprep.subr.bf16.mxu1 %v8106_v51  ;;  %v8124_v51 = vld [vmem:[#allocation49_spill] sm:$0xff]  ;;  %v8125_v19 = vld [vmem:[#allocation46_spill] sm:$0xff] }
 0x3ac   :  { %5048 = vmatpush1.bf16.msra.mxu0 %v8107_v13  ;;  %5080 = vmatpush1.bf16.msra.mxu1 %v8108_v11  ;;  %v8115_v13 = vld [vmem:[#allocation36_spill] sm:$0xff]  ;;  %v8116_v11 = vld [vmem:[#allocation41_spill] sm:$0xff] }
 0x3ad   :  { %5082 = vmatprep.subr.bf16.mxu0 %v8109_v18  ;;  %5114 = vmatprep.subr.bf16.mxu1 %v8110_v7  ;;  %v8117_v18 = vld [vmem:[#allocation38_spill] sm:$0xff]  ;;  %v8118_v7 = vld [vmem:[#allocation43_spill] sm:$0xff] }
 0x3af   :  { %1818 = vmatmul.mubr.f32.vlgmr.msra.gmra.mrb[12].mxu0 %v1440_v32  ;;  %1889 = vmatmul.mubr.f32.vlgmr.msra.gmra.mrb[12].mxu1 %v1440_v32  ;;  %v8119_v32 = vld [vmem:[#allocation40_spill] sm:$0xff] }
 0x3b0   :  { %5084 = vmatpush1.bf16.msra.mxu0 %v8111_v10  ;;  %5116 = vmatpush1.bf16.msra.mxu1 %v8112_v34  ;;  %v8120_v10 = vld [vmem:[#allocation45_spill] sm:$0xff]  ;;  %v8121_v34 = vld [vmem:[#allocation42_spill] sm:$0xff] }
 0x3b1   :  { %5086 = vmatprep.subr.bf16.mxu0 %v8113_v24  ;;  %5118 = vmatprep.subr.bf16.mxu1 %v8114_v43  ;;  %v8122_v24 = vld [vmem:[#allocation47_spill] sm:$0xff]  ;;  %v8123_v43 = vld [vmem:[#allocation44_spill] sm:$0xff] }
 0x3b2   :  { %1992 = vmatprep.mubr.f32.mxu0 %v7988_v40  ;;  %2063 = vmatprep.mubr.f32.mxu1 %v7988_v40 }
 0x3b4   :  { %5088 = vmatpush1.bf16.msra.mxu0 %v8115_v13  ;;  %5120 = vmatpush1.bf16.msra.mxu1 %v8116_v11  ;;  %v8126_v13 = vld [vmem:[#allocation50_spill] sm:$0xff]  ;;  %v8127_v11 = vld [vmem:[#allocation48_spill] sm:$0xff] }
 0x3b5   :  { %5090 = vmatprep.subr.bf16.mxu0 %v8117_v18  ;;  %5122 = vmatprep.subr.bf16.mxu1 %v8118_v7  ;;  %v8128_v18 = vld [vmem:[#allocation51_spill] sm:$0xff]  ;;  %v8129_v7 = vld [vmem:[#allocation52_spill] sm:$0xff] }
 0x3b8   :  { %5092 = vmatpush1.bf16.msra.mxu0 %v8119_v32  ;;  %5124 = vmatpush1.bf16.msra.mxu1 %v8120_v10  ;;  %v8130_v32 = vld [vmem:[#allocation53_spill] sm:$0xff]  ;;  %v8131_v10 = vld [vmem:[#allocation54_spill] sm:$0xff] }
 0x3b9   :  { %5094 = vmatprep.subr.bf16.mxu0 %v8121_v34  ;;  %5126 = vmatprep.subr.bf16.mxu1 %v8122_v24  ;;  %v8132_v34 = vld [vmem:[#allocation55_spill] sm:$0xff]  ;;  %v8133_v24 = vld [vmem:[#allocation56_spill] sm:$0xff] }
 0x3bc   :  { %5096 = vmatpush1.bf16.msra.mxu0 %v8123_v43  ;;  %5128 = vmatpush1.bf16.msra.mxu1 %v8124_v51  ;;  %v8134_v43 = vld [vmem:[#allocation57_spill] sm:$0xff]  ;;  %v8135_v51 = vld [vmem:[#allocation58_spill] sm:$0xff] }
 0x3bd   :  { %5098 = vmatprep.subr.bf16.mxu0 %v8125_v19  ;;  %5130 = vmatprep.subr.bf16.mxu1 %v8126_v13  ;;  %v8136_v19 = vld [vmem:[#allocation59_spill] sm:$0xff]  ;;  %v8137_v13 = vld [vmem:[#allocation60_spill] sm:$0xff] }
 0x3c0   :  { %5100 = vmatpush1.bf16.msra.mxu0 %v8127_v11  ;;  %5132 = vmatpush1.bf16.msra.mxu1 %v8128_v18  ;;  %v8138_v11 = vld [vmem:[#allocation61_spill] sm:$0xff]  ;;  %v8139_v18 = vld [vmem:[#allocation62_spill] sm:$0xff] }
 0x3c1   :  { %5102 = vmatprep.subr.bf16.mxu0 %v8129_v7  ;;  %5134 = vmatprep.subr.bf16.mxu1 %v8130_v32  ;;  %v8140_v7 = vld [vmem:[#allocation63_spill] sm:$0xff]  ;;  %v8141_v32 = vld [vmem:[#allocation64_spill] sm:$0xff] }
 0x3c4   :  { %5104 = vmatpush1.bf16.msra.mxu0 %v8131_v10  ;;  %5136 = vmatpush1.bf16.msra.mxu1 %v8132_v34  ;;  %v8142_v10 = vld [vmem:[#allocation65_spill] sm:$0xff] }
 0x3c5   :  { %5106 = vmatprep.subr.bf16.mxu0 %v8133_v24  ;;  %5138 = vmatprep.subr.bf16.mxu1 %v8134_v43 }
 0x3c8   :  { %5108 = vmatpush1.bf16.msra.mxu0 %v8135_v51  ;;  %5140 = vmatpush1.bf16.msra.mxu1 %v8136_v19 }
 0x3c9   :  { %5110 = vmatprep.subr.bf16.mxu0 %v8137_v13  ;;  %5142 = vmatprep.subr.bf16.mxu1 %v8138_v11 }
 0x3cc   :  { %5112 = vmatpush1.bf16.msra.mxu0 %v8139_v18  ;;  %5144 = vmatpush1.bf16.msra.mxu1 %v8140_v7 }
 0x3cd   :  { %5146 = vmatprep.subr.bf16.mxu0 %v8141_v32  ;;  %5178 = vmatprep.subr.bf16.mxu1 %v8142_v10 }
 0x462   :  { %v1649_v34 = vpop.f32.mrb[10].mxu0  ;;  %v1720_v24 = vpop.f32.mrb[10].mxu1 }
 0x463   :  { %v1650_v43 = vadd.f32 %v1649_v34, %v8143_v31  ;;  %v1651_v58 = vpop.f32.mrb[11].mxu0  ;;  %v1722_v51 = vpop.f32.mrb[11].mxu1  ;;  %v1721_v18 = vadd.f32 %v1720_v24, %v6859_v56  ;;  %v4336_v24 = vld [vmem:[%s7744_s0 + $0x60] sm:$0xff] }
 0x464   :  { %v1652_v19 = vadd.f32 %v1651_v58, %v6855_v59  ;;  %v1723_v7 = vadd.f32 %v1722_v51, %v6861_v44 }
 0x465   :  { %v4333_v15 = vmul.f32 -1.442695, %v1650_v43  ;;  %v4335_v11 = vmul.f32 -1.442695, %v1721_v18 }
 0x466   :  { %v4334_v13 = vmul.f32 -1.442695, %v1652_v19 }
 0x467   :  { %6152 = vpow2.f32 %v4333_v15 }
 0x468   :  { %6154 = vpow2.f32 %v4334_v13 }
 0x469   :  { %6156 = vtanh.f32 %v1723_v7  ;;  %v4337_v7 = vld [vmem:[%s7744_s0 + $0x68] sm:$0xff] }
 0x46a   :  { %6158 = vpow2.f32 %v4335_v11 }
 0x471   :  { %v6153_v32 = vpop.eup %6152 }
 0x472   :  { %v1738_v55 = vadd.f32 1.0, %v6153_v32  ;;  %v6155_v10 = vpop.eup %6154 }
 0x473   :  { %v1739_v34 = vadd.f32 1.0, %v6155_v10  ;;  %v6157_v31 = vpop.eup %6156 }
 0x474   :  { %6160 = vrcp.f32 %v1738_v55  ;;  %v6159_v1 = vpop.eup %6158 }
 0x475   :  { %6162 = vrcp.f32 %v1739_v34  ;;  %v1740_v15 = vadd.f32 1.0, %v6159_v1 }
 0x477   :  { %6164 = vrcp.f32 %v1740_v15 }
 0x47e   :  { %v6161_v58 = vpop.eup %6160 }
 0x47f   :  { %v1749_v43 = vmul.f32 %v6161_v58, %v6157_v31  ;;  %v6163_v19 = vpop.eup %6162 }
 0x480   :  { %v1748_v18 = vmul.f32 %v6163_v19, %v7000_v53  ;;  %v4338_v53 = vld [vmem:[%s7744_s0 + $0x70] sm:$0xff] }
 0x481   :  { %v6165_v19 = vpop.eup %6164 }
 0x482   :  { %v1819_v51 = vpop.f32.mrb[12].mxu0  ;;  %v1890_v55 = vpop.f32.mrb[12].mxu1  ;;  %v7126_v10 = vadd.f32 %v1749_v43, %v1748_v18  ;;  %v4339_v43 = vld [vmem:[%s7744_s0 + $0x78] sm:$0xff] }
 0x483   :  { %v1900_v13 = vadd.f32 %v4336_v24, %v1819_v51  ;;  %v1821_v11 = vpop.f32.mrb[13].mxu0  ;;  %v1892_v32 = vpop.f32.mrb[13].mxu1  ;;  %v1902_v58 = vadd.f32 %v4338_v53, %v1890_v55 }
 0x484   :  { %v1901_v31 = vadd.f32 %v4337_v7, %v1821_v11  ;;  %6166 = vtanh.f32 %v7126_v10  ;;  %v1903_v24 = vadd.f32 %v4339_v43, %v1892_v32  ;;  %v8144_v32 = vld [vmem:[#allocation72_spill] sm:$0xff] }
 0x485   :  { %v4340_v1 = vmul.f32 -1.442695, %v1900_v13  ;;  %v4342_v15 = vmul.f32 -1.442695, %v1902_v58 }
 0x486   :  { %v4341_v34 = vmul.f32 -1.442695, %v1901_v31  ;;  %v8145_v31 = vld [vmem:[#allocation74_spill] sm:$0xff] }
 0x487   :  { %6168 = vpow2.f32 %v4340_v1  ;;  %v8146_v1 = vld [vmem:[#allocation75_spill] sm:$0xff] }
 0x488   :  { %6170 = vpow2.f32 %v4341_v34 }
 0x489   :  { %6172 = vtanh.f32 %v1903_v24 }
 0x48a   :  { %6174 = vpow2.f32 %v4342_v15  ;;  %v8148_v15 = vld [vmem:[#allocation81_spill] sm:$0xff] }
 0x48e   :  { %v6167_v18 = vpop.eup %6166 }
 0x48f   :  { %v1752_v7 = vmul.f32 %v6167_v18, %v6165_v19  ;;  %v8147_v18 = vld [vmem:[#allocation80_spill] sm:$0xff] }
 0x491   :  { %v6169_v51 = vpop.eup %6168  ;;  %1993 = vmatmul.mubr.f32.vlgmr.msra.gmra.mrb[14].mxu0 %v1752_v7  ;;  %2064 = vmatmul.mubr.f32.vlgmr.msra.gmra.mrb[14].mxu1 %v1752_v7 }
 0x492   :  { %v1913_v11 = vadd.f32 1.0, %v6169_v51  ;;  %v6171_v13 = vpop.eup %6170  ;;  %5148 = vmatpush1.bf16.msra.mxu0 %v8034_v49  ;;  %5180 = vmatpush1.bf16.msra.mxu1 %v8035_v22 }
 0x493   :  { %v1914_v55 = vadd.f32 1.0, %v6171_v13  ;;  %5150 = vmatprep.subr.bf16.mxu0 %v8089_v47  ;;  %5182 = vmatprep.subr.bf16.mxu1 %v8090_v27  ;;  %v6173_v34 = vpop.eup %6172 }
 0x494   :  { %6176 = vrcp.f32 %v1913_v11  ;;  %2134 = vmatprep.mubr.f32.mxu0 %v7988_v40  ;;  %2205 = vmatprep.mubr.f32.mxu1 %v7988_v40  ;;  %v6175_v53 = vpop.eup %6174 }
 0x495   :  { %6178 = vrcp.f32 %v1914_v55  ;;  %v1915_v24 = vadd.f32 1.0, %v6175_v53  ;;  %v8149_v55 = vld [vmem:[#allocation19_spill] sm:$0xff]  ;;  %v8151_v53 = vld [vmem:[#allocation22_spill] sm:$0xff] }
 0x496   :  { %5152 = vmatpush1.bf16.msra.mxu0 %v8091_v0  ;;  %5184 = vmatpush1.bf16.msra.mxu1 %v8092_v23 }
 0x497   :  { %5154 = vmatprep.subr.bf16.mxu0 %v8144_v32  ;;  %5186 = vmatprep.subr.bf16.mxu1 %v8094_v63  ;;  %6180 = vrcp.f32 %v1915_v24  ;;  %v8155_v24 = vld [vmem:[#allocation26_spill] sm:$0xff] }
 0x49a   :  { %5156 = vmatpush1.bf16.msra.mxu0 %v8145_v31  ;;  %5188 = vmatpush1.bf16.msra.mxu1 %v8146_v1 }
 0x49b   :  { %5158 = vmatprep.subr.bf16.mxu0 %v8097_v61  ;;  %5190 = vmatprep.subr.bf16.mxu1 %v8098_v41 }
 0x49e   :  { %v6177_v58 = vpop.eup %6176  ;;  %5160 = vmatpush1.bf16.msra.mxu0 %v8046_v38  ;;  %5192 = vmatpush1.bf16.msra.mxu1 %v8047_v60 }
 0x49f   :  { %v1924_v43 = vmul.f32 %v6177_v58, %v6173_v34  ;;  %v6179_v19 = vpop.eup %6178  ;;  %5162 = vmatprep.subr.bf16.mxu0 %v8147_v18  ;;  %5194 = vmatprep.subr.bf16.mxu1 %v8148_v15  ;;  %v8150_v34 = vld [vmem:[#allocation16_spill] sm:$0xff]  ;;  %v8152_v58 = vld [vmem:[#allocation17_spill] sm:$0xff] }
 0x4a0   :  { %v1923_v7 = vmul.f32 %v6179_v19, %v7028_v36  ;;  %v8154_v19 = vld [vmem:[#allocation20_spill] sm:$0xff] }
 0x4a1   :  { %v6181_v36 = vpop.eup %6180 }
 0x4a2   :  { %v7154_v51 = vadd.f32 %v1924_v43, %v1923_v7  ;;  %5164 = vmatpush1.bf16.msra.mxu0 %v8050_v50  ;;  %5196 = vmatpush1.bf16.msra.mxu1 %v8051_v2  ;;  %v8153_v43 = vld [vmem:[#allocation23_spill] sm:$0xff]  ;;  %v8156_v7 = vld [vmem:[#allocation21_spill] sm:$0xff] }
 0x4a3   :  { %5166 = vmatprep.subr.bf16.mxu0 %v8100_v3  ;;  %5198 = vmatprep.subr.bf16.mxu1 %v8101_v29 }
 0x4a4   :  { %6182 = vtanh.f32 %v7154_v51 }
 0x4a6   :  { %5168 = vmatpush1.bf16.msra.mxu0 %v8102_v21  ;;  %5200 = vmatpush1.bf16.msra.mxu1 %v8103_v57 }
 0x4a7   :  { %5170 = vmatprep.subr.bf16.mxu0 %v8104_v54  ;;  %5202 = vmatprep.subr.bf16.mxu1 %v6739_v6 }
 0x4aa   :  { %5172 = vmatpush1.bf16.msra.mxu0 %v6741_v39  ;;  %5204 = vmatpush1.bf16.msra.mxu1 %v8056_v4 }
 0x4ab   :  { %5174 = vmatprep.subr.bf16.mxu0 %v8057_v35  ;;  %5206 = vmatprep.subr.bf16.mxu1 %v8058_v5 }
 0x4ae   :  { %v6183_v11 = vpop.eup %6182  ;;  %5176 = vmatpush1.bf16.msra.mxu0 %v8059_v12  ;;  %5208 = vmatpush1.bf16.msra.mxu1 %v8060_v20 }
 0x4af   :  { %v1927_v13 = vmul.f32 %v6183_v11, %v6181_v36  ;;  %5210 = vmatprep.subr.bf16.mxu0 %v8061_v16  ;;  %5242 = vmatprep.subr.bf16.mxu1 %v8062_v28  ;;  %v8157_v36 = vld [vmem:[#allocation27_spill] sm:$0xff]  ;;  %v8158_v11 = vld [vmem:[#allocation24_spill] sm:$0xff] }
 0x4b1   :  { %2135 = vmatmul.mubr.f32.vlgmr.msra.gmra.mrb[14].mxu0 %v1927_v13  ;;  %2206 = vmatmul.mubr.f32.vlgmr.msra.gmra.mrb[14].mxu1 %v1927_v13 }
 0x4b2   :  { %5212 = vmatpush1.bf16.msra.mxu0 %v6466_v8  ;;  %5244 = vmatpush1.bf16.msra.mxu1 %v6479_v25 }
 0x4b3   :  { %5214 = vmatprep.subr.bf16.mxu0 %v6468_v9  ;;  %5246 = vmatprep.subr.bf16.mxu1 %v6489_v33 }
 0x4b4   :  { %2304 = vmatprep.mubr.f32.mxu0 %v7988_v40  ;;  %2375 = vmatprep.mubr.f32.mxu1 %v7988_v40 }
 0x4b6   :  { %5216 = vmatpush1.bf16.msra.mxu0 %v6472_v14  ;;  %5248 = vmatpush1.bf16.msra.mxu1 %v6491_v37 }
 0x4b7   :  { %5218 = vmatprep.subr.bf16.mxu0 %v6475_v17  ;;  %5250 = vmatprep.subr.bf16.mxu1 %v6497_v45 }
 0x4ba   :  { %5220 = vmatpush1.bf16.msra.mxu0 %v6482_v26  ;;  %5252 = vmatpush1.bf16.msra.mxu1 %v6503_v48 }
 0x4bb   :  { %5222 = vmatprep.subr.bf16.mxu0 %v6486_v30  ;;  %5254 = vmatprep.subr.bf16.mxu1 %v6506_v52 }
 0x4be   :  { %5224 = vmatpush1.bf16.msra.mxu0 %v6495_v42  ;;  %5256 = vmatpush1.bf16.msra.mxu1 %v6515_v62 }
 0x4bf   :  { %5226 = vmatprep.subr.bf16.mxu0 %v6500_v46  ;;  %5258 = vmatprep.subr.bf16.mxu1 %v8149_v55  ;;  %v8159_v46 = vld [vmem:[#allocation29_spill] sm:$0xff] }
 0x4c0   :  { %v8160_v55 = vld [vmem:[#allocation25_spill] sm:$0xff] }
 0x4c2   :  { %5228 = vmatpush1.bf16.msra.mxu0 %v8150_v34  ;;  %5260 = vmatpush1.bf16.msra.mxu1 %v8151_v53  ;;  %v8161_v34 = vld [vmem:[#allocation31_spill] sm:$0xff]  ;;  %v8162_v53 = vld [vmem:[#allocation28_spill] sm:$0xff] }
 0x4c3   :  { %5230 = vmatprep.subr.bf16.mxu0 %v8152_v58  ;;  %5262 = vmatprep.subr.bf16.mxu1 %v8153_v43  ;;  %v8163_v58 = vld [vmem:[#allocation33_spill] sm:$0xff]  ;;  %v8164_v43 = vld [vmem:[#allocation30_spill] sm:$0xff] }
 0x4c6   :  { %5232 = vmatpush1.bf16.msra.mxu0 %v8154_v19  ;;  %5264 = vmatpush1.bf16.msra.mxu1 %v8155_v24  ;;  %v8165_v19 = vld [vmem:[#allocation35_spill] sm:$0xff]  ;;  %v8198_v24 = vld [vmem:[#allocation94_spill] sm:$0xff] }
 0x4c7   :  { %5234 = vmatprep.subr.bf16.mxu0 %v8156_v7  ;;  %5266 = vmatprep.subr.bf16.mxu1 %v8157_v36  ;;  %v8166_v7 = vld [vmem:[#allocation32_spill] sm:$0xff]  ;;  %v8167_v36 = vld [vmem:[#allocation37_spill] sm:$0xff] }
 0x4ca   :  { %5236 = vmatpush1.bf16.msra.mxu0 %v8158_v11  ;;  %5268 = vmatpush1.bf16.msra.mxu1 %v8159_v46  ;;  %v8168_v11 = vld [vmem:[#allocation34_spill] sm:$0xff]  ;;  %v8169_v46 = vld [vmem:[#allocation39_spill] sm:$0xff] }
 0x4cb   :  { %5238 = vmatprep.subr.bf16.mxu0 %v8160_v55  ;;  %5270 = vmatprep.subr.bf16.mxu1 %v8161_v34  ;;  %v8179_v34 = vld [vmem:[#allocation49_spill] sm:$0xff]  ;;  %v8180_v55 = vld [vmem:[#allocation46_spill] sm:$0xff] }
 0x4ce   :  { %5240 = vmatpush1.bf16.msra.mxu0 %v8162_v53  ;;  %5272 = vmatpush1.bf16.msra.mxu1 %v8163_v58  ;;  %v8170_v53 = vld [vmem:[#allocation36_spill] sm:$0xff]  ;;  %v8171_v58 = vld [vmem:[#allocation41_spill] sm:$0xff] }
 0x4cf   :  { %5274 = vmatprep.subr.bf16.mxu0 %v8164_v43  ;;  %5306 = vmatprep.subr.bf16.mxu1 %v8165_v19  ;;  %v8172_v43 = vld [vmem:[#allocation38_spill] sm:$0xff]  ;;  %v8173_v19 = vld [vmem:[#allocation43_spill] sm:$0xff] }
 0x4d1   :  { %2305 = vmatmul.mubr.f32.vlgmr.msra.gmra.mrb[16].mxu0 %v1927_v13  ;;  %2376 = vmatmul.mubr.f32.vlgmr.msra.gmra.mrb[16].mxu1 %v1927_v13  ;;  %v8174_v13 = vld [vmem:[#allocation40_spill] sm:$0xff] }
 0x4d2   :  { %5276 = vmatpush1.bf16.msra.mxu0 %v8166_v7  ;;  %5308 = vmatpush1.bf16.msra.mxu1 %v8167_v36  ;;  %v8175_v7 = vld [vmem:[#allocation45_spill] sm:$0xff]  ;;  %v8176_v36 = vld [vmem:[#allocation42_spill] sm:$0xff] }
 0x4d3   :  { %5278 = vmatprep.subr.bf16.mxu0 %v8168_v11  ;;  %5310 = vmatprep.subr.bf16.mxu1 %v8169_v46  ;;  %v8177_v11 = vld [vmem:[#allocation47_spill] sm:$0xff]  ;;  %v8178_v46 = vld [vmem:[#allocation44_spill] sm:$0xff] }
 0x4d4   :  { %2479 = vmatprep.mubr.f32.mxu0 %v7988_v40  ;;  %2550 = vmatprep.mubr.f32.mxu1 %v7988_v40 }
 0x4d6   :  { %5280 = vmatpush1.bf16.msra.mxu0 %v8170_v53  ;;  %5312 = vmatpush1.bf16.msra.mxu1 %v8171_v58  ;;  %v8181_v53 = vld [vmem:[#allocation50_spill] sm:$0xff]  ;;  %v8182_v58 = vld [vmem:[#allocation48_spill] sm:$0xff] }
 0x4d7   :  { %5282 = vmatprep.subr.bf16.mxu0 %v8172_v43  ;;  %5314 = vmatprep.subr.bf16.mxu1 %v8173_v19  ;;  %v8183_v43 = vld [vmem:[#allocation51_spill] sm:$0xff]  ;;  %v8184_v19 = vld [vmem:[#allocation52_spill] sm:$0xff] }
 0x4da   :  { %5284 = vmatpush1.bf16.msra.mxu0 %v8174_v13  ;;  %5316 = vmatpush1.bf16.msra.mxu1 %v8175_v7  ;;  %v8185_v13 = vld [vmem:[#allocation53_spill] sm:$0xff]  ;;  %v8186_v7 = vld [vmem:[#allocation54_spill] sm:$0xff] }
 0x4db   :  { %5286 = vmatprep.subr.bf16.mxu0 %v8176_v36  ;;  %5318 = vmatprep.subr.bf16.mxu1 %v8177_v11  ;;  %v8187_v36 = vld [vmem:[#allocation55_spill] sm:$0xff]  ;;  %v8188_v11 = vld [vmem:[#allocation56_spill] sm:$0xff] }
 0x4de   :  { %5288 = vmatpush1.bf16.msra.mxu0 %v8178_v46  ;;  %5320 = vmatpush1.bf16.msra.mxu1 %v8179_v34  ;;  %v8189_v46 = vld [vmem:[#allocation57_spill] sm:$0xff]  ;;  %v8190_v34 = vld [vmem:[#allocation58_spill] sm:$0xff] }
 0x4df   :  { %5290 = vmatprep.subr.bf16.mxu0 %v8180_v55  ;;  %5322 = vmatprep.subr.bf16.mxu1 %v8181_v53  ;;  %v8191_v55 = vld [vmem:[#allocation59_spill] sm:$0xff]  ;;  %v8192_v53 = vld [vmem:[#allocation60_spill] sm:$0xff] }
 0x4e2   :  { %5292 = vmatpush1.bf16.msra.mxu0 %v8182_v58  ;;  %5324 = vmatpush1.bf16.msra.mxu1 %v8183_v43  ;;  %v8193_v58 = vld [vmem:[#allocation61_spill] sm:$0xff]  ;;  %v8194_v43 = vld [vmem:[#allocation62_spill] sm:$0xff] }
 0x4e3   :  { %5294 = vmatprep.subr.bf16.mxu0 %v8184_v19  ;;  %5326 = vmatprep.subr.bf16.mxu1 %v8185_v13  ;;  %v8195_v19 = vld [vmem:[#allocation63_spill] sm:$0xff]  ;;  %v8196_v13 = vld [vmem:[#allocation64_spill] sm:$0xff] }
 0x4e6   :  { %5296 = vmatpush1.bf16.msra.mxu0 %v8186_v7  ;;  %5328 = vmatpush1.bf16.msra.mxu1 %v8187_v36  ;;  %v8197_v7 = vld [vmem:[#allocation65_spill] sm:$0xff] }
 0x4e7   :  { %5298 = vmatprep.subr.bf16.mxu0 %v8188_v11  ;;  %5330 = vmatprep.subr.bf16.mxu1 %v8189_v46 }
 0x4ea   :  { %5300 = vmatpush1.bf16.msra.mxu0 %v8190_v34  ;;  %5332 = vmatpush1.bf16.msra.mxu1 %v8191_v55 }
 0x4eb   :  { %5302 = vmatprep.subr.bf16.mxu0 %v8192_v53  ;;  %5334 = vmatprep.subr.bf16.mxu1 %v8193_v58 }
 0x4ee   :  { %5304 = vmatpush1.bf16.msra.mxu0 %v8194_v43  ;;  %5336 = vmatpush1.bf16.msra.mxu1 %v8195_v19 }
 0x4ef   :  { %5338 = vmatprep.subr.bf16.mxu0 %v8196_v13  ;;  %5370 = vmatprep.subr.bf16.mxu1 %v8197_v7 }
 0x584   :  { %v2136_v36 = vpop.f32.mrb[14].mxu0  ;;  %v2207_v11 = vpop.f32.mrb[14].mxu1 }
 0x585   :  { %v2137_v46 = vadd.f32 %v2136_v36, %v8198_v24  ;;  %v2138_v62 = vpop.f32.mrb[15].mxu0  ;;  %v2209_v34 = vpop.f32.mrb[15].mxu1  ;;  %v2208_v43 = vadd.f32 %v2207_v11, %v6859_v56 }
 0x586   :  { %v2139_v55 = vadd.f32 %v2138_v62, %v6855_v59  ;;  %v2210_v19 = vadd.f32 %v2209_v34, %v6861_v44 }
 0x587   :  { %v4343_v42 = vmul.f32 -1.442695, %v2137_v46  ;;  %v4345_v58 = vmul.f32 -1.442695, %v2208_v43  ;;  %v4347_v43 = vld [vmem:[%s7744_s0 + $0x88] sm:$0xff] }
 0x588   :  { %v4344_v53 = vmul.f32 -1.442695, %v2139_v55 }
 0x589   :  { %6184 = vpow2.f32 %v4343_v42 }
 0x58a   :  { %6186 = vpow2.f32 %v4344_v53  ;;  %v4346_v53 = vld [vmem:[%s7744_s0 + $0x80] sm:$0xff] }
 0x58b   :  { %6188 = vtanh.f32 %v2210_v19 }
 0x58c   :  { %6190 = vpow2.f32 %v4345_v58 }
 0x593   :  { %v6185_v13 = vpop.eup %6184 }
 0x594   :  { %v2225_v52 = vadd.f32 1.0, %v6185_v13  ;;  %v6187_v7 = vpop.eup %6186 }
 0x595   :  { %v2226_v36 = vadd.f32 1.0, %v6187_v7  ;;  %v6189_v24 = vpop.eup %6188 }
 0x596   :  { %6192 = vrcp.f32 %v2225_v52  ;;  %v6191_v30 = vpop.eup %6190 }
 0x597   :  { %6194 = vrcp.f32 %v2226_v36  ;;  %v2227_v42 = vadd.f32 1.0, %v6191_v30 }
 0x599   :  { %6196 = vrcp.f32 %v2227_v42 }
 0x5a0   :  { %v6193_v62 = vpop.eup %6192 }
 0x5a1   :  { %v2236_v46 = vmul.f32 %v6193_v62, %v6189_v24  ;;  %v6195_v55 = vpop.eup %6194 }
 0x5a2   :  { %v2235_v34 = vmul.f32 %v6195_v55, %v7126_v10  ;;  %v4348_v10 = vld [vmem:[%s7744_s0 + $0x90] sm:$0xff] }
 0x5a3   :  { %v6197_v55 = vpop.eup %6196 }
 0x5a4   :  { %v2306_v58 = vpop.f32.mrb[16].mxu0  ;;  %v2377_v52 = vpop.f32.mrb[16].mxu1  ;;  %v7252_v19 = vadd.f32 %v2236_v46, %v2235_v34  ;;  %v4349_v46 = vld [vmem:[%s7744_s0 + $0x98] sm:$0xff] }
 0x5a5   :  { %v2387_v7 = vadd.f32 %v4346_v53, %v2306_v58  ;;  %v2308_v11 = vpop.f32.mrb[17].mxu0  ;;  %v2379_v13 = vpop.f32.mrb[17].mxu1  ;;  %v2389_v62 = vadd.f32 %v4348_v10, %v2377_v52 }
 0x5a6   :  { %v2388_v24 = vadd.f32 %v4347_v43, %v2308_v11  ;;  %6198 = vtanh.f32 %v7252_v19  ;;  %v2390_v53 = vadd.f32 %v4349_v46, %v2379_v13 }
 0x5a7   :  { %v4350_v30 = vmul.f32 -1.442695, %v2387_v7  ;;  %v4352_v42 = vmul.f32 -1.442695, %v2389_v62 }
 0x5a8   :  { %v4351_v36 = vmul.f32 -1.442695, %v2388_v24 }
 0x5a9   :  { %6200 = vpow2.f32 %v4350_v30 }
 0x5aa   :  { %6202 = vpow2.f32 %v4351_v36 }
 0x5ab   :  { %6204 = vtanh.f32 %v2390_v53 }
 0x5ac   :  { %6206 = vpow2.f32 %v4352_v42  ;;  %v8199_v42 = vld [vmem:[#allocation12_spill] sm:$0xff] }
 0x5b0   :  { %v6199_v34 = vpop.eup %6198 }
 0x5b1   :  { %v2239_v43 = vmul.f32 %v6199_v34, %v6197_v55 }
 0x5b3   :  { %v6201_v58 = vpop.eup %6200  ;;  %2480 = vmatmul.mubr.f32.vlgmr.msra.gmra.mrb[18].mxu0 %v2239_v43  ;;  %2551 = vmatmul.mubr.f32.vlgmr.msra.gmra.mrb[18].mxu1 %v2239_v43  ;;  %v8200_v43 = vld [vmem:[#allocation15_spill] sm:$0xff] }
 0x5b4   :  { %v2400_v11 = vadd.f32 1.0, %v6201_v58  ;;  %v6203_v7 = vpop.eup %6202  ;;  %5340 = vmatpush1.bf16.msra.mxu0 %v8034_v49  ;;  %5372 = vmatpush1.bf16.msra.mxu1 %v8035_v22  ;;  %v8201_v58 = vld [vmem:[#allocation13_spill] sm:$0xff] }
 0x5b5   :  { %v2401_v52 = vadd.f32 1.0, %v6203_v7  ;;  %5342 = vmatprep.subr.bf16.mxu0 %v8089_v47  ;;  %5374 = vmatprep.subr.bf16.mxu1 %v8090_v27  ;;  %v6205_v13 = vpop.eup %6204  ;;  %v8203_v7 = vld [vmem:[#allocation14_spill] sm:$0xff] }
 0x5b6   :  { %6208 = vrcp.f32 %v2400_v11  ;;  %2621 = vmatprep.mubr.f32.mxu0 %v7988_v40  ;;  %2692 = vmatprep.mubr.f32.mxu1 %v7988_v40  ;;  %v6207_v24 = vpop.eup %6206  ;;  %v8202_v11 = vld [vmem:[#allocation18_spill] sm:$0xff] }
 0x5b7   :  { %6210 = vrcp.f32 %v2401_v52  ;;  %v2402_v62 = vadd.f32 1.0, %v6207_v24  ;;  %v8204_v52 = vld [vmem:[#allocation19_spill] sm:$0xff]  ;;  %v8206_v24 = vld [vmem:[#allocation22_spill] sm:$0xff] }
 0x5b8   :  { %5344 = vmatpush1.bf16.msra.mxu0 %v8091_v0  ;;  %5376 = vmatpush1.bf16.msra.mxu1 %v8092_v23 }
 0x5b9   :  { %5346 = vmatprep.subr.bf16.mxu0 %v8144_v32  ;;  %5378 = vmatprep.subr.bf16.mxu1 %v8094_v63  ;;  %6212 = vrcp.f32 %v2402_v62  ;;  %v8210_v62 = vld [vmem:[#allocation26_spill] sm:$0xff] }
 0x5bc   :  { %5348 = vmatpush1.bf16.msra.mxu0 %v8145_v31  ;;  %5380 = vmatpush1.bf16.msra.mxu1 %v8146_v1 }
 0x5bd   :  { %5350 = vmatprep.subr.bf16.mxu0 %v8097_v61  ;;  %5382 = vmatprep.subr.bf16.mxu1 %v8098_v41 }
 0x5c0   :  { %v6209_v30 = vpop.eup %6208  ;;  %5352 = vmatpush1.bf16.msra.mxu0 %v8046_v38  ;;  %5384 = vmatpush1.bf16.msra.mxu1 %v8047_v60 }
 0x5c1   :  { %v2411_v36 = vmul.f32 %v6209_v30, %v6205_v13  ;;  %v6211_v10 = vpop.eup %6210  ;;  %5354 = vmatprep.subr.bf16.mxu0 %v8147_v18  ;;  %5386 = vmatprep.subr.bf16.mxu1 %v8148_v15  ;;  %v8205_v13 = vld [vmem:[#allocation16_spill] sm:$0xff]  ;;  %v8207_v30 = vld [vmem:[#allocation17_spill] sm:$0xff] }
 0x5c2   :  { %v2410_v46 = vmul.f32 %v6211_v10, %v7154_v51  ;;  %v8209_v10 = vld [vmem:[#allocation20_spill] sm:$0xff] }
 0x5c3   :  { %v6213_v51 = vpop.eup %6212 }
 0x5c4   :  { %v7280_v55 = vadd.f32 %v2411_v36, %v2410_v46  ;;  %5356 = vmatpush1.bf16.msra.mxu0 %v8050_v50  ;;  %5388 = vmatpush1.bf16.msra.mxu1 %v8051_v2  ;;  %v8208_v36 = vld [vmem:[#allocation23_spill] sm:$0xff]  ;;  %v8211_v46 = vld [vmem:[#allocation21_spill] sm:$0xff] }
 0x5c5   :  { %5358 = vmatprep.subr.bf16.mxu0 %v8100_v3  ;;  %5390 = vmatprep.subr.bf16.mxu1 %v8101_v29 }
 0x5c6   :  { %6214 = vtanh.f32 %v7280_v55 }
 0x5c8   :  { %5360 = vmatpush1.bf16.msra.mxu0 %v8102_v21  ;;  %5392 = vmatpush1.bf16.msra.mxu1 %v8103_v57 }
 0x5c9   :  { %5362 = vmatprep.subr.bf16.mxu0 %v8104_v54  ;;  %5394 = vmatprep.subr.bf16.mxu1 %v6739_v6 }
 0x5cc   :  { %5364 = vmatpush1.bf16.msra.mxu0 %v6741_v39  ;;  %5396 = vmatpush1.bf16.msra.mxu1 %v8056_v4 }
 0x5cd   :  { %5366 = vmatprep.subr.bf16.mxu0 %v8057_v35  ;;  %5398 = vmatprep.subr.bf16.mxu1 %v8058_v5 }
 0x5d0   :  { %v6215_v53 = vpop.eup %6214  ;;  %5368 = vmatpush1.bf16.msra.mxu0 %v8059_v12  ;;  %5400 = vmatpush1.bf16.msra.mxu1 %v8060_v20 }
 0x5d1   :  { %5402 = vmatprep.subr.bf16.mxu0 %v8061_v16  ;;  %5434 = vmatprep.subr.bf16.mxu1 %v8062_v28  ;;  %v2414_v34 = vmul.f32 %v6215_v53, %v6213_v51  ;;  %v8212_v51 = vld [vmem:[#allocation27_spill] sm:$0xff]  ;;  %v8213_v53 = vld [vmem:[#allocation24_spill] sm:$0xff] }
 0x5d3   :  { %2622 = vmatmul.mubr.f32.vlgmr.msra.gmra.mrb[18].mxu0 %v2414_v34  ;;  %2693 = vmatmul.mubr.f32.vlgmr.msra.gmra.mrb[18].mxu1 %v2414_v34 }
 0x5d4   :  { %5404 = vmatpush1.bf16.msra.mxu0 %v6466_v8  ;;  %5436 = vmatpush1.bf16.msra.mxu1 %v6479_v25 }
 0x5d5   :  { %5406 = vmatprep.subr.bf16.mxu0 %v6468_v9  ;;  %5438 = vmatprep.subr.bf16.mxu1 %v6489_v33 }
 0x5d6   :  { %2791 = vmatprep.mubr.f32.mxu0 %v7988_v40  ;;  %2862 = vmatprep.mubr.f32.mxu1 %v7988_v40 }
 0x5d8   :  { %5408 = vmatpush1.bf16.msra.mxu0 %v6472_v14  ;;  %5440 = vmatpush1.bf16.msra.mxu1 %v6491_v37 }
 0x5d9   :  { %5410 = vmatprep.subr.bf16.mxu0 %v6475_v17  ;;  %5442 = vmatprep.subr.bf16.mxu1 %v6497_v45 }
 0x5dc   :  { %5412 = vmatpush1.bf16.msra.mxu0 %v6482_v26  ;;  %5444 = vmatpush1.bf16.msra.mxu1 %v6503_v48 }
 0x5dd   :  { %5414 = vmatprep.subr.bf16.mxu0 %v8199_v42  ;;  %5446 = vmatprep.subr.bf16.mxu1 %v8200_v43 }
 0x5e0   :  { %5416 = vmatpush1.bf16.msra.mxu0 %v8201_v58  ;;  %5448 = vmatpush1.bf16.msra.mxu1 %v8202_v11 }
 0x5e1   :  { %5418 = vmatprep.subr.bf16.mxu0 %v8203_v7  ;;  %5450 = vmatprep.subr.bf16.mxu1 %v8204_v52  ;;  %v8214_v7 = vld [vmem:[#allocation29_spill] sm:$0xff] }
 0x5e2   :  { %v8215_v52 = vld [vmem:[#allocation25_spill] sm:$0xff] }
 0x5e4   :  { %5420 = vmatpush1.bf16.msra.mxu0 %v8205_v13  ;;  %5452 = vmatpush1.bf16.msra.mxu1 %v8206_v24  ;;  %v8216_v13 = vld [vmem:[#allocation31_spill] sm:$0xff]  ;;  %v8217_v24 = vld [vmem:[#allocation28_spill] sm:$0xff] }
 0x5e5   :  { %5422 = vmatprep.subr.bf16.mxu0 %v8207_v30  ;;  %5454 = vmatprep.subr.bf16.mxu1 %v8208_v36  ;;  %v8218_v30 = vld [vmem:[#allocation33_spill] sm:$0xff]  ;;  %v8219_v36 = vld [vmem:[#allocation30_spill] sm:$0xff] }
 0x5e8   :  { %5424 = vmatpush1.bf16.msra.mxu0 %v8209_v10  ;;  %5456 = vmatpush1.bf16.msra.mxu1 %v8210_v62  ;;  %v8220_v10 = vld [vmem:[#allocation35_spill] sm:$0xff]  ;;  %v8253_v62 = vld [vmem:[#allocation94_spill] sm:$0xff] }
 0x5e9   :  { %5426 = vmatprep.subr.bf16.mxu0 %v8211_v46  ;;  %5458 = vmatprep.subr.bf16.mxu1 %v8212_v51  ;;  %v8221_v46 = vld [vmem:[#allocation32_spill] sm:$0xff]  ;;  %v8222_v51 = vld [vmem:[#allocation37_spill] sm:$0xff] }
 0x5ec   :  { %5428 = vmatpush1.bf16.msra.mxu0 %v8213_v53  ;;  %5460 = vmatpush1.bf16.msra.mxu1 %v8214_v7  ;;  %v8223_v53 = vld [vmem:[#allocation34_spill] sm:$0xff]  ;;  %v8224_v7 = vld [vmem:[#allocation39_spill] sm:$0xff] }
 0x5ed   :  { %5430 = vmatprep.subr.bf16.mxu0 %v8215_v52  ;;  %5462 = vmatprep.subr.bf16.mxu1 %v8216_v13  ;;  %v8234_v13 = vld [vmem:[#allocation49_spill] sm:$0xff]  ;;  %v8235_v52 = vld [vmem:[#allocation46_spill] sm:$0xff] }
 0x5f0   :  { %5432 = vmatpush1.bf16.msra.mxu0 %v8217_v24  ;;  %5464 = vmatpush1.bf16.msra.mxu1 %v8218_v30  ;;  %v8225_v24 = vld [vmem:[#allocation36_spill] sm:$0xff]  ;;  %v8226_v30 = vld [vmem:[#allocation41_spill] sm:$0xff] }
 0x5f1   :  { %5466 = vmatprep.subr.bf16.mxu0 %v8219_v36  ;;  %5498 = vmatprep.subr.bf16.mxu1 %v8220_v10  ;;  %v8227_v36 = vld [vmem:[#allocation38_spill] sm:$0xff]  ;;  %v8228_v10 = vld [vmem:[#allocation43_spill] sm:$0xff] }
 0x5f3   :  { %2792 = vmatmul.mubr.f32.vlgmr.msra.gmra.mrb[20].mxu0 %v2414_v34  ;;  %2863 = vmatmul.mubr.f32.vlgmr.msra.gmra.mrb[20].mxu1 %v2414_v34  ;;  %v8229_v34 = vld [vmem:[#allocation40_spill] sm:$0xff] }
 0x5f4   :  { %5468 = vmatpush1.bf16.msra.mxu0 %v8221_v46  ;;  %5500 = vmatpush1.bf16.msra.mxu1 %v8222_v51  ;;  %v8230_v46 = vld [vmem:[#allocation45_spill] sm:$0xff]  ;;  %v8231_v51 = vld [vmem:[#allocation42_spill] sm:$0xff] }
 0x5f5   :  { %5470 = vmatprep.subr.bf16.mxu0 %v8223_v53  ;;  %5502 = vmatprep.subr.bf16.mxu1 %v8224_v7  ;;  %v8232_v53 = vld [vmem:[#allocation47_spill] sm:$0xff]  ;;  %v8233_v7 = vld [vmem:[#allocation44_spill] sm:$0xff] }
 0x5f6   :  { %2966 = vmatprep.mubr.f32.mxu0 %v7988_v40  ;;  %3037 = vmatprep.mubr.f32.mxu1 %v7988_v40 }
 0x5f8   :  { %5472 = vmatpush1.bf16.msra.mxu0 %v8225_v24  ;;  %5504 = vmatpush1.bf16.msra.mxu1 %v8226_v30  ;;  %v8236_v24 = vld [vmem:[#allocation50_spill] sm:$0xff]  ;;  %v8237_v30 = vld [vmem:[#allocation48_spill] sm:$0xff] }
 0x5f9   :  { %5474 = vmatprep.subr.bf16.mxu0 %v8227_v36  ;;  %5506 = vmatprep.subr.bf16.mxu1 %v8228_v10  ;;  %v8238_v36 = vld [vmem:[#allocation51_spill] sm:$0xff]  ;;  %v8239_v10 = vld [vmem:[#allocation52_spill] sm:$0xff] }
 0x5fc   :  { %5476 = vmatpush1.bf16.msra.mxu0 %v8229_v34  ;;  %5508 = vmatpush1.bf16.msra.mxu1 %v8230_v46  ;;  %v8240_v34 = vld [vmem:[#allocation53_spill] sm:$0xff]  ;;  %v8241_v46 = vld [vmem:[#allocation54_spill] sm:$0xff] }
 0x5fd   :  { %5478 = vmatprep.subr.bf16.mxu0 %v8231_v51  ;;  %5510 = vmatprep.subr.bf16.mxu1 %v8232_v53  ;;  %v8242_v51 = vld [vmem:[#allocation55_spill] sm:$0xff]  ;;  %v8243_v53 = vld [vmem:[#allocation56_spill] sm:$0xff] }
 0x600   :  { %5480 = vmatpush1.bf16.msra.mxu0 %v8233_v7  ;;  %5512 = vmatpush1.bf16.msra.mxu1 %v8234_v13  ;;  %v8244_v7 = vld [vmem:[#allocation57_spill] sm:$0xff]  ;;  %v8245_v13 = vld [vmem:[#allocation58_spill] sm:$0xff] }
 0x601   :  { %5482 = vmatprep.subr.bf16.mxu0 %v8235_v52  ;;  %5514 = vmatprep.subr.bf16.mxu1 %v8236_v24  ;;  %v8246_v52 = vld [vmem:[#allocation59_spill] sm:$0xff]  ;;  %v8247_v24 = vld [vmem:[#allocation60_spill] sm:$0xff] }
 0x604   :  { %5484 = vmatpush1.bf16.msra.mxu0 %v8237_v30  ;;  %5516 = vmatpush1.bf16.msra.mxu1 %v8238_v36  ;;  %v8248_v30 = vld [vmem:[#allocation61_spill] sm:$0xff]  ;;  %v8249_v36 = vld [vmem:[#allocation62_spill] sm:$0xff] }
 0x605   :  { %5486 = vmatprep.subr.bf16.mxu0 %v8239_v10  ;;  %5518 = vmatprep.subr.bf16.mxu1 %v8240_v34  ;;  %v8250_v10 = vld [vmem:[#allocation63_spill] sm:$0xff]  ;;  %v8251_v34 = vld [vmem:[#allocation64_spill] sm:$0xff] }
 0x608   :  { %5488 = vmatpush1.bf16.msra.mxu0 %v8241_v46  ;;  %5520 = vmatpush1.bf16.msra.mxu1 %v8242_v51  ;;  %v8252_v46 = vld [vmem:[#allocation65_spill] sm:$0xff] }
 0x609   :  { %5490 = vmatprep.subr.bf16.mxu0 %v8243_v53  ;;  %5522 = vmatprep.subr.bf16.mxu1 %v8244_v7 }
 0x60c   :  { %5492 = vmatpush1.bf16.msra.mxu0 %v8245_v13  ;;  %5524 = vmatpush1.bf16.msra.mxu1 %v8246_v52 }
 0x60d   :  { %5494 = vmatprep.subr.bf16.mxu0 %v8247_v24  ;;  %5526 = vmatprep.subr.bf16.mxu1 %v8248_v30 }
 0x610   :  { %5496 = vmatpush1.bf16.msra.mxu0 %v8249_v36  ;;  %5528 = vmatpush1.bf16.msra.mxu1 %v8250_v10 }
 0x611   :  { %5530 = vmatprep.subr.bf16.mxu0 %v8251_v34  ;;  %5562 = vmatprep.subr.bf16.mxu1 %v8252_v46 }
 0x6a6   :  { %v2623_v51 = vpop.f32.mrb[18].mxu0  ;;  %v2694_v53 = vpop.f32.mrb[18].mxu1 }
 0x6a7   :  { %v2624_v7 = vadd.f32 %v2623_v51, %v8253_v62  ;;  %v2625_v11 = vpop.f32.mrb[19].mxu0  ;;  %v2696_v13 = vpop.f32.mrb[19].mxu1  ;;  %v2695_v36 = vadd.f32 %v2694_v53, %v6859_v56 }
 0x6a8   :  { %v2626_v52 = vadd.f32 %v2625_v11, %v6855_v59  ;;  %v2697_v10 = vadd.f32 %v2696_v13, %v6861_v44 }
 0x6a9   :  { %v4353_v58 = vmul.f32 -1.442695, %v2624_v7  ;;  %v4355_v30 = vmul.f32 -1.442695, %v2695_v36  ;;  %v4357_v36 = vld [vmem:[%s7744_s0 + $0xa8] sm:$0xff] }
 0x6aa   :  { %v4354_v24 = vmul.f32 -1.442695, %v2626_v52 }
 0x6ab   :  { %6216 = vpow2.f32 %v4353_v58 }
 0x6ac   :  { %6218 = vpow2.f32 %v4354_v24  ;;  %v4356_v24 = vld [vmem:[%s7744_s0 + $0xa0] sm:$0xff] }
 0x6ad   :  { %6220 = vtanh.f32 %v2697_v10 }
 0x6ae   :  { %6222 = vpow2.f32 %v4355_v30 }
 0x6b5   :  { %v6217_v34 = vpop.eup %6216 }
 0x6b6   :  { %v2712_v43 = vadd.f32 1.0, %v6217_v34  ;;  %v6219_v46 = vpop.eup %6218 }
 0x6b7   :  { %v2713_v51 = vadd.f32 1.0, %v6219_v46  ;;  %v6221_v62 = vpop.eup %6220 }
 0x6b8   :  { %6224 = vrcp.f32 %v2712_v43  ;;  %v6223_v42 = vpop.eup %6222 }
 0x6b9   :  { %6226 = vrcp.f32 %v2713_v51  ;;  %v2714_v58 = vadd.f32 1.0, %v6223_v42 }
 0x6bb   :  { %6228 = vrcp.f32 %v2714_v58 }
 0x6c2   :  { %v6225_v11 = vpop.eup %6224 }
 0x6c3   :  { %v2723_v7 = vmul.f32 %v6225_v11, %v6221_v62  ;;  %v6227_v52 = vpop.eup %6226 }
 0x6c4   :  { %v2722_v13 = vmul.f32 %v6227_v52, %v7252_v19  ;;  %v4358_v19 = vld [vmem:[%s7744_s0 + $0xb0] sm:$0xff] }
 0x6c5   :  { %v6229_v52 = vpop.eup %6228 }
 0x6c6   :  { %v2793_v30 = vpop.f32.mrb[20].mxu0  ;;  %v2864_v43 = vpop.f32.mrb[20].mxu1  ;;  %v7378_v10 = vadd.f32 %v2723_v7, %v2722_v13  ;;  %v4359_v7 = vld [vmem:[%s7744_s0 + $0xb8] sm:$0xff] }
 0x6c7   :  { %v2874_v46 = vadd.f32 %v4356_v24, %v2793_v30  ;;  %v2795_v53 = vpop.f32.mrb[21].mxu0  ;;  %v2866_v34 = vpop.f32.mrb[21].mxu1  ;;  %v2876_v11 = vadd.f32 %v4358_v19, %v2864_v43 }
 0x6c8   :  { %v2875_v62 = vadd.f32 %v4357_v36, %v2795_v53  ;;  %6230 = vtanh.f32 %v7378_v10  ;;  %v2877_v24 = vadd.f32 %v4359_v7, %v2866_v34 }
 0x6c9   :  { %v4360_v42 = vmul.f32 -1.442695, %v2874_v46  ;;  %v4362_v58 = vmul.f32 -1.442695, %v2876_v11 }
 0x6ca   :  { %v4361_v51 = vmul.f32 -1.442695, %v2875_v62 }
 0x6cb   :  { %6232 = vpow2.f32 %v4360_v42 }
 0x6cc   :  { %6234 = vpow2.f32 %v4361_v51 }
 0x6cd   :  { %6236 = vtanh.f32 %v2877_v24 }
 0x6ce   :  { %6238 = vpow2.f32 %v4362_v58  ;;  %v8254_v58 = vld [vmem:[#allocation12_spill] sm:$0xff] }
 0x6d2   :  { %v6231_v13 = vpop.eup %6230 }
 0x6d3   :  { %v2726_v36 = vmul.f32 %v6231_v13, %v6229_v52 }
 0x6d5   :  { %v6233_v30 = vpop.eup %6232  ;;  %2967 = vmatmul.mubr.f32.vlgmr.msra.gmra.mrb[22].mxu0 %v2726_v36  ;;  %3038 = vmatmul.mubr.f32.vlgmr.msra.gmra.mrb[22].mxu1 %v2726_v36  ;;  %v8255_v36 = vld [vmem:[#allocation15_spill] sm:$0xff] }
 0x6d6   :  { %v2887_v53 = vadd.f32 1.0, %v6233_v30  ;;  %v6235_v46 = vpop.eup %6234  ;;  %5532 = vmatpush1.bf16.msra.mxu0 %v8034_v49  ;;  %5564 = vmatpush1.bf16.msra.mxu1 %v8035_v22  ;;  %v8256_v30 = vld [vmem:[#allocation13_spill] sm:$0xff] }
 0x6d7   :  { %v2888_v43 = vadd.f32 1.0, %v6235_v46  ;;  %5534 = vmatprep.subr.bf16.mxu0 %v8089_v47  ;;  %5566 = vmatprep.subr.bf16.mxu1 %v8090_v27  ;;  %v6237_v34 = vpop.eup %6236  ;;  %v8258_v46 = vld [vmem:[#allocation14_spill] sm:$0xff] }
 0x6d8   :  { %6240 = vrcp.f32 %v2887_v53  ;;  %3108 = vmatprep.mubr.f32.mxu0 %v7988_v40  ;;  %3179 = vmatprep.mubr.f32.mxu1 %v7988_v40  ;;  %v6239_v62 = vpop.eup %6238  ;;  %v8257_v53 = vld [vmem:[#allocation18_spill] sm:$0xff] }
 0x6d9   :  { %6242 = vrcp.f32 %v2888_v43  ;;  %v2889_v11 = vadd.f32 1.0, %v6239_v62  ;;  %v8259_v43 = vld [vmem:[#allocation19_spill] sm:$0xff]  ;;  %v8261_v62 = vld [vmem:[#allocation22_spill] sm:$0xff] }
 0x6da   :  { %5536 = vmatpush1.bf16.msra.mxu0 %v8091_v0  ;;  %5568 = vmatpush1.bf16.msra.mxu1 %v8092_v23 }
 0x6db   :  { %5538 = vmatprep.subr.bf16.mxu0 %v8144_v32  ;;  %5570 = vmatprep.subr.bf16.mxu1 %v8094_v63  ;;  %6244 = vrcp.f32 %v2889_v11  ;;  %v8265_v11 = vld [vmem:[#allocation26_spill] sm:$0xff] }
 0x6de   :  { %5540 = vmatpush1.bf16.msra.mxu0 %v8145_v31  ;;  %5572 = vmatpush1.bf16.msra.mxu1 %v8146_v1 }
 0x6df   :  { %5542 = vmatprep.subr.bf16.mxu0 %v8097_v61  ;;  %5574 = vmatprep.subr.bf16.mxu1 %v8098_v41 }
 0x6e2   :  { %v6241_v42 = vpop.eup %6240  ;;  %5544 = vmatpush1.bf16.msra.mxu0 %v8046_v38  ;;  %5576 = vmatpush1.bf16.msra.mxu1 %v8047_v60 }
 0x6e3   :  { %v2898_v51 = vmul.f32 %v6241_v42, %v6237_v34  ;;  %v6243_v19 = vpop.eup %6242  ;;  %5546 = vmatprep.subr.bf16.mxu0 %v8147_v18  ;;  %5578 = vmatprep.subr.bf16.mxu1 %v8148_v15  ;;  %v8260_v34 = vld [vmem:[#allocation16_spill] sm:$0xff]  ;;  %v8262_v42 = vld [vmem:[#allocation17_spill] sm:$0xff] }
 0x6e4   :  { %v2897_v7 = vmul.f32 %v6243_v19, %v7280_v55  ;;  %v8264_v19 = vld [vmem:[#allocation20_spill] sm:$0xff] }
 0x6e5   :  { %v6245_v55 = vpop.eup %6244 }
 0x6e6   :  { %v7406_v52 = vadd.f32 %v2898_v51, %v2897_v7  ;;  %5548 = vmatpush1.bf16.msra.mxu0 %v8050_v50  ;;  %5580 = vmatpush1.bf16.msra.mxu1 %v8051_v2  ;;  %v8263_v51 = vld [vmem:[#allocation23_spill] sm:$0xff]  ;;  %v8266_v7 = vld [vmem:[#allocation21_spill] sm:$0xff] }
 0x6e7   :  { %5550 = vmatprep.subr.bf16.mxu0 %v8100_v3  ;;  %5582 = vmatprep.subr.bf16.mxu1 %v8101_v29 }
 0x6e8   :  { %6246 = vtanh.f32 %v7406_v52 }
 0x6ea   :  { %5552 = vmatpush1.bf16.msra.mxu0 %v8102_v21  ;;  %5584 = vmatpush1.bf16.msra.mxu1 %v8103_v57 }
 0x6eb   :  { %5554 = vmatprep.subr.bf16.mxu0 %v8104_v54  ;;  %5586 = vmatprep.subr.bf16.mxu1 %v6739_v6 }
 0x6ee   :  { %5556 = vmatpush1.bf16.msra.mxu0 %v6741_v39  ;;  %5588 = vmatpush1.bf16.msra.mxu1 %v8056_v4 }
 0x6ef   :  { %5558 = vmatprep.subr.bf16.mxu0 %v8057_v35  ;;  %5590 = vmatprep.subr.bf16.mxu1 %v8058_v5 }
 0x6f2   :  { %v6247_v24 = vpop.eup %6246  ;;  %5560 = vmatpush1.bf16.msra.mxu0 %v8059_v12  ;;  %5592 = vmatpush1.bf16.msra.mxu1 %v8060_v20 }
 0x6f3   :  { %v2901_v13 = vmul.f32 %v6247_v24, %v6245_v55  ;;  %5594 = vmatprep.subr.bf16.mxu0 %v8061_v16  ;;  %5626 = vmatprep.subr.bf16.mxu1 %v8062_v28  ;;  %v8267_v55 = vld [vmem:[#allocation27_spill] sm:$0xff]  ;;  %v8268_v24 = vld [vmem:[#allocation24_spill] sm:$0xff] }
 0x6f5   :  { %3109 = vmatmul.mubr.f32.vlgmr.msra.gmra.mrb[22].mxu0 %v2901_v13  ;;  %3180 = vmatmul.mubr.f32.vlgmr.msra.gmra.mrb[22].mxu1 %v2901_v13 }
 0x6f6   :  { %5596 = vmatpush1.bf16.msra.mxu0 %v6466_v8  ;;  %5628 = vmatpush1.bf16.msra.mxu1 %v6479_v25 }
 0x6f7   :  { %5598 = vmatprep.subr.bf16.mxu0 %v6468_v9  ;;  %5630 = vmatprep.subr.bf16.mxu1 %v6489_v33 }
 0x6f8   :  { %3278 = vmatprep.mubr.f32.mxu0 %v7988_v40  ;;  %3349 = vmatprep.mubr.f32.mxu1 %v7988_v40 }
 0x6fa   :  { %5600 = vmatpush1.bf16.msra.mxu0 %v6472_v14  ;;  %5632 = vmatpush1.bf16.msra.mxu1 %v6491_v37 }
 0x6fb   :  { %5602 = vmatprep.subr.bf16.mxu0 %v6475_v17  ;;  %5634 = vmatprep.subr.bf16.mxu1 %v6497_v45 }
 0x6fe   :  { %5604 = vmatpush1.bf16.msra.mxu0 %v6482_v26  ;;  %5636 = vmatpush1.bf16.msra.mxu1 %v6503_v48 }
 0x6ff   :  { %5606 = vmatprep.subr.bf16.mxu0 %v8254_v58  ;;  %5638 = vmatprep.subr.bf16.mxu1 %v8255_v36 }
 0x702   :  { %5608 = vmatpush1.bf16.msra.mxu0 %v8256_v30  ;;  %5640 = vmatpush1.bf16.msra.mxu1 %v8257_v53 }
 0x703   :  { %5610 = vmatprep.subr.bf16.mxu0 %v8258_v46  ;;  %5642 = vmatprep.subr.bf16.mxu1 %v8259_v43  ;;  %v8269_v46 = vld [vmem:[#allocation29_spill] sm:$0xff] }
 0x704   :  { %v8270_v43 = vld [vmem:[#allocation25_spill] sm:$0xff] }
 0x706   :  { %5612 = vmatpush1.bf16.msra.mxu0 %v8260_v34  ;;  %5644 = vmatpush1.bf16.msra.mxu1 %v8261_v62  ;;  %v8271_v34 = vld [vmem:[#allocation31_spill] sm:$0xff]  ;;  %v8272_v62 = vld [vmem:[#allocation28_spill] sm:$0xff] }
 0x707   :  { %5614 = vmatprep.subr.bf16.mxu0 %v8262_v42  ;;  %5646 = vmatprep.subr.bf16.mxu1 %v8263_v51  ;;  %v8273_v42 = vld [vmem:[#allocation33_spill] sm:$0xff]  ;;  %v8274_v51 = vld [vmem:[#allocation30_spill] sm:$0xff] }
 0x70a   :  { %5616 = vmatpush1.bf16.msra.mxu0 %v8264_v19  ;;  %5648 = vmatpush1.bf16.msra.mxu1 %v8265_v11  ;;  %v8275_v19 = vld [vmem:[#allocation35_spill] sm:$0xff]  ;;  %v8308_v11 = vld [vmem:[#allocation94_spill] sm:$0xff] }
 0x70b   :  { %5618 = vmatprep.subr.bf16.mxu0 %v8266_v7  ;;  %5650 = vmatprep.subr.bf16.mxu1 %v8267_v55  ;;  %v8276_v7 = vld [vmem:[#allocation32_spill] sm:$0xff]  ;;  %v8277_v55 = vld [vmem:[#allocation37_spill] sm:$0xff] }
 0x70e   :  { %5620 = vmatpush1.bf16.msra.mxu0 %v8268_v24  ;;  %5652 = vmatpush1.bf16.msra.mxu1 %v8269_v46  ;;  %v8278_v24 = vld [vmem:[#allocation34_spill] sm:$0xff]  ;;  %v8279_v46 = vld [vmem:[#allocation39_spill] sm:$0xff] }
 0x70f   :  { %5622 = vmatprep.subr.bf16.mxu0 %v8270_v43  ;;  %5654 = vmatprep.subr.bf16.mxu1 %v8271_v34  ;;  %v8289_v34 = vld [vmem:[#allocation49_spill] sm:$0xff]  ;;  %v8290_v43 = vld [vmem:[#allocation46_spill] sm:$0xff] }
 0x712   :  { %5624 = vmatpush1.bf16.msra.mxu0 %v8272_v62  ;;  %5656 = vmatpush1.bf16.msra.mxu1 %v8273_v42  ;;  %v8280_v62 = vld [vmem:[#allocation36_spill] sm:$0xff]  ;;  %v8281_v42 = vld [vmem:[#allocation41_spill] sm:$0xff] }
 0x713   :  { %5658 = vmatprep.subr.bf16.mxu0 %v8274_v51  ;;  %5690 = vmatprep.subr.bf16.mxu1 %v8275_v19  ;;  %v8282_v51 = vld [vmem:[#allocation38_spill] sm:$0xff]  ;;  %v8283_v19 = vld [vmem:[#allocation43_spill] sm:$0xff] }
 0x715   :  { %3279 = vmatmul.mubr.f32.vlgmr.msra.gmra.mrb[24].mxu0 %v2901_v13  ;;  %3350 = vmatmul.mubr.f32.vlgmr.msra.gmra.mrb[24].mxu1 %v2901_v13  ;;  %v8284_v13 = vld [vmem:[#allocation40_spill] sm:$0xff] }
 0x716   :  { %5660 = vmatpush1.bf16.msra.mxu0 %v8276_v7  ;;  %5692 = vmatpush1.bf16.msra.mxu1 %v8277_v55  ;;  %v8285_v7 = vld [vmem:[#allocation45_spill] sm:$0xff]  ;;  %v8286_v55 = vld [vmem:[#allocation42_spill] sm:$0xff] }
 0x717   :  { %5662 = vmatprep.subr.bf16.mxu0 %v8278_v24  ;;  %5694 = vmatprep.subr.bf16.mxu1 %v8279_v46  ;;  %v8287_v24 = vld [vmem:[#allocation47_spill] sm:$0xff]  ;;  %v8288_v46 = vld [vmem:[#allocation44_spill] sm:$0xff] }
 0x718   :  { %3453 = vmatprep.mubr.f32.mxu0 %v7988_v40  ;;  %3524 = vmatprep.mubr.f32.mxu1 %v7988_v40 }
 0x71a   :  { %5664 = vmatpush1.bf16.msra.mxu0 %v8280_v62  ;;  %5696 = vmatpush1.bf16.msra.mxu1 %v8281_v42  ;;  %v8291_v62 = vld [vmem:[#allocation50_spill] sm:$0xff]  ;;  %v8292_v42 = vld [vmem:[#allocation48_spill] sm:$0xff] }
 0x71b   :  { %5666 = vmatprep.subr.bf16.mxu0 %v8282_v51  ;;  %5698 = vmatprep.subr.bf16.mxu1 %v8283_v19  ;;  %v8293_v51 = vld [vmem:[#allocation51_spill] sm:$0xff]  ;;  %v8294_v19 = vld [vmem:[#allocation52_spill] sm:$0xff] }
 0x71e   :  { %5668 = vmatpush1.bf16.msra.mxu0 %v8284_v13  ;;  %5700 = vmatpush1.bf16.msra.mxu1 %v8285_v7  ;;  %v8295_v13 = vld [vmem:[#allocation53_spill] sm:$0xff]  ;;  %v8296_v7 = vld [vmem:[#allocation54_spill] sm:$0xff] }
 0x71f   :  { %5670 = vmatprep.subr.bf16.mxu0 %v8286_v55  ;;  %5702 = vmatprep.subr.bf16.mxu1 %v8287_v24  ;;  %v8297_v55 = vld [vmem:[#allocation55_spill] sm:$0xff]  ;;  %v8298_v24 = vld [vmem:[#allocation56_spill] sm:$0xff] }
 0x722   :  { %5672 = vmatpush1.bf16.msra.mxu0 %v8288_v46  ;;  %5704 = vmatpush1.bf16.msra.mxu1 %v8289_v34  ;;  %v8299_v46 = vld [vmem:[#allocation57_spill] sm:$0xff]  ;;  %v8300_v34 = vld [vmem:[#allocation58_spill] sm:$0xff] }
 0x723   :  { %5674 = vmatprep.subr.bf16.mxu0 %v8290_v43  ;;  %5706 = vmatprep.subr.bf16.mxu1 %v8291_v62  ;;  %v8301_v43 = vld [vmem:[#allocation59_spill] sm:$0xff]  ;;  %v8302_v62 = vld [vmem:[#allocation60_spill] sm:$0xff] }
 0x726   :  { %5676 = vmatpush1.bf16.msra.mxu0 %v8292_v42  ;;  %5708 = vmatpush1.bf16.msra.mxu1 %v8293_v51  ;;  %v8303_v42 = vld [vmem:[#allocation61_spill] sm:$0xff]  ;;  %v8304_v51 = vld [vmem:[#allocation62_spill] sm:$0xff] }
 0x727   :  { %5678 = vmatprep.subr.bf16.mxu0 %v8294_v19  ;;  %5710 = vmatprep.subr.bf16.mxu1 %v8295_v13  ;;  %v8305_v19 = vld [vmem:[#allocation63_spill] sm:$0xff]  ;;  %v8306_v13 = vld [vmem:[#allocation64_spill] sm:$0xff] }
 0x72a   :  { %5680 = vmatpush1.bf16.msra.mxu0 %v8296_v7  ;;  %5712 = vmatpush1.bf16.msra.mxu1 %v8297_v55  ;;  %v8307_v7 = vld [vmem:[#allocation65_spill] sm:$0xff] }
 0x72b   :  { %5682 = vmatprep.subr.bf16.mxu0 %v8298_v24  ;;  %5714 = vmatprep.subr.bf16.mxu1 %v8299_v46 }
 0x72e   :  { %5684 = vmatpush1.bf16.msra.mxu0 %v8300_v34  ;;  %5716 = vmatpush1.bf16.msra.mxu1 %v8301_v43 }
 0x72f   :  { %5686 = vmatprep.subr.bf16.mxu0 %v8302_v62  ;;  %5718 = vmatprep.subr.bf16.mxu1 %v8303_v42 }
 0x732   :  { %5688 = vmatpush1.bf16.msra.mxu0 %v8304_v51  ;;  %5720 = vmatpush1.bf16.msra.mxu1 %v8305_v19 }
 0x733   :  { %5722 = vmatprep.subr.bf16.mxu0 %v8306_v13  ;;  %5754 = vmatprep.subr.bf16.mxu1 %v8307_v7 }
 0x7c8   :  { %v3110_v55 = vpop.f32.mrb[22].mxu0  ;;  %v3181_v24 = vpop.f32.mrb[22].mxu1 }
 0x7c9   :  { %v3111_v46 = vadd.f32 %v3110_v55, %v8308_v11  ;;  %v3112_v53 = vpop.f32.mrb[23].mxu0  ;;  %v3183_v34 = vpop.f32.mrb[23].mxu1  ;;  %v3182_v51 = vadd.f32 %v3181_v24, %v6859_v56 }
 0x7ca   :  { %v3113_v43 = vadd.f32 %v3112_v53, %v6855_v59  ;;  %v3184_v19 = vadd.f32 %v3183_v34, %v6861_v44 }
 0x7cb   :  { %v4363_v30 = vmul.f32 -1.442695, %v3111_v46  ;;  %v4365_v42 = vmul.f32 -1.442695, %v3182_v51  ;;  %v4367_v51 = vld [vmem:[%s7744_s0 + $0xc8] sm:$0xff] }
 0x7cc   :  { %v4364_v62 = vmul.f32 -1.442695, %v3113_v43 }
 0x7cd   :  { %6248 = vpow2.f32 %v4363_v30 }
 0x7ce   :  { %6250 = vpow2.f32 %v4364_v62  ;;  %v4366_v62 = vld [vmem:[%s7744_s0 + $0xc0] sm:$0xff] }
 0x7cf   :  { %6252 = vtanh.f32 %v3184_v19 }
 0x7d0   :  { %6254 = vpow2.f32 %v4365_v42 }
 0x7d7   :  { %v6249_v13 = vpop.eup %6248 }
 0x7d8   :  { %v3199_v36 = vadd.f32 1.0, %v6249_v13  ;;  %v6251_v7 = vpop.eup %6250 }
 0x7d9   :  { %v3200_v55 = vadd.f32 1.0, %v6251_v7  ;;  %v6253_v11 = vpop.eup %6252 }
 0x7da   :  { %6256 = vrcp.f32 %v3199_v36  ;;  %v6255_v58 = vpop.eup %6254 }
 0x7db   :  { %6258 = vrcp.f32 %v3200_v55  ;;  %v3201_v30 = vadd.f32 1.0, %v6255_v58 }
 0x7dd   :  { %6260 = vrcp.f32 %v3201_v30 }
 0x7e4   :  { %v6257_v53 = vpop.eup %6256 }
 0x7e5   :  { %v3210_v46 = vmul.f32 %v6257_v53, %v6253_v11  ;;  %v6259_v43 = vpop.eup %6258 }
 0x7e6   :  { %v3209_v34 = vmul.f32 %v6259_v43, %v7378_v10  ;;  %v4368_v10 = vld [vmem:[%s7744_s0 + $0xd0] sm:$0xff] }
 0x7e7   :  { %v6261_v43 = vpop.eup %6260 }
 0x7e8   :  { %v3280_v42 = vpop.f32.mrb[24].mxu0  ;;  %v3351_v36 = vpop.f32.mrb[24].mxu1  ;;  %v7504_v19 = vadd.f32 %v3210_v46, %v3209_v34  ;;  %v4369_v46 = vld [vmem:[%s7744_s0 + $0xd8] sm:$0xff] }
 0x7e9   :  { %v3361_v7 = vadd.f32 %v4366_v62, %v3280_v42  ;;  %v3282_v24 = vpop.f32.mrb[25].mxu0  ;;  %v3353_v13 = vpop.f32.mrb[25].mxu1  ;;  %v3363_v53 = vadd.f32 %v4368_v10, %v3351_v36 }
 0x7ea   :  { %v3362_v11 = vadd.f32 %v4367_v51, %v3282_v24  ;;  %6262 = vtanh.f32 %v7504_v19  ;;  %v3364_v62 = vadd.f32 %v4369_v46, %v3353_v13 }
 0x7eb   :  { %v4370_v58 = vmul.f32 -1.442695, %v3361_v7  ;;  %v4372_v30 = vmul.f32 -1.442695, %v3363_v53 }
 0x7ec   :  { %v4371_v55 = vmul.f32 -1.442695, %v3362_v11 }
 0x7ed   :  { %6264 = vpow2.f32 %v4370_v58 }
 0x7ee   :  { %6266 = vpow2.f32 %v4371_v55 }
 0x7ef   :  { %6268 = vtanh.f32 %v3364_v62 }
 0x7f0   :  { %6270 = vpow2.f32 %v4372_v30  ;;  %v8321_v30 = vld [vmem:[#allocation21_spill] sm:$0xff] }
 0x7f4   :  { %v6263_v34 = vpop.eup %6262 }
 0x7f5   :  { %v3213_v51 = vmul.f32 %v6263_v34, %v6261_v43 }
 0x7f7   :  { %v6265_v42 = vpop.eup %6264  ;;  %3454 = vmatmul.mubr.f32.vlgmr.msra.gmra.mrb[26].mxu0 %v3213_v51  ;;  %3525 = vmatmul.mubr.f32.vlgmr.msra.gmra.mrb[26].mxu1 %v3213_v51  ;;  %v8322_v51 = vld [vmem:[#allocation27_spill] sm:$0xff] }
 0x7f8   :  { %v3374_v24 = vadd.f32 1.0, %v6265_v42  ;;  %v6267_v7 = vpop.eup %6266  ;;  %5724 = vmatpush1.bf16.msra.mxu0 %v8034_v49  ;;  %5756 = vmatpush1.bf16.msra.mxu1 %v8035_v22  ;;  %v8323_v42 = vld [vmem:[#allocation24_spill] sm:$0xff] }
 0x7f9   :  { %v3375_v36 = vadd.f32 1.0, %v6267_v7  ;;  %5726 = vmatprep.subr.bf16.mxu0 %v8089_v47  ;;  %5758 = vmatprep.subr.bf16.mxu1 %v8090_v27  ;;  %v6269_v13 = vpop.eup %6268  ;;  %v8325_v7 = vld [vmem:[#allocation25_spill] sm:$0xff] }
 0x7fa   :  { %6272 = vrcp.f32 %v3374_v24  ;;  %3595 = vmatprep.mubr.f32.mxu0 %v7988_v40  ;;  %3666 = vmatprep.mubr.f32.mxu1 %v7988_v40  ;;  %v6271_v11 = vpop.eup %6270  ;;  %v8324_v24 = vld [vmem:[#allocation29_spill] sm:$0xff] }
 0x7fb   :  { %6274 = vrcp.f32 %v3375_v36  ;;  %v3376_v53 = vadd.f32 1.0, %v6271_v11  ;;  %v8326_v36 = vld [vmem:[#allocation31_spill] sm:$0xff]  ;;  %v8328_v11 = vld [vmem:[#allocation33_spill] sm:$0xff] }
 0x7fc   :  { %5728 = vmatpush1.bf16.msra.mxu0 %v8091_v0  ;;  %5760 = vmatpush1.bf16.msra.mxu1 %v8092_v23 }
 0x7fd   :  { %5730 = vmatprep.subr.bf16.mxu0 %v8144_v32  ;;  %5762 = vmatprep.subr.bf16.mxu1 %v8094_v63  ;;  %6276 = vrcp.f32 %v3376_v53  ;;  %v8332_v53 = vld [vmem:[#allocation37_spill] sm:$0xff] }
 0x800   :  { %5732 = vmatpush1.bf16.msra.mxu0 %v8145_v31  ;;  %5764 = vmatpush1.bf16.msra.mxu1 %v8146_v1 }
 0x801   :  { %5734 = vmatprep.subr.bf16.mxu0 %v8097_v61  ;;  %5766 = vmatprep.subr.bf16.mxu1 %v8098_v41 }
 0x804   :  { %v6273_v58 = vpop.eup %6272  ;;  %5736 = vmatpush1.bf16.msra.mxu0 %v8046_v38  ;;  %5768 = vmatpush1.bf16.msra.mxu1 %v8047_v60 }
 0x805   :  { %v3385_v55 = vmul.f32 %v6273_v58, %v6269_v13  ;;  %v6275_v10 = vpop.eup %6274  ;;  %5738 = vmatprep.subr.bf16.mxu0 %v8147_v18  ;;  %5770 = vmatprep.subr.bf16.mxu1 %v8148_v15  ;;  %v8327_v13 = vld [vmem:[#allocation28_spill] sm:$0xff]  ;;  %v8329_v58 = vld [vmem:[#allocation30_spill] sm:$0xff] }
 0x806   :  { %v3384_v46 = vmul.f32 %v6275_v10, %v7406_v52  ;;  %v8331_v10 = vld [vmem:[#allocation32_spill] sm:$0xff] }
 0x807   :  { %v6277_v52 = vpop.eup %6276 }
 0x808   :  { %v7532_v43 = vadd.f32 %v3385_v55, %v3384_v46  ;;  %5740 = vmatpush1.bf16.msra.mxu0 %v8050_v50  ;;  %5772 = vmatpush1.bf16.msra.mxu1 %v8051_v2  ;;  %v8330_v55 = vld [vmem:[#allocation35_spill] sm:$0xff]  ;;  %v8333_v46 = vld [vmem:[#allocation34_spill] sm:$0xff] }
 0x809   :  { %5742 = vmatprep.subr.bf16.mxu0 %v8100_v3  ;;  %5774 = vmatprep.subr.bf16.mxu1 %v8101_v29 }
 0x80a   :  { %6278 = vtanh.f32 %v7532_v43 }
 0x80c   :  { %5744 = vmatpush1.bf16.msra.mxu0 %v8102_v21  ;;  %5776 = vmatpush1.bf16.msra.mxu1 %v8103_v57 }
 0x80d   :  { %5746 = vmatprep.subr.bf16.mxu0 %v8104_v54  ;;  %5778 = vmatprep.subr.bf16.mxu1 %v6739_v6 }
 0x810   :  { %5748 = vmatpush1.bf16.msra.mxu0 %v6741_v39  ;;  %5780 = vmatpush1.bf16.msra.mxu1 %v8056_v4 }
 0x811   :  { %5750 = vmatprep.subr.bf16.mxu0 %v8057_v35  ;;  %5782 = vmatprep.subr.bf16.mxu1 %v8058_v5 }
 0x814   :  { %v6279_v62 = vpop.eup %6278  ;;  %5752 = vmatpush1.bf16.msra.mxu0 %v8059_v12  ;;  %5784 = vmatpush1.bf16.msra.mxu1 %v8060_v20 }
 0x815   :  { %5786 = vmatprep.subr.bf16.mxu0 %v8061_v16  ;;  %5818 = vmatprep.subr.bf16.mxu1 %v8062_v28  ;;  %v3388_v34 = vmul.f32 %v6279_v62, %v6277_v52  ;;  %v8313_v28 = vld [vmem:[#allocation14_spill] sm:$0xff]  ;;  %v8334_v52 = vld [vmem:[#allocation39_spill] sm:$0xff]  ;;  %v8335_v62 = vld [vmem:[#allocation36_spill] sm:$0xff] }
 0x816   :  { %v8320_v16 = vld [vmem:[#allocation26_spill] sm:$0xff] }
 0x817   :  { %3596 = vmatmul.mubr.f32.vlgmr.msra.gmra.mrb[26].mxu0 %v3388_v34  ;;  %3667 = vmatmul.mubr.f32.vlgmr.msra.gmra.mrb[26].mxu1 %v3388_v34 }
 0x818   :  { %5788 = vmatpush1.bf16.msra.mxu0 %v6466_v8  ;;  %5820 = vmatpush1.bf16.msra.mxu1 %v6479_v25  ;;  %v8309_v8 = vld [vmem:[#allocation12_spill] sm:$0xff]  ;;  %v8311_v25 = vld [vmem:[#allocation13_spill] sm:$0xff] }
 0x819   :  { %5790 = vmatprep.subr.bf16.mxu0 %v6468_v9  ;;  %5822 = vmatprep.subr.bf16.mxu1 %v6489_v33  ;;  %v8310_v9 = vld [vmem:[#allocation15_spill] sm:$0xff]  ;;  %v8312_v33 = vld [vmem:[#allocation18_spill] sm:$0xff] }
 0x81a   :  { %3765 = vmatprep.mubr.f32.mxu0 %v7988_v40  ;;  %3836 = vmatprep.mubr.f32.mxu1 %v7988_v40 }
 0x81c   :  { %5792 = vmatpush1.bf16.msra.mxu0 %v6472_v14  ;;  %5824 = vmatpush1.bf16.msra.mxu1 %v6491_v37  ;;  %v8314_v14 = vld [vmem:[#allocation19_spill] sm:$0xff]  ;;  %v8315_v37 = vld [vmem:[#allocation16_spill] sm:$0xff] }
 0x81d   :  { %5794 = vmatprep.subr.bf16.mxu0 %v6475_v17  ;;  %5826 = vmatprep.subr.bf16.mxu1 %v6497_v45  ;;  %v8316_v17 = vld [vmem:[#allocation22_spill] sm:$0xff]  ;;  %v8317_v45 = vld [vmem:[#allocation17_spill] sm:$0xff] }
 0x820   :  { %5796 = vmatpush1.bf16.msra.mxu0 %v6482_v26  ;;  %5828 = vmatpush1.bf16.msra.mxu1 %v6503_v48  ;;  %v8318_v26 = vld [vmem:[#allocation23_spill] sm:$0xff]  ;;  %v8319_v48 = vld [vmem:[#allocation20_spill] sm:$0xff] }
 0x821   :  { %5798 = vmatprep.subr.bf16.mxu0 %v8309_v8  ;;  %5830 = vmatprep.subr.bf16.mxu1 %v8310_v9  ;;  %v8336_v8 = vld [vmem:[#allocation41_spill] sm:$0xff]  ;;  %v8337_v9 = vld [vmem:[#allocation38_spill] sm:$0xff] }
 0x824   :  { %5800 = vmatpush1.bf16.msra.mxu0 %v8311_v25  ;;  %5832 = vmatpush1.bf16.msra.mxu1 %v8312_v33  ;;  %v8338_v25 = vld [vmem:[#allocation43_spill] sm:$0xff]  ;;  %v8340_v33 = vld [vmem:[#allocation45_spill] sm:$0xff] }
 0x825   :  { %5802 = vmatprep.subr.bf16.mxu0 %v8313_v28  ;;  %5834 = vmatprep.subr.bf16.mxu1 %v8314_v14  ;;  %v8341_v28 = vld [vmem:[#allocation42_spill] sm:$0xff]  ;;  %v8342_v14 = vld [vmem:[#allocation47_spill] sm:$0xff] }
 0x828   :  { %5804 = vmatpush1.bf16.msra.mxu0 %v8315_v37  ;;  %5836 = vmatpush1.bf16.msra.mxu1 %v8316_v17  ;;  %v8343_v37 = vld [vmem:[#allocation44_spill] sm:$0xff]  ;;  %v8344_v17 = vld [vmem:[#allocation49_spill] sm:$0xff] }
 0x829   :  { %5806 = vmatprep.subr.bf16.mxu0 %v8317_v45  ;;  %5838 = vmatprep.subr.bf16.mxu1 %v8318_v26  ;;  %v8345_v45 = vld [vmem:[#allocation46_spill] sm:$0xff] }
 0x82a   :  { %v8346_v26 = vld [vmem:[#allocation50_spill] sm:$0xff] }
 0x82c   :  { %5808 = vmatpush1.bf16.msra.mxu0 %v8319_v48  ;;  %5840 = vmatpush1.bf16.msra.mxu1 %v8320_v16  ;;  %v8347_v48 = vld [vmem:[#allocation48_spill] sm:$0xff]  ;;  %v8348_v16 = vld [vmem:[#allocation51_spill] sm:$0xff] }
 0x82d   :  { %5810 = vmatprep.subr.bf16.mxu0 %v8321_v30  ;;  %5842 = vmatprep.subr.bf16.mxu1 %v8322_v51  ;;  %v8349_v30 = vld [vmem:[#allocation52_spill] sm:$0xff]  ;;  %v8350_v51 = vld [vmem:[#allocation53_spill] sm:$0xff] }
 0x830   :  { %5812 = vmatpush1.bf16.msra.mxu0 %v8323_v42  ;;  %5844 = vmatpush1.bf16.msra.mxu1 %v8324_v24  ;;  %v8351_v42 = vld [vmem:[#allocation54_spill] sm:$0xff]  ;;  %v8352_v24 = vld [vmem:[#allocation55_spill] sm:$0xff] }
 0x831   :  { %5814 = vmatprep.subr.bf16.mxu0 %v8325_v7  ;;  %5846 = vmatprep.subr.bf16.mxu1 %v8326_v36  ;;  %v8353_v7 = vld [vmem:[#allocation56_spill] sm:$0xff]  ;;  %v8354_v36 = vld [vmem:[#allocation57_spill] sm:$0xff] }
 0x834   :  { %5816 = vmatpush1.bf16.msra.mxu0 %v8327_v13  ;;  %5848 = vmatpush1.bf16.msra.mxu1 %v8328_v11  ;;  %v8355_v13 = vld [vmem:[#allocation58_spill] sm:$0xff]  ;;  %v8356_v11 = vld [vmem:[#allocation59_spill] sm:$0xff] }
 0x835   :  { %5850 = vmatprep.subr.bf16.mxu0 %v8329_v58  ;;  %5882 = vmatprep.subr.bf16.mxu1 %v8330_v55  ;;  %v8357_v58 = vld [vmem:[#allocation60_spill] sm:$0xff]  ;;  %v8358_v55 = vld [vmem:[#allocation61_spill] sm:$0xff] }
 0x837   :  { %3766 = vmatmul.mubr.f32.vlgmr.msra.gmra.mrb[28].mxu0 %v3388_v34  ;;  %3837 = vmatmul.mubr.f32.vlgmr.msra.gmra.mrb[28].mxu1 %v3388_v34  ;;  %v8339_v34 = vld [vmem:[#allocation40_spill] sm:$0xff] }
 0x838   :  { %5852 = vmatpush1.bf16.msra.mxu0 %v8331_v10  ;;  %5884 = vmatpush1.bf16.msra.mxu1 %v8332_v53  ;;  %v8359_v10 = vld [vmem:[#allocation62_spill] sm:$0xff]  ;;  %v8360_v53 = vld [vmem:[#allocation63_spill] sm:$0xff] }
 0x839   :  { %5854 = vmatprep.subr.bf16.mxu0 %v8333_v46  ;;  %5886 = vmatprep.subr.bf16.mxu1 %v8334_v52  ;;  %v8361_v46 = vld [vmem:[#allocation64_spill] sm:$0xff]  ;;  %v8362_v52 = vld [vmem:[#allocation65_spill] sm:$0xff] }
 0x83a   :  { %3940 = vmatprep.mubr.f32.mxu0 %v7988_v40  ;;  %4011 = vmatprep.mubr.f32.mxu1 %v7988_v40 }
 0x83c   :  { %5856 = vmatpush1.bf16.msra.mxu0 %v8335_v62  ;;  %5888 = vmatpush1.bf16.msra.mxu1 %v8336_v8 }
 0x83d   :  { %5858 = vmatprep.subr.bf16.mxu0 %v8337_v9  ;;  %5890 = vmatprep.subr.bf16.mxu1 %v8338_v25  ;;  %v8363_v9 = vld [vmem:[#allocation94_spill] sm:$0xff] }
 0x840   :  { %5860 = vmatpush1.bf16.msra.mxu0 %v8339_v34  ;;  %5892 = vmatpush1.bf16.msra.mxu1 %v8340_v33 }
 0x841   :  { %5862 = vmatprep.subr.bf16.mxu0 %v8341_v28  ;;  %5894 = vmatprep.subr.bf16.mxu1 %v8342_v14 }
 0x844   :  { %5864 = vmatpush1.bf16.msra.mxu0 %v8343_v37  ;;  %5896 = vmatpush1.bf16.msra.mxu1 %v8344_v17 }
 0x845   :  { %5866 = vmatprep.subr.bf16.mxu0 %v8345_v45  ;;  %5898 = vmatprep.subr.bf16.mxu1 %v8346_v26 }
 0x848   :  { %5868 = vmatpush1.bf16.msra.mxu0 %v8347_v48  ;;  %5900 = vmatpush1.bf16.msra.mxu1 %v8348_v16 }
 0x849   :  { %5870 = vmatprep.subr.bf16.mxu0 %v8349_v30  ;;  %5902 = vmatprep.subr.bf16.mxu1 %v8350_v51 }
 0x84c   :  { %5872 = vmatpush1.bf16.msra.mxu0 %v8351_v42  ;;  %5904 = vmatpush1.bf16.msra.mxu1 %v8352_v24 }
 0x84d   :  { %5874 = vmatprep.subr.bf16.mxu0 %v8353_v7  ;;  %5906 = vmatprep.subr.bf16.mxu1 %v8354_v36 }
 0x850   :  { %5876 = vmatpush1.bf16.msra.mxu0 %v8355_v13  ;;  %5908 = vmatpush1.bf16.msra.mxu1 %v8356_v11 }
 0x851   :  { %5878 = vmatprep.subr.bf16.mxu0 %v8357_v58  ;;  %5910 = vmatprep.subr.bf16.mxu1 %v8358_v55  ;;  %v4376_v58 = vld [vmem:[%s7744_s0 + $0xe0] sm:$0xff] }
 0x854   :  { %5880 = vmatpush1.bf16.msra.mxu0 %v8359_v10  ;;  %5912 = vmatpush1.bf16.msra.mxu1 %v8360_v53  ;;  %v4377_v10 = vld [vmem:[%s7744_s0 + $0xe8] sm:$0xff] }
 0x855   :  { %5914 = vmatprep.subr.bf16.mxu0 %v8361_v46  ;;  %5946 = vmatprep.subr.bf16.mxu1 %v8362_v52 }
 0x8ea   :  { %v3597_v62 = vpop.f32.mrb[26].mxu0  ;;  %v3668_v8 = vpop.f32.mrb[26].mxu1 }
 0x8eb   :  { %v3598_v25 = vadd.f32 %v3597_v62, %v8363_v9  ;;  %v3599_v34 = vpop.f32.mrb[27].mxu0  ;;  %v3670_v33 = vpop.f32.mrb[27].mxu1  ;;  %v3669_v17 = vadd.f32 %v3668_v8, %v6859_v56 }
 0x8ec   :  { %v3600_v28 = vadd.f32 %v3599_v34, %v6855_v59  ;;  %v3671_v45 = vadd.f32 %v3670_v33, %v6861_v44 }
 0x8ed   :  { %v4373_v14 = vmul.f32 -1.442695, %v3598_v25  ;;  %v4375_v26 = vmul.f32 -1.442695, %v3669_v17 }
 0x8ee   :  { %v4374_v37 = vmul.f32 -1.442695, %v3600_v28 }
 0x8ef   :  { %6280 = vpow2.f32 %v4373_v14 }
 0x8f0   :  { %6282 = vpow2.f32 %v4374_v37  ;;  %v4379_v37 = vld [vmem:[%s7744_s0 + $0xf8] sm:$0xff] }
 0x8f1   :  { %6284 = vtanh.f32 %v3671_v45 }
 0x8f2   :  { %6286 = vpow2.f32 %v4375_v26 }
 0x8f9   :  { %v6281_v48 = vpop.eup %6280 }
 0x8fa   :  { %v3686_v16 = vadd.f32 1.0, %v6281_v48  ;;  %v6283_v30 = vpop.eup %6282 }
 0x8fb   :  { %v3687_v51 = vadd.f32 1.0, %v6283_v30  ;;  %v6285_v42 = vpop.eup %6284 }
 0x8fc   :  { %6288 = vrcp.f32 %v3686_v16  ;;  %v6287_v24 = vpop.eup %6286 }
 0x8fd   :  { %6290 = vrcp.f32 %v3687_v51  ;;  %v3688_v11 = vadd.f32 1.0, %v6287_v24 }
 0x8ff   :  { %6292 = vrcp.f32 %v3688_v11  ;;  %v4217_v11 = vld [vmem:[%s7750_s6 + $0x78] sm:$0xff] }
 0x906   :  { %v6289_v7 = vpop.eup %6288 }
 0x907   :  { %v3697_v36 = vmul.f32 %v6289_v7, %v6285_v42  ;;  %v6291_v13 = vpop.eup %6290  ;;  %v4215_v7 = vld [vmem:[%s7750_s6 + $0x68] sm:$0xff] }
 0x908   :  { %v3696_v55 = vmul.f32 %v6291_v13, %v7504_v19  ;;  %v4378_v19 = vld [vmem:[%s7744_s0 + $0xf0] sm:$0xff] }
 0x909   :  { %v6293_v17 = vpop.eup %6292  ;;  %v4216_v13 = vld [vmem:[%s7750_s6 + $0x70] sm:$0xff] }
 0x90a   :  { %v3767_v53 = vpop.f32.mrb[28].mxu0  ;;  %v3838_v46 = vpop.f32.mrb[28].mxu1  ;;  %v7630_v52 = vadd.f32 %v3697_v36, %v3696_v55 }
 0x90b   :  { %v3848_v62 = vadd.f32 %v4376_v58, %v3767_v53  ;;  %v3769_v8 = vpop.f32.mrb[29].mxu0  ;;  %v3840_v25 = vpop.f32.mrb[29].mxu1  ;;  %v3850_v14 = vadd.f32 %v4378_v19, %v3838_v46  ;;  %v5999_v58 = vpack.c.bf16 %v4217_v11, %v4216_v13 }
 0x90c   :  { %v3849_v34 = vadd.f32 %v4377_v10, %v3769_v8  ;;  %6294 = vtanh.f32 %v7630_v52  ;;  %v3851_v45 = vadd.f32 %v4379_v37, %v3840_v25 }
 0x90d   :  { %v4380_v33 = vmul.f32 -1.442695, %v3848_v62  ;;  %v4382_v48 = vmul.f32 -1.442695, %v3850_v14 }
 0x90e   :  { %v4381_v28 = vmul.f32 -1.442695, %v3849_v34 }
 0x90f   :  { %6296 = vpow2.f32 %v4380_v33 }
 0x910   :  { %6298 = vpow2.f32 %v4381_v28 }
 0x911   :  { %6300 = vtanh.f32 %v3851_v45 }
 0x912   :  { %6302 = vpow2.f32 %v4382_v48 }
 0x916   :  { %v6295_v26 = vpop.eup %6294 }
 0x917   :  { %v3700_v16 = vmul.f32 %v6295_v26, %v6293_v17 }
 0x919   :  { %v6297_v30 = vpop.eup %6296  ;;  %3941 = vmatmul.mubr.f32.vlgmr.msra.gmra.mrb[30].mxu0 %v3700_v16  ;;  %4012 = vmatmul.mubr.f32.vlgmr.msra.gmra.mrb[30].mxu1 %v3700_v16 }
 0x91a   :  { %v3861_v51 = vadd.f32 1.0, %v6297_v30  ;;  %v6299_v42 = vpop.eup %6298  ;;  %5916 = vmatpush1.bf16.msra.mxu0 %v8034_v49  ;;  %5948 = vmatpush1.bf16.msra.mxu1 %v8035_v22 }
 0x91b   :  { %v3862_v24 = vadd.f32 1.0, %v6299_v42  ;;  %5918 = vmatprep.subr.bf16.mxu0 %v8089_v47  ;;  %5950 = vmatprep.subr.bf16.mxu1 %v8090_v27  ;;  %v6301_v49 = vpop.eup %6300 }
 0x91c   :  { %6304 = vrcp.f32 %v3861_v51  ;;  %4082 = vmatprep.mubr.f32.mxu0 %v7988_v40  ;;  %4153 = vmatprep.mubr.f32.mxu1 %v7988_v40  ;;  %v6303_v22 = vpop.eup %6302 }
 0x91d   :  { %6306 = vrcp.f32 %v3862_v24 }
 0x91e   :  { %5920 = vmatpush1.bf16.msra.mxu0 %v8091_v0  ;;  %5952 = vmatpush1.bf16.msra.mxu1 %v8092_v23  ;;  %v3863_v23 = vadd.f32 1.0, %v6303_v22 }
 0x91f   :  { %5922 = vmatprep.subr.bf16.mxu0 %v8144_v32  ;;  %5954 = vmatprep.subr.bf16.mxu1 %v8094_v63 }
 0x920   :  { %6308 = vrcp.f32 %v3863_v23 }
 0x922   :  { %5924 = vmatpush1.bf16.msra.mxu0 %v8145_v31  ;;  %5956 = vmatpush1.bf16.msra.mxu1 %v8146_v1  ;;  %v4212_v1 = vld [vmem:[%s7750_s6 + $0x50] sm:$0xff] }
 0x923   :  { %5926 = vmatprep.subr.bf16.mxu0 %v8097_v61  ;;  %5958 = vmatprep.subr.bf16.mxu1 %v8098_v41  ;;  %v4208_v61 = vld [vmem:[%s7750_s6 + $0x30] sm:$0xff]  ;;  %v4209_v41 = vld [vmem:[%s7750_s6 + $0x38] sm:$0xff] }
 0x926   :  { %v6305_v47 = vpop.eup %6304  ;;  %5928 = vmatpush1.bf16.msra.mxu0 %v8046_v38  ;;  %5960 = vmatpush1.bf16.msra.mxu1 %v8047_v60 }
 0x927   :  { %v3872_v27 = vmul.f32 %v6305_v47, %v6301_v49  ;;  %v6307_v0 = vpop.eup %6306  ;;  %5930 = vmatprep.subr.bf16.mxu0 %v8147_v18  ;;  %5962 = vmatprep.subr.bf16.mxu1 %v8148_v15  ;;  %v4213_v18 = vld [vmem:[%s7750_s6 + $0x58] sm:$0xff] }
 0x928   :  { %v3871_v63 = vmul.f32 %v6307_v0, %v7532_v43  ;;  %v5993_v15 = vpack.c.bf16 %v4213_v18, %v4212_v1  ;;  %v4214_v43 = vld [vmem:[%s7750_s6 + $0x60] sm:$0xff] }
 0x929   :  { %v5996_v36 = vpack.c.bf16 %v4215_v7, %v4214_v43 }
 0x92a   :  { %v3873_v32 = vadd.f32 %v3872_v27, %v3871_v63  ;;  %5932 = vmatpush1.bf16.msra.mxu0 %v8050_v50  ;;  %5964 = vmatpush1.bf16.msra.mxu1 %v8051_v2  ;;  %v6309_v38 = vpop.eup %6308  ;;  %v6381_v2 = vmov 0.0|0.0  }
 0x92b   :  { %5934 = vmatprep.subr.bf16.mxu0 %v8100_v3  ;;  %5966 = vmatprep.subr.bf16.mxu1 %v8101_v29  ;;  %v5987_v3 = vpack.c.bf16 %v4209_v41, %v4208_v61  ;;  %v4210_v29 = vld [vmem:[%s7750_s6 + $0x40] sm:$0xff] }
 0x92c   :  { %6310 = vtanh.f32 %v3873_v32  ;;  %4196 = vst [vmem:[%s7754_s10] sm:$0xff] %v3873_v32 }
 0x92e   :  { %5936 = vmatpush1.bf16.msra.mxu0 %v8102_v21  ;;  %5968 = vmatpush1.bf16.msra.mxu1 %v8103_v57  ;;  %v4211_v21 = vld [vmem:[%s7750_s6 + $0x48] sm:$0xff] }
 0x92f   :  { %5938 = vmatprep.subr.bf16.mxu0 %v8104_v54  ;;  %5970 = vmatprep.subr.bf16.mxu1 %v6739_v6  ;;  %v4202_v6 = vld [vmem:[%s7750_s6] sm:$0xff]  ;;  %v5990_v31 = vpack.c.bf16 %v4211_v21, %v4210_v29 }
 0x932   :  { %5940 = vmatpush1.bf16.msra.mxu0 %v6741_v39  ;;  %5972 = vmatpush1.bf16.msra.mxu1 %v8056_v4  ;;  %v4203_v39 = vld [vmem:[%s7750_s6 + $0x8] sm:$0xff] }
 0x933   :  { %5942 = vmatprep.subr.bf16.mxu0 %v8057_v35  ;;  %5974 = vmatprep.subr.bf16.mxu1 %v8058_v5  ;;  %v5978_v54 = vpack.c.bf16 %v4203_v39, %v4202_v6  ;;  %v4206_v35 = vld [vmem:[%s7750_s6 + $0x20] sm:$0xff]  ;;  %v4207_v5 = vld [vmem:[%s7750_s6 + $0x28] sm:$0xff] }
 0x934   :  { %v5984_v57 = vpack.c.bf16 %v4207_v5, %v4206_v35 }
 0x936   :  { %v6311_v60 = vpop.eup %6310  ;;  %5944 = vmatpush1.bf16.msra.mxu0 %v8059_v12  ;;  %5976 = vmatpush1.bf16.msra.mxu1 %v8060_v20  ;;  %v4204_v20 = vld [vmem:[%s7750_s6 + $0x10] sm:$0xff]  ;;  %v4205_v12 = vld [vmem:[%s7750_s6 + $0x18] sm:$0xff] }
 0x937   :  { %v3875_v50 = vmul.f32 %v6311_v60, %v6309_v38  ;;  %5977 = vmatprep.subr.bf16.mxu0 %v6381_v2  ;;  %v5981_v4 = vpack.c.bf16 %v4205_v12, %v4204_v20 }
 0x939   :  { %4083 = vmatmul.mubr.f32.vlgmr.msra.gmra.mrb[30].mxu0 %v3875_v50  ;;  %4195 = vst [vmem:[%s7753_s9] sm:$0xff] %v3875_v50  ;;  %4154 = vmatmul.mubr.f32.vlgmr.msra.gmra.mrb[30].mxu1 %v3875_v50 }
 0x93a   :  { %5979 = vmatpush3.bf16.msra.mxu0 %v5978_v54  ;;  %4438 = vmatprep.mubr.msk.f32.mxu0 %vm6382_vm0, %v7988_v40 }
 0x93b   :  { %5980 = vmatprep.subr.bf16.mxu0 %v6381_v2 }
 0x93e   :  { %5982 = vmatpush3.bf16.msra.mxu0 %v5981_v4 }
 0x93f   :  { %5983 = vmatprep.subr.bf16.mxu0 %v6381_v2 }
 0x942   :  { %5985 = vmatpush3.bf16.msra.mxu0 %v5984_v57 }
 0x943   :  { %5986 = vmatprep.subr.bf16.mxu0 %v6381_v2 }
 0x946   :  { %5988 = vmatpush3.bf16.msra.mxu0 %v5987_v3 }
 0x947   :  { %5989 = vmatprep.subr.bf16.mxu0 %v6381_v2 }
 0x94a   :  { %5991 = vmatpush3.bf16.msra.mxu0 %v5990_v31 }
 0x94b   :  { %5992 = vmatprep.subr.bf16.mxu0 %v6381_v2 }
 0x94e   :  { %5994 = vmatpush3.bf16.msra.mxu0 %v5993_v15 }
 0x94f   :  { %5995 = vmatprep.subr.bf16.mxu0 %v6381_v2 }
 0x952   :  { %5997 = vmatpush3.bf16.msra.mxu0 %v5996_v36 }
 0x953   :  { %5998 = vmatprep.subr.bf16.mxu0 %v6381_v2 }
 0x956   :  { %6000 = vmatpush3.bf16.msra.mxu0 %v5999_v58 }
 0xa0c   :  { %v4084_v55 = vpop.f32.mrb[30].mxu0  ;;  %v4155_v10 = vpop.f32.mrb[30].mxu1 }
 0xa0d   :  { %v4085_v53 = vadd.f32 %v4084_v55, %v8363_v9  ;;  %v4086_v40 = vpop.f32.mrb[31].mxu0  ;;  %v4157_v46 = vpop.f32.mrb[31].mxu1  ;;  %v4156_v34 = vadd.f32 %v4155_v10, %v6859_v56 }
 0xa0e   :  { %v4087_v62 = vadd.f32 %v4086_v40, %v6855_v59  ;;  %v4158_v33 = vadd.f32 %v4157_v46, %v6861_v44 }
 0xa0f   :  { %v4383_v8 = vmul.f32 -1.442695, %v4085_v53  ;;  %v4385_v28 = vmul.f32 -1.442695, %v4156_v34 }
 0xa10   :  { %v4384_v25 = vmul.f32 -1.442695, %v4087_v62 }
 0xa11   :  { %6312 = vpow2.f32 %v4383_v8 }
 0xa12   :  { %6314 = vpow2.f32 %v4384_v25 }
 0xa13   :  { %6316 = vtanh.f32 %v4158_v33 }
 0xa14   :  { %6318 = vpow2.f32 %v4385_v28 }
 0xa1b   :  { %v6313_v19 = vpop.eup %6312 }
 0xa1c   :  { %v4173_v14 = vadd.f32 1.0, %v6313_v19  ;;  %v6315_v37 = vpop.eup %6314 }
 0xa1d   :  { %v4174_v9 = vadd.f32 1.0, %v6315_v37  ;;  %v6317_v17 = vpop.eup %6316 }
 0xa1e   :  { %6320 = vrcp.f32 %v4173_v14  ;;  %v6319_v45 = vpop.eup %6318 }
 0xa1f   :  { %6322 = vrcp.f32 %v4174_v9  ;;  %v4175_v16 = vadd.f32 1.0, %v6319_v45 }
 0xa21   :  { %6324 = vrcp.f32 %v4175_v16 }
 0xa28   :  { %v6321_v59 = vpop.eup %6320 }
 0xa29   :  { %v4184_v26 = vmul.f32 %v6321_v59, %v6317_v17  ;;  %v6323_v48 = vpop.eup %6322 }
 0xa2a   :  { %v4183_v30 = vmul.f32 %v6323_v48, %v7630_v52  ;;  %v4388_v52 = vld [vmem:[%s7751_s7] ss:$0 sm:$0xff] }
 0xa2b   :  { %v6325_v44 = vpop.eup %6324 }
 0xa2c   :  { %v4185_v56 = vadd.f32 %v4184_v26, %v4183_v30 }
 0xa2e   :  { %6326 = vtanh.f32 %v4185_v56  ;;  %4387 = vst [vmem:[%s7754_s10 + $0x8] sm:$0xff] %v4185_v56 }
 0xa38   :  { %v6327_v51 = vpop.eup %6326 }
 0xa39   :  { %v4187_v42 = vmul.f32 %v6327_v51, %v6325_v44 }
 0xa3b   :  { %4386 = vst [vmem:[%s7753_s9 + $0x8] sm:$0xff] %v4187_v42  ;;  %v4201_v24 = vmax.f32 %v4187_v42, 0.0 }
 0xa3d   :  { %4439 = vmatmul.mubr.f32.vlgmr.msra.gmra.mrb[32].mxu0 %v4201_v24 }
 0xb10   :  { %v4291_v49 = vpop.f32.mrb[32].mxu0 }
 0xb11   :  { %v4292_v22 = vadd.f32 %v4388_v52, %v4291_v49  ;;  %v4440_v47 = vpop.f32.mrb[33].mxu0 }
 0xb13   :  { %4295 = vst [vmem:[%s7752_s8] sm:$0xff] %v4292_v22 }
 0xb14   :  { %4308 = vsyncpa [#allocation5], 1 }
 0xb15   :  { %4309 = vsyncpa [#allocation7], 1 }

</bundles_post_ra>
